<compile_context>
chip_gen: v5e
topology: v5e:2x2
jax: 0.10.0
libtpu: 0.0.40
codegen_flags: <defaults>
</compile_context>

<pallas_src>
import functools

import jax
import jax.numpy as jnp
from jax.experimental import pallas as pl
from jax.experimental.pallas import tpu as pltpu


# ----------------------------------------------------------------------------
# Kernel: one (batch, row-tile) per grid step.
# ----------------------------------------------------------------------------
def gsau_kernel(x_ref, x_hbm_ref, vec_ref, w_ref, dwk_ref,      # inputs
                out_ref,                                        # output
                a_pad, halo, sem,                               # scratch
                *, C, H, W, TH, eps):
    Cp = x_ref.shape[-1]
    b = pl.program_id(0)
    i = pl.program_id(1)
    nrt = pl.num_programs(1)
    row0 = i * TH

    # --- kick off the two 3-row halo DMAs; they overlap interior compute -----
    # Starts are clamped so the copies are always in-bounds; at the image
    # top/bottom the fetched rows are unused (those a_pad rows get zeroed).
    top_start = jnp.maximum(row0 - 3, 0)
    bot_start = jnp.minimum(row0 + TH, H - 3)
    top_cp = pltpu.make_async_copy(
        x_hbm_ref.at[b, pl.ds(top_start, 3)], halo.at[0], sem.at[0])
    bot_cp = pltpu.make_async_copy(
        x_hbm_ref.at[b, pl.ds(bot_start, 3)], halo.at[1], sem.at[1])
    top_cp.start()
    bot_cp.start()

    # --- packed parameters ----------------------------------------------------
    ln_w = vec_ref[0:1]            # (1, Cp)
    ln_b = vec_ref[1:2]
    b1a = vec_ref[2:3]
    b1g = vec_ref[3:4]
    dw_b = vec_ref[4:5]
    b2 = vec_ref[5:6]
    scale = vec_ref[6:7]
    w1 = w_ref[:, :2 * Cp]         # (Cp, 2Cp) bf16, columns = [a | gate]
    w2 = w_ref[:, 2 * Cp:]         # (Cp, Cp)  bf16

    lane = jax.lax.broadcasted_iota(jnp.int32, (1, Cp), 1)
    cmask = (lane < C).astype(jnp.float32)     # real-channel mask (pad lanes 0)
    inv_c = 1.0 / C

    def layernorm(x2d):            # channels_first LN over the real C channels
        u = jnp.sum(x2d, axis=-1, keepdims=True) * inv_c
        xc = (x2d - u) * cmask
        var = jnp.sum(xc * xc, axis=-1, keepdims=True) * inv_c
        return (xc * jax.lax.rsqrt(var + eps)) * ln_w + ln_b

    # --- interior rows: LN + fused 1x1 Conv1 (single bf16 MXU matmul) ---------
    x_int = x_ref[0]                                     # (TH, W, Cp) f32
    x2 = x_int.reshape(TH * W, Cp)
    xn = layernorm(x2).astype(jnp.bfloat16)
    y = jnp.dot(xn, w1, preferred_element_type=jnp.float32)     # (TH*W, 2Cp)
    a_int = (y[:, :Cp] + b1a).reshape(TH, W, Cp)
    g = y[:, Cp:] + b1g                                  # (TH*W, Cp) gate branch

    # --- halo rows: only the `a` branch is needed ------------------------------
    top_cp.wait()
    bot_cp.wait()
    w1a = w1[:, :Cp]

    def a_branch(x3):                                    # (3, W, Cp) -> (3, W, Cp)
        xn_h = layernorm(x3.reshape(3 * W, Cp)).astype(jnp.bfloat16)
        yh = jnp.dot(xn_h, w1a, preferred_element_type=jnp.float32) + b1a
        return yh.reshape(3, W, Cp)

    a_top = a_branch(halo[0])
    a_bot = a_branch(halo[1])

    # --- assemble zero-padded `a`: (TH+6, W+6, Cp); no per-tap masking ---------
    zcol = jnp.zeros((TH + 6, 3, Cp), jnp.float32)
    a_pad[:, 0:3, :] = zcol
    a_pad[:, W + 3:, :] = zcol
    a_pad[3:3 + TH, 3:3 + W, :] = a_int
    a_pad[0:3, 3:3 + W, :] = a_top
    a_pad[3 + TH:, 3:3 + W, :] = a_bot

    zrow = jnp.zeros((3, W + 6, Cp), jnp.float32)

    @pl.when(i == 0)                       # image top: halo rows are zero padding
    def _():
        a_pad[0:3, :, :] = zrow

    @pl.when(i == nrt - 1)                 # image bottom
    def _():
        a_pad[3 + TH:, :, :] = zrow

    # --- depthwise 7x7: 49 unmasked static slices of the padded scratch -------
    acc = a_pad[0:TH, 0:W, :] * dwk_ref[0:1]
    for t in range(1, 49):
        kh, kw = divmod(t, 7)
        acc = acc + a_pad[kh:kh + TH, kw:kw + W, :] * dwk_ref[t:t + 1]
    dw_out = (acc + dw_b).reshape(TH * W, Cp)            # bias added once

    # --- gate, Conv2 (1x1), scale + residual -----------------------------------
    gated = (g * dw_out).astype(jnp.bfloat16)
    z = jnp.dot(gated, w2, preferred_element_type=jnp.float32) + b2
    out_ref[0] = (z * scale + x2).reshape(TH, W, Cp)


# ----------------------------------------------------------------------------
# Tile-size / VMEM helpers.
# ----------------------------------------------------------------------------
def _vmem_bytes_estimate(th, W, Cp):
    f32, bf16 = 4, 2
    tile = th * W * Cp * f32
    io = 2 * 2 * tile                                     # x & out, double-buffered
    scratch = (th + 6) * (W + 6) * Cp * f32 + 2 * 3 * W * Cp * f32
    params = 2 * ((8 + 49) * Cp * f32 + Cp * 3 * Cp * bf16)
    temps = 8 * tile                                      # xn / y / a / g / acc / z
    return io + scratch + params + temps


def _choose_tile_rows(H, W, Cp, budget_bytes=20 * 2**20):
    # Largest divisor of H in [3, 64] whose per-step working set fits the budget
    # (budget leaves headroom under the 32 MiB scoped default / v7x 64 MiB VMEM).
    cands = [t for t in range(3, min(H, 64) + 1) if H % t == 0]
    if not cands:
        return H
    best = cands[0]
    for t in cands:
        if _vmem_bytes_estimate(t, W, Cp) <= budget_bytes:
            best = t
    return best


# ----------------------------------------------------------------------------
# Wrapper: NCHW in/out (like the PyTorch module).
# ----------------------------------------------------------------------------
def gsau_pallas(x_nchw, p, tile_rows=None, eps=1e-6):
    B, C, H, W = x_nchw.shape
    assert H >= 3, "height must be >= 3"
    Cp = ((C + 127) // 128) * 128
    TH = tile_rows if tile_rows is not None else _choose_tile_rows(H, W, Cp)
    assert H % TH == 0 and (TH >= 3 or TH == H), (H, TH)
    nrt = H // TH

    # activations: NCHW -> (B, H, W, Cp), channels zero-padded to 128-lane mult.
    x_t = jnp.transpose(x_nchw, (0, 2, 3, 1))
    x_t = jnp.pad(x_t, ((0, 0), (0, 0), (0, 0), (0, Cp - C)))

    # parameters: packed + padded once (padded channels are exactly zero).
    def padc(v):
        return jnp.pad(v, (0, Cp - v.shape[0]))

    vecs = jnp.stack([
        padc(p["ln_w"]), padc(p["ln_b"]),
        padc(p["conv1_b"][:C]), padc(p["conv1_b"][C:]),
        padc(p["dw_b"]), padc(p["conv2_b"]),
        padc(p["scale"][0, :, 0, 0]),
        jnp.zeros((Cp,), jnp.float32),
    ], axis=0)                                            # (8, Cp) f32

    w1 = p["conv1_w"][:, :, 0, 0].T                       # (C, 2C): [:, :C]=a
    w1a = jnp.zeros((Cp, Cp), jnp.float32).at[:C, :C].set(w1[:, :C])
    w1g = jnp.zeros((Cp, Cp), jnp.float32).at[:C, :C].set(w1[:, C:])
    w2p = jnp.zeros((Cp, Cp), jnp.float32).at[:C, :C].set(p["conv2_w"][:, :, 0, 0].T)
    wmat = jnp.concatenate([w1a, w1g, w2p], axis=1).astype(jnp.bfloat16)  # (Cp,3Cp)

    dwk = jnp.zeros((49, Cp), jnp.float32).at[:, :C].set(
        p["dw_w"][:, 0].reshape(C, 49).T)                 # (49, Cp), t = kh*7+kw

    vmem_limit = int(min(max(2 * _vmem_bytes_estimate(TH, W, Cp), 32 * 2**20),
                         64 * 2**20))

    out = pl.pallas_call(
        functools.partial(gsau_kernel, C=C, H=H, W=W, TH=TH, eps=eps),
        out_shape=jax.ShapeDtypeStruct((B, H, W, Cp), jnp.float32),
        grid=(B, nrt),
        in_specs=[
            pl.BlockSpec((1, TH, W, Cp), lambda b, i: (b, i, 0, 0)),  # row tile
            pl.BlockSpec(memory_space=pl.ANY),                        # full x (halo)
            pl.BlockSpec((8, Cp), lambda b, i: (0, 0)),
            pl.BlockSpec((Cp, 3 * Cp), lambda b, i: (0, 0)),
            pl.BlockSpec((49, Cp), lambda b, i: (0, 0)),
        ],
        out_specs=pl.BlockSpec((1, TH, W, Cp), lambda b, i: (b, i, 0, 0)),
        scratch_shapes=[
            pltpu.VMEM((TH + 6, W + 6, Cp), jnp.float32),   # zero-padded `a`
            pltpu.VMEM((2, 3, W, Cp), jnp.float32),         # top/bottom x halo
            pltpu.SemaphoreType.DMA((2,)),
        ],
        compiler_params=pltpu.CompilerParams(
            dimension_semantics=("parallel", "parallel"),
            vmem_limit_bytes=vmem_limit),
    )(x_t, x_t, vecs, wmat, dwk)

    return jnp.transpose(out[..., :C], (0, 3, 1, 2))


# ----------------------------------------------------------------------------
# Pure-JAX reference (NCHW, lax.conv at highest precision).
# ----------------------------------------------------------------------------
def gsau_ref(x, p, eps=1e-6):
    B, C, H, W = x.shape
    shortcut = x
    u = jnp.mean(x, axis=1, keepdims=True)
    s = jnp.mean((x - u) ** 2, axis=1, keepdims=True)
    xn = (x - u) / jnp.sqrt(s + eps)
    xn = p["ln_w"][None, :, None, None] * xn + p["ln_b"][None, :, None, None]

    dn = ("NCHW", "OIHW", "NCHW")
    hp = jax.lax.Precision.HIGHEST
    y = jax.lax.conv_general_dilated(xn, p["conv1_w"], (1, 1), "VALID",
                                     dimension_numbers=dn, precision=hp)
    y = y + p["conv1_b"][None, :, None, None]
    a, g = y[:, :C], y[:, C:]
    dw = jax.lax.conv_general_dilated(a, p["dw_w"], (1, 1), ((3, 3), (3, 3)),
                                      dimension_numbers=dn,
                                      feature_group_count=C, precision=hp)
    dw = dw + p["dw_b"][None, :, None, None]
    z = g * dw
    z = jax.lax.conv_general_dilated(z, p["conv2_w"], (1, 1), "VALID",
                                     dimension_numbers=dn, precision=hp)
    z = z + p["conv2_b"][None, :, None, None]
    return z * p["scale"] + shortcut


def init_params(key, C):
    ks = jax.random.split(key, 9)
    return dict(
        conv1_w=0.1 * jax.random.normal(ks[0], (2 * C, C, 1, 1), jnp.float32),
        conv1_b=0.1 * jax.random.normal(ks[1], (2 * C,), jnp.float32),
        dw_w=0.1 * jax.random.normal(ks[2], (C, 1, 7, 7), jnp.float32),
        dw_b=0.1 * jax.random.normal(ks[3], (C,), jnp.float32),
        conv2_w=0.1 * jax.random.normal(ks[4], (C, C, 1, 1), jnp.float32),
        conv2_b=0.1 * jax.random.normal(ks[5], (C,), jnp.float32),
        ln_w=1.0 + 0.1 * jax.random.normal(ks[6], (C,), jnp.float32),
        ln_b=0.1 * jax.random.normal(ks[7], (C,), jnp.float32),
        # module __init__ uses zeros; random here to make the test non-trivial
        scale=0.1 * jax.random.normal(ks[8], (1, C, 1, 1), jnp.float32),
    )


if __name__ == "__main__":
    key = jax.random.PRNGKey(0)
    kx, kp = jax.random.split(key)
    B, C, H, W = 2, 4, 16, 16            # n_feats = 4
    x = jax.random.normal(kx, (B, C, H, W), jnp.float32)
    params = init_params(kp, C)

    ref = jax.block_until_ready(gsau_ref(x, params))
    fn = jax.jit(gsau_pallas, static_argnames=("tile_rows",))

    # tile_rows=4 exercises the halo / boundary logic (4 row tiles per image);
    # the default auto-chosen tile is also checked.
    for out in (jax.block_until_ready(fn(x, params, tile_rows=4)),
                jax.block_until_ready(fn(x, params))):
        assert out.shape == x.shape
        err = float(jnp.max(jnp.abs(out - ref)))
        # bf16 MXU operands (f32 accumulation) -> slightly relaxed tolerance.
        assert jnp.allclose(out, ref, rtol=2e-3, atol=2e-3), err

    print("KERNEL_OK")
</pallas_src>

<mosaic_0001>
module attributes {stable_mosaic.version = 11 : i64} {
  func.func @gsau_kernel(%arg0: i32, %arg1: i32, %arg2: memref<1x4x16x128xf32, #tpu.memory_space<vmem>>, %arg3: memref<2x16x16x128xf32, #tpu.memory_space<any>>, %arg4: memref<8x128xf32, #tpu.memory_space<vmem>>, %arg5: memref<128x384xbf16, #tpu.memory_space<vmem>>, %arg6: memref<49x128xf32, #tpu.memory_space<vmem>>, %arg7: memref<1x4x16x128xf32, #tpu.memory_space<vmem>>, %arg8: memref<10x22x128xf32, #tpu.memory_space<vmem>>, %arg9: memref<2x3x16x128xf32, #tpu.memory_space<vmem>>, %arg10: memref<2x!tpu.dma_semaphore, #tpu.memory_space<semaphore_mem>>) attributes {dimension_semantics = [#tpu.dimension_semantics<parallel>, #tpu.dimension_semantics<parallel>], iteration_bounds = array<i64: 2, 4>, scalar_prefetch = 0 : i64, scratch_operands = 3 : i64, tpu.core_type = #tpu.core_type<tc>, window_params = [{transform_indices = @transform_0, window_bounds = array<i64: 1, 4, 16, 128>}, {}, {pipeline_mode = #tpu.pipeline_mode<synchronous>, transform_indices = @transform_2, window_bounds = array<i64: 8, 128>}, {pipeline_mode = #tpu.pipeline_mode<synchronous>, transform_indices = @transform_3, window_bounds = array<i64: 128, 384>}, {pipeline_mode = #tpu.pipeline_mode<synchronous>, transform_indices = @transform_4, window_bounds = array<i64: 49, 128>}, {transform_indices = @transform_5, window_bounds = array<i64: 1, 4, 16, 128>}]} {
    %c4_i32 = arith.constant 4 : i32
    %0 = arith.muli %arg1, %c4_i32 : i32
    %c3_i32 = arith.constant 3 : i32
    %1 = arith.subi %0, %c3_i32 : i32
    %c0_i32 = arith.constant 0 : i32
    %2 = arith.maxsi %1, %c0_i32 : i32
    %c4_i32_0 = arith.constant 4 : i32
    %3 = arith.addi %0, %c4_i32_0 : i32
    %c13_i32 = arith.constant 13 : i32
    %4 = arith.minsi %3, %c13_i32 : i32
    %c0_i32_1 = arith.constant 0 : i32
    %c0_i32_2 = arith.constant 0 : i32
    %c0_i32_3 = arith.constant 0 : i32
    %c0_i32_4 = arith.constant 0 : i32
    %5 = tpu.memref_slice %arg3[%arg0, %2, %c0_i32_3, %c0_i32_4] : memref<2x16x16x128xf32, #tpu.memory_space<any>> -> memref<1x3x16x128xf32, #tpu.memory_space<any>>
    %6 = tpu.memref_squeeze %5 : memref<1x3x16x128xf32, #tpu.memory_space<any>> -> memref<3x16x128xf32, #tpu.memory_space<any>>
    %c0_i32_5 = arith.constant 0 : i32
    %c0_i32_6 = arith.constant 0 : i32
    %c0_i32_7 = arith.constant 0 : i32
    %7 = tpu.memref_slice %arg9[%c0_i32_1, %c0_i32_5, %c0_i32_6, %c0_i32_7] : memref<2x3x16x128xf32, #tpu.memory_space<vmem>> -> memref<1x3x16x128xf32, #tpu.memory_space<vmem>>
    %8 = tpu.memref_squeeze %7 : memref<1x3x16x128xf32, #tpu.memory_space<vmem>> -> memref<3x16x128xf32, #tpu.memory_space<vmem>>
    %9 = tpu.memref_slice %arg10[%c0_i32_2] : memref<2x!tpu.dma_semaphore, #tpu.memory_space<semaphore_mem>> -> memref<1x!tpu.dma_semaphore, #tpu.memory_space<semaphore_mem>>
    %10 = tpu.memref_squeeze %9 : memref<1x!tpu.dma_semaphore, #tpu.memory_space<semaphore_mem>> -> memref<!tpu.dma_semaphore, #tpu.memory_space<semaphore_mem>>
    tpu.enqueue_dma source(%6 : memref<3x16x128xf32, #tpu.memory_space<any>>) target(%8 : memref<3x16x128xf32, #tpu.memory_space<vmem>>) target_semaphore(%10 : memref<!tpu.dma_semaphore, #tpu.memory_space<semaphore_mem>>)
    %c1_i32 = arith.constant 1 : i32
    %c1_i32_8 = arith.constant 1 : i32
    %c0_i32_9 = arith.constant 0 : i32
    %c0_i32_10 = arith.constant 0 : i32
    %11 = tpu.memref_slice %arg3[%arg0, %4, %c0_i32_9, %c0_i32_10] : memref<2x16x16x128xf32, #tpu.memory_space<any>> -> memref<1x3x16x128xf32, #tpu.memory_space<any>>
    %12 = tpu.memref_squeeze %11 : memref<1x3x16x128xf32, #tpu.memory_space<any>> -> memref<3x16x128xf32, #tpu.memory_space<any>>
    %c0_i32_11 = arith.constant 0 : i32
    %c0_i32_12 = arith.constant 0 : i32
    %c0_i32_13 = arith.constant 0 : i32
    %13 = tpu.memref_slice %arg9[%c1_i32, %c0_i32_11, %c0_i32_12, %c0_i32_13] : memref<2x3x16x128xf32, #tpu.memory_space<vmem>> -> memref<1x3x16x128xf32, #tpu.memory_space<vmem>>
    %14 = tpu.memref_squeeze %13 : memref<1x3x16x128xf32, #tpu.memory_space<vmem>> -> memref<3x16x128xf32, #tpu.memory_space<vmem>>
    %15 = tpu.memref_slice %arg10[%c1_i32_8] : memref<2x!tpu.dma_semaphore, #tpu.memory_space<semaphore_mem>> -> memref<1x!tpu.dma_semaphore, #tpu.memory_space<semaphore_mem>>
    %16 = tpu.memref_squeeze %15 : memref<1x!tpu.dma_semaphore, #tpu.memory_space<semaphore_mem>> -> memref<!tpu.dma_semaphore, #tpu.memory_space<semaphore_mem>>
    tpu.enqueue_dma source(%12 : memref<3x16x128xf32, #tpu.memory_space<any>>) target(%14 : memref<3x16x128xf32, #tpu.memory_space<vmem>>) target_semaphore(%16 : memref<!tpu.dma_semaphore, #tpu.memory_space<semaphore_mem>>)
    %c0 = arith.constant 0 : index
    %c0_14 = arith.constant 0 : index
    %17 = vector.load %arg4[%c0, %c0_14] : memref<8x128xf32, #tpu.memory_space<vmem>>, vector<1x128xf32>
    %c1 = arith.constant 1 : index
    %c0_15 = arith.constant 0 : index
    %18 = vector.load %arg4[%c1, %c0_15] : memref<8x128xf32, #tpu.memory_space<vmem>>, vector<1x128xf32>
    %c2 = arith.constant 2 : index
    %c0_16 = arith.constant 0 : index
    %19 = vector.load %arg4[%c2, %c0_16] : memref<8x128xf32, #tpu.memory_space<vmem>>, vector<1x128xf32>
    %c3 = arith.constant 3 : index
    %c0_17 = arith.constant 0 : index
    %20 = vector.load %arg4[%c3, %c0_17] : memref<8x128xf32, #tpu.memory_space<vmem>>, vector<1x128xf32>
    %c4 = arith.constant 4 : index
    %c0_18 = arith.constant 0 : index
    %21 = vector.load %arg4[%c4, %c0_18] : memref<8x128xf32, #tpu.memory_space<vmem>>, vector<1x128xf32>
    %c5 = arith.constant 5 : index
    %c0_19 = arith.constant 0 : index
    %22 = vector.load %arg4[%c5, %c0_19] : memref<8x128xf32, #tpu.memory_space<vmem>>, vector<1x128xf32>
    %c6 = arith.constant 6 : index
    %c0_20 = arith.constant 0 : index
    %23 = vector.load %arg4[%c6, %c0_20] : memref<8x128xf32, #tpu.memory_space<vmem>>, vector<1x128xf32>
    %c0_21 = arith.constant 0 : index
    %c0_22 = arith.constant 0 : index
    %24 = vector.load %arg5[%c0_21, %c0_22] : memref<128x384xbf16, #tpu.memory_space<vmem>>, vector<128x256xbf16>
    %c0_23 = arith.constant 0 : index
    %c256 = arith.constant 256 : index
    %25 = vector.load %arg5[%c0_23, %c256] : memref<128x384xbf16, #tpu.memory_space<vmem>>, vector<128x128xbf16>
    %26 = tpu.iota {dimensions = array<i32: 1>} : vector<1x128xi32>
    %c4_i32_24 = arith.constant 4 : i32
    %27 = vector.broadcast %c4_i32_24 : i32 to vector<1x128xi32>
    %28 = arith.cmpi slt, %26, %27 : vector<1x128xi32>
    %29 = arith.extui %28 : vector<1x128xi1> to vector<1x128xi32>
    %30 = arith.sitofp %29 : vector<1x128xi32> to vector<1x128xf32>
    %c0_25 = arith.constant 0 : index
    %c0_26 = arith.constant 0 : index
    %c0_27 = arith.constant 0 : index
    %c0_28 = arith.constant 0 : index
    %31 = vector.load %arg2[%c0_25, %c0_26, %c0_27, %c0_28] : memref<1x4x16x128xf32, #tpu.memory_space<vmem>>, vector<1x4x16x128xf32>
    %32 = vector.shape_cast %31 : vector<1x4x16x128xf32> to vector<4x16x128xf32>
    %33 = vector.shape_cast %32 : vector<4x16x128xf32> to vector<64x128xf32>
    %cst = arith.constant dense<0.000000e+00> : vector<64xf32>
    %34 = vector.multi_reduction <add>, %33, %cst [1] : vector<64x128xf32> to vector<64xf32>
    %35 = vector.shape_cast %34 : vector<64xf32> to vector<64x1xf32>
    %cst_29 = arith.constant 2.500000e-01 : f32
    %36 = vector.broadcast %cst_29 : f32 to vector<64x1xf32>
    %37 = arith.mulf %35, %36 : vector<64x1xf32>
    %38 = vector.broadcast %37 : vector<64x1xf32> to vector<64x128xf32>
    %39 = arith.subf %33, %38 : vector<64x128xf32>
    %40 = vector.broadcast %30 : vector<1x128xf32> to vector<64x128xf32>
    %41 = arith.mulf %39, %40 : vector<64x128xf32>
    %42 = arith.mulf %41, %41 : vector<64x128xf32>
    %cst_30 = arith.constant dense<0.000000e+00> : vector<64xf32>
    %43 = vector.multi_reduction <add>, %42, %cst_30 [1] : vector<64x128xf32> to vector<64xf32>
    %44 = vector.shape_cast %43 : vector<64xf32> to vector<64x1xf32>
    %cst_31 = arith.constant 2.500000e-01 : f32
    %45 = vector.broadcast %cst_31 : f32 to vector<64x1xf32>
    %46 = arith.mulf %44, %45 : vector<64x1xf32>
    %cst_32 = arith.constant 9.99999997E-7 : f32
    %47 = vector.broadcast %cst_32 : f32 to vector<64x1xf32>
    %48 = arith.addf %46, %47 : vector<64x1xf32>
    %49 = math.rsqrt %48 : vector<64x1xf32>
    %50 = vector.broadcast %49 : vector<64x1xf32> to vector<64x128xf32>
    %51 = arith.mulf %41, %50 : vector<64x128xf32>
    %52 = vector.broadcast %17 : vector<1x128xf32> to vector<64x128xf32>
    %53 = arith.mulf %51, %52 : vector<64x128xf32>
    %54 = vector.broadcast %18 : vector<1x128xf32> to vector<64x128xf32>
    %55 = arith.addf %53, %54 : vector<64x128xf32>
    %56 = arith.truncf %55 : vector<64x128xf32> to vector<64x128xbf16>
    %cst_33 = arith.constant dense<0.000000e+00> : vector<64x256xf32>
    %57 = tpu.matmul %56, %24, %cst_33 {dimension_numbers = #tpu.dot_dimension_numbers<[1], [0], [0], [1], [0, 0, 1, 1], [], []>} : vector<64x128xbf16>, vector<128x256xbf16>, vector<64x256xf32> -> vector<64x256xf32>
    %58 = vector.extract_strided_slice %57 {offsets = [0, 0], sizes = [64, 128], strides = [1, 1]} : vector<64x256xf32> to vector<64x128xf32>
    %59 = vector.broadcast %19 : vector<1x128xf32> to vector<64x128xf32>
    %60 = arith.addf %58, %59 : vector<64x128xf32>
    %61 = vector.shape_cast %60 : vector<64x128xf32> to vector<4x16x128xf32>
    %62 = vector.extract_strided_slice %57 {offsets = [0, 128], sizes = [64, 128], strides = [1, 1]} : vector<64x256xf32> to vector<64x128xf32>
    %63 = vector.broadcast %20 : vector<1x128xf32> to vector<64x128xf32>
    %64 = arith.addf %62, %63 : vector<64x128xf32>
    %c0_i32_34 = arith.constant 0 : i32
    %c0_i32_35 = arith.constant 0 : i32
    %c0_i32_36 = arith.constant 0 : i32
    %c0_i32_37 = arith.constant 0 : i32
    %65 = tpu.memref_slice %arg3[%arg0, %2, %c0_i32_36, %c0_i32_37] : memref<2x16x16x128xf32, #tpu.memory_space<any>> -> memref<1x3x16x128xf32, #tpu.memory_space<any>>
    %66 = tpu.memref_squeeze %65 : memref<1x3x16x128xf32, #tpu.memory_space<any>> -> memref<3x16x128xf32, #tpu.memory_space<any>>
    %c0_i32_38 = arith.constant 0 : i32
    %c0_i32_39 = arith.constant 0 : i32
    %c0_i32_40 = arith.constant 0 : i32
    %67 = tpu.memref_slice %arg9[%c0_i32_34, %c0_i32_38, %c0_i32_39, %c0_i32_40] : memref<2x3x16x128xf32, #tpu.memory_space<vmem>> -> memref<1x3x16x128xf32, #tpu.memory_space<vmem>>
    %68 = tpu.memref_squeeze %67 : memref<1x3x16x128xf32, #tpu.memory_space<vmem>> -> memref<3x16x128xf32, #tpu.memory_space<vmem>>
    %69 = tpu.memref_slice %arg10[%c0_i32_35] : memref<2x!tpu.dma_semaphore, #tpu.memory_space<semaphore_mem>> -> memref<1x!tpu.dma_semaphore, #tpu.memory_space<semaphore_mem>>
    %70 = tpu.memref_squeeze %69 : memref<1x!tpu.dma_semaphore, #tpu.memory_space<semaphore_mem>> -> memref<!tpu.dma_semaphore, #tpu.memory_space<semaphore_mem>>
    tpu.wait_dma2 semaphore(%70 : memref<!tpu.dma_semaphore, #tpu.memory_space<semaphore_mem>>) src(%66 : memref<3x16x128xf32, #tpu.memory_space<any>>) dst(%68 : memref<3x16x128xf32, #tpu.memory_space<vmem>>)
    %c1_i32_41 = arith.constant 1 : i32
    %c1_i32_42 = arith.constant 1 : i32
    %c0_i32_43 = arith.constant 0 : i32
    %c0_i32_44 = arith.constant 0 : i32
    %71 = tpu.memref_slice %arg3[%arg0, %4, %c0_i32_43, %c0_i32_44] : memref<2x16x16x128xf32, #tpu.memory_space<any>> -> memref<1x3x16x128xf32, #tpu.memory_space<any>>
    %72 = tpu.memref_squeeze %71 : memref<1x3x16x128xf32, #tpu.memory_space<any>> -> memref<3x16x128xf32, #tpu.memory_space<any>>
    %c0_i32_45 = arith.constant 0 : i32
    %c0_i32_46 = arith.constant 0 : i32
    %c0_i32_47 = arith.constant 0 : i32
    %73 = tpu.memref_slice %arg9[%c1_i32_41, %c0_i32_45, %c0_i32_46, %c0_i32_47] : memref<2x3x16x128xf32, #tpu.memory_space<vmem>> -> memref<1x3x16x128xf32, #tpu.memory_space<vmem>>
    %74 = tpu.memref_squeeze %73 : memref<1x3x16x128xf32, #tpu.memory_space<vmem>> -> memref<3x16x128xf32, #tpu.memory_space<vmem>>
    %75 = tpu.memref_slice %arg10[%c1_i32_42] : memref<2x!tpu.dma_semaphore, #tpu.memory_space<semaphore_mem>> -> memref<1x!tpu.dma_semaphore, #tpu.memory_space<semaphore_mem>>
    %76 = tpu.memref_squeeze %75 : memref<1x!tpu.dma_semaphore, #tpu.memory_space<semaphore_mem>> -> memref<!tpu.dma_semaphore, #tpu.memory_space<semaphore_mem>>
    tpu.wait_dma2 semaphore(%76 : memref<!tpu.dma_semaphore, #tpu.memory_space<semaphore_mem>>) src(%72 : memref<3x16x128xf32, #tpu.memory_space<any>>) dst(%74 : memref<3x16x128xf32, #tpu.memory_space<vmem>>)
    %77 = vector.extract_strided_slice %24 {offsets = [0, 0], sizes = [128, 128], strides = [1, 1]} : vector<128x256xbf16> to vector<128x128xbf16>
    %c0_48 = arith.constant 0 : index
    %c0_49 = arith.constant 0 : index
    %c0_50 = arith.constant 0 : index
    %c0_51 = arith.constant 0 : index
    %78 = vector.load %arg9[%c0_48, %c0_49, %c0_50, %c0_51] : memref<2x3x16x128xf32, #tpu.memory_space<vmem>>, vector<1x3x16x128xf32>
    %79 = vector.shape_cast %78 : vector<1x3x16x128xf32> to vector<3x16x128xf32>
    %80 = vector.shape_cast %79 : vector<3x16x128xf32> to vector<48x128xf32>
    %cst_52 = arith.constant dense<0.000000e+00> : vector<48xf32>
    %81 = vector.multi_reduction <add>, %80, %cst_52 [1] : vector<48x128xf32> to vector<48xf32>
    %82 = vector.shape_cast %81 : vector<48xf32> to vector<48x1xf32>
    %cst_53 = arith.constant 2.500000e-01 : f32
    %83 = vector.broadcast %cst_53 : f32 to vector<48x1xf32>
    %84 = arith.mulf %82, %83 : vector<48x1xf32>
    %85 = vector.broadcast %84 : vector<48x1xf32> to vector<48x128xf32>
    %86 = arith.subf %80, %85 : vector<48x128xf32>
    %87 = vector.broadcast %30 : vector<1x128xf32> to vector<48x128xf32>
    %88 = arith.mulf %86, %87 : vector<48x128xf32>
    %89 = arith.mulf %88, %88 : vector<48x128xf32>
    %cst_54 = arith.constant dense<0.000000e+00> : vector<48xf32>
    %90 = vector.multi_reduction <add>, %89, %cst_54 [1] : vector<48x128xf32> to vector<48xf32>
    %91 = vector.shape_cast %90 : vector<48xf32> to vector<48x1xf32>
    %cst_55 = arith.constant 2.500000e-01 : f32
    %92 = vector.broadcast %cst_55 : f32 to vector<48x1xf32>
    %93 = arith.mulf %91, %92 : vector<48x1xf32>
    %cst_56 = arith.constant 9.99999997E-7 : f32
    %94 = vector.broadcast %cst_56 : f32 to vector<48x1xf32>
    %95 = arith.addf %93, %94 : vector<48x1xf32>
    %96 = math.rsqrt %95 : vector<48x1xf32>
    %97 = vector.broadcast %96 : vector<48x1xf32> to vector<48x128xf32>
    %98 = arith.mulf %88, %97 : vector<48x128xf32>
    %99 = vector.broadcast %17 : vector<1x128xf32> to vector<48x128xf32>
    %100 = arith.mulf %98, %99 : vector<48x128xf32>
    %101 = vector.broadcast %18 : vector<1x128xf32> to vector<48x128xf32>
    %102 = arith.addf %100, %101 : vector<48x128xf32>
    %103 = arith.truncf %102 : vector<48x128xf32> to vector<48x128xbf16>
    %cst_57 = arith.constant dense<0.000000e+00> : vector<48x128xf32>
    %104 = tpu.matmul %103, %77, %cst_57 {dimension_numbers = #tpu.dot_dimension_numbers<[1], [0], [0], [1], [0, 0, 1, 1], [], []>} : vector<48x128xbf16>, vector<128x128xbf16>, vector<48x128xf32> -> vector<48x128xf32>
    %105 = vector.broadcast %19 : vector<1x128xf32> to vector<48x128xf32>
    %106 = arith.addf %104, %105 : vector<48x128xf32>
    %107 = vector.shape_cast %106 : vector<48x128xf32> to vector<3x16x128xf32>
    %c1_58 = arith.constant 1 : index
    %c0_59 = arith.constant 0 : index
    %c0_60 = arith.constant 0 : index
    %c0_61 = arith.constant 0 : index
    %108 = vector.load %arg9[%c1_58, %c0_59, %c0_60, %c0_61] : memref<2x3x16x128xf32, #tpu.memory_space<vmem>>, vector<1x3x16x128xf32>
    %109 = vector.shape_cast %108 : vector<1x3x16x128xf32> to vector<3x16x128xf32>
    %110 = vector.shape_cast %109 : vector<3x16x128xf32> to vector<48x128xf32>
    %cst_62 = arith.constant dense<0.000000e+00> : vector<48xf32>
    %111 = vector.multi_reduction <add>, %110, %cst_62 [1] : vector<48x128xf32> to vector<48xf32>
    %112 = vector.shape_cast %111 : vector<48xf32> to vector<48x1xf32>
    %cst_63 = arith.constant 2.500000e-01 : f32
    %113 = vector.broadcast %cst_63 : f32 to vector<48x1xf32>
    %114 = arith.mulf %112, %113 : vector<48x1xf32>
    %115 = vector.broadcast %114 : vector<48x1xf32> to vector<48x128xf32>
    %116 = arith.subf %110, %115 : vector<48x128xf32>
    %117 = vector.broadcast %30 : vector<1x128xf32> to vector<48x128xf32>
    %118 = arith.mulf %116, %117 : vector<48x128xf32>
    %119 = arith.mulf %118, %118 : vector<48x128xf32>
    %cst_64 = arith.constant dense<0.000000e+00> : vector<48xf32>
    %120 = vector.multi_reduction <add>, %119, %cst_64 [1] : vector<48x128xf32> to vector<48xf32>
    %121 = vector.shape_cast %120 : vector<48xf32> to vector<48x1xf32>
    %cst_65 = arith.constant 2.500000e-01 : f32
    %122 = vector.broadcast %cst_65 : f32 to vector<48x1xf32>
    %123 = arith.mulf %121, %122 : vector<48x1xf32>
    %cst_66 = arith.constant 9.99999997E-7 : f32
    %124 = vector.broadcast %cst_66 : f32 to vector<48x1xf32>
    %125 = arith.addf %123, %124 : vector<48x1xf32>
    %126 = math.rsqrt %125 : vector<48x1xf32>
    %127 = vector.broadcast %126 : vector<48x1xf32> to vector<48x128xf32>
    %128 = arith.mulf %118, %127 : vector<48x128xf32>
    %129 = vector.broadcast %17 : vector<1x128xf32> to vector<48x128xf32>
    %130 = arith.mulf %128, %129 : vector<48x128xf32>
    %131 = vector.broadcast %18 : vector<1x128xf32> to vector<48x128xf32>
    %132 = arith.addf %130, %131 : vector<48x128xf32>
    %133 = arith.truncf %132 : vector<48x128xf32> to vector<48x128xbf16>
    %cst_67 = arith.constant dense<0.000000e+00> : vector<48x128xf32>
    %134 = tpu.matmul %133, %77, %cst_67 {dimension_numbers = #tpu.dot_dimension_numbers<[1], [0], [0], [1], [0, 0, 1, 1], [], []>} : vector<48x128xbf16>, vector<128x128xbf16>, vector<48x128xf32> -> vector<48x128xf32>
    %135 = vector.broadcast %19 : vector<1x128xf32> to vector<48x128xf32>
    %136 = arith.addf %134, %135 : vector<48x128xf32>
    %137 = vector.shape_cast %136 : vector<48x128xf32> to vector<3x16x128xf32>
    %cst_68 = arith.constant 0.000000e+00 : f32
    %138 = vector.broadcast %cst_68 : f32 to vector<10x3x128xf32>
    %c0_69 = arith.constant 0 : index
    %c0_70 = arith.constant 0 : index
    %c0_71 = arith.constant 0 : index
    %139 = vector.load %arg8[%c0_69, %c0_70, %c0_71] : memref<10x22x128xf32, #tpu.memory_space<vmem>>, vector<10x3x128xf32>
    tpu.vector_store %arg8[%c0_69, %c0_70, %c0_71], %138 {strides = array<i32>} : memref<10x22x128xf32, #tpu.memory_space<vmem>>, vector<10x3x128xf32>,
    %c0_72 = arith.constant 0 : index
    %c19 = arith.constant 19 : index
    %c0_73 = arith.constant 0 : index
    %140 = vector.load %arg8[%c0_72, %c19, %c0_73] : memref<10x22x128xf32, #tpu.memory_space<vmem>>, vector<10x3x128xf32>
    tpu.vector_store %arg8[%c0_72, %c19, %c0_73], %138 {strides = array<i32>} : memref<10x22x128xf32, #tpu.memory_space<vmem>>, vector<10x3x128xf32>,
    %c3_74 = arith.constant 3 : index
    %c3_75 = arith.constant 3 : index
    %c0_76 = arith.constant 0 : index
    %141 = vector.load %arg8[%c3_74, %c3_75, %c0_76] : memref<10x22x128xf32, #tpu.memory_space<vmem>>, vector<4x16x128xf32>
    tpu.vector_store %arg8[%c3_74, %c3_75, %c0_76], %61 {strides = array<i32>} : memref<10x22x128xf32, #tpu.memory_space<vmem>>, vector<4x16x128xf32>,
    %c0_77 = arith.constant 0 : index
    %c3_78 = arith.constant 3 : index
    %c0_79 = arith.constant 0 : index
    %142 = vector.load %arg8[%c0_77, %c3_78, %c0_79] : memref<10x22x128xf32, #tpu.memory_space<vmem>>, vector<3x16x128xf32>
    tpu.vector_store %arg8[%c0_77, %c3_78, %c0_79], %107 {strides = array<i32>} : memref<10x22x128xf32, #tpu.memory_space<vmem>>, vector<3x16x128xf32>,
    %c7 = arith.constant 7 : index
    %c3_80 = arith.constant 3 : index
    %c0_81 = arith.constant 0 : index
    %143 = vector.load %arg8[%c7, %c3_80, %c0_81] : memref<10x22x128xf32, #tpu.memory_space<vmem>>, vector<3x16x128xf32>
    tpu.vector_store %arg8[%c7, %c3_80, %c0_81], %137 {strides = array<i32>} : memref<10x22x128xf32, #tpu.memory_space<vmem>>, vector<3x16x128xf32>,
    %cst_82 = arith.constant 0.000000e+00 : f32
    %144 = vector.broadcast %cst_82 : f32 to vector<3x22x128xf32>
    %c0_i32_83 = arith.constant 0 : i32
    %145 = arith.cmpi eq, %arg1, %c0_i32_83 : i32
    %146 = arith.extui %145 : i1 to i32
    %c0_i32_84 = arith.constant 0 : i32
    %147 = arith.cmpi ne, %146, %c0_i32_84 : i32
    scf.if %147 {
      %c0_297 = arith.constant 0 : index
      %c0_298 = arith.constant 0 : index
      %c0_299 = arith.constant 0 : index
      %460 = vector.load %arg8[%c0_297, %c0_298, %c0_299] : memref<10x22x128xf32, #tpu.memory_space<vmem>>, vector<3x22x128xf32>
      tpu.vector_store %arg8[%c0_297, %c0_298, %c0_299], %144 {strides = array<i32>} : memref<10x22x128xf32, #tpu.memory_space<vmem>>, vector<3x22x128xf32>,
    } else {
    }
    %c3_i32_85 = arith.constant 3 : i32
    %148 = arith.cmpi eq, %arg1, %c3_i32_85 : i32
    %149 = arith.extui %148 : i1 to i32
    %c0_i32_86 = arith.constant 0 : i32
    %150 = arith.cmpi ne, %149, %c0_i32_86 : i32
    scf.if %150 {
      %c7_297 = arith.constant 7 : index
      %c0_298 = arith.constant 0 : index
      %c0_299 = arith.constant 0 : index
      %460 = vector.load %arg8[%c7_297, %c0_298, %c0_299] : memref<10x22x128xf32, #tpu.memory_space<vmem>>, vector<3x22x128xf32>
      tpu.vector_store %arg8[%c7_297, %c0_298, %c0_299], %144 {strides = array<i32>} : memref<10x22x128xf32, #tpu.memory_space<vmem>>, vector<3x22x128xf32>,
    } else {
    }
    %c0_87 = arith.constant 0 : index
    %c0_88 = arith.constant 0 : index
    %c0_89 = arith.constant 0 : index
    %151 = vector.load %arg8[%c0_87, %c0_88, %c0_89] : memref<10x22x128xf32, #tpu.memory_space<vmem>>, vector<4x16x128xf32>
    %c0_90 = arith.constant 0 : index
    %c0_91 = arith.constant 0 : index
    %152 = vector.load %arg6[%c0_90, %c0_91] : memref<49x128xf32, #tpu.memory_space<vmem>>, vector<1x128xf32>
    %153 = vector.shape_cast %152 : vector<1x128xf32> to vector<1x1x128xf32>
    %154 = vector.broadcast %153 : vector<1x1x128xf32> to vector<4x16x128xf32>
    %155 = arith.mulf %151, %154 : vector<4x16x128xf32>
    %c0_92 = arith.constant 0 : index
    %c1_93 = arith.constant 1 : index
    %c0_94 = arith.constant 0 : index
    %156 = vector.load %arg8[%c0_92, %c1_93, %c0_94] : memref<10x22x128xf32, #tpu.memory_space<vmem>>, vector<4x16x128xf32>
    %c1_95 = arith.constant 1 : index
    %c0_96 = arith.constant 0 : index
    %157 = vector.load %arg6[%c1_95, %c0_96] : memref<49x128xf32, #tpu.memory_space<vmem>>, vector<1x128xf32>
    %158 = vector.shape_cast %157 : vector<1x128xf32> to vector<1x1x128xf32>
    %159 = vector.broadcast %158 : vector<1x1x128xf32> to vector<4x16x128xf32>
    %160 = arith.mulf %156, %159 : vector<4x16x128xf32>
    %161 = arith.addf %155, %160 : vector<4x16x128xf32>
    %c0_97 = arith.constant 0 : index
    %c2_98 = arith.constant 2 : index
    %c0_99 = arith.constant 0 : index
    %162 = vector.load %arg8[%c0_97, %c2_98, %c0_99] : memref<10x22x128xf32, #tpu.memory_space<vmem>>, vector<4x16x128xf32>
    %c2_100 = arith.constant 2 : index
    %c0_101 = arith.constant 0 : index
    %163 = vector.load %arg6[%c2_100, %c0_101] : memref<49x128xf32, #tpu.memory_space<vmem>>, vector<1x128xf32>
    %164 = vector.shape_cast %163 : vector<1x128xf32> to vector<1x1x128xf32>
    %165 = vector.broadcast %164 : vector<1x1x128xf32> to vector<4x16x128xf32>
    %166 = arith.mulf %162, %165 : vector<4x16x128xf32>
    %167 = arith.addf %161, %166 : vector<4x16x128xf32>
    %c0_102 = arith.constant 0 : index
    %c3_103 = arith.constant 3 : index
    %c0_104 = arith.constant 0 : index
    %168 = vector.load %arg8[%c0_102, %c3_103, %c0_104] : memref<10x22x128xf32, #tpu.memory_space<vmem>>, vector<4x16x128xf32>
    %c3_105 = arith.constant 3 : index
    %c0_106 = arith.constant 0 : index
    %169 = vector.load %arg6[%c3_105, %c0_106] : memref<49x128xf32, #tpu.memory_space<vmem>>, vector<1x128xf32>
    %170 = vector.shape_cast %169 : vector<1x128xf32> to vector<1x1x128xf32>
    %171 = vector.broadcast %170 : vector<1x1x128xf32> to vector<4x16x128xf32>
    %172 = arith.mulf %168, %171 : vector<4x16x128xf32>
    %173 = arith.addf %167, %172 : vector<4x16x128xf32>
    %c0_107 = arith.constant 0 : index
    %c4_108 = arith.constant 4 : index
    %c0_109 = arith.constant 0 : index
    %174 = vector.load %arg8[%c0_107, %c4_108, %c0_109] : memref<10x22x128xf32, #tpu.memory_space<vmem>>, vector<4x16x128xf32>
    %c4_110 = arith.constant 4 : index
    %c0_111 = arith.constant 0 : index
    %175 = vector.load %arg6[%c4_110, %c0_111] : memref<49x128xf32, #tpu.memory_space<vmem>>, vector<1x128xf32>
    %176 = vector.shape_cast %175 : vector<1x128xf32> to vector<1x1x128xf32>
    %177 = vector.broadcast %176 : vector<1x1x128xf32> to vector<4x16x128xf32>
    %178 = arith.mulf %174, %177 : vector<4x16x128xf32>
    %179 = arith.addf %173, %178 : vector<4x16x128xf32>
    %c0_112 = arith.constant 0 : index
    %c5_113 = arith.constant 5 : index
    %c0_114 = arith.constant 0 : index
    %180 = vector.load %arg8[%c0_112, %c5_113, %c0_114] : memref<10x22x128xf32, #tpu.memory_space<vmem>>, vector<4x16x128xf32>
    %c5_115 = arith.constant 5 : index
    %c0_116 = arith.constant 0 : index
    %181 = vector.load %arg6[%c5_115, %c0_116] : memref<49x128xf32, #tpu.memory_space<vmem>>, vector<1x128xf32>
    %182 = vector.shape_cast %181 : vector<1x128xf32> to vector<1x1x128xf32>
    %183 = vector.broadcast %182 : vector<1x1x128xf32> to vector<4x16x128xf32>
    %184 = arith.mulf %180, %183 : vector<4x16x128xf32>
    %185 = arith.addf %179, %184 : vector<4x16x128xf32>
    %c0_117 = arith.constant 0 : index
    %c6_118 = arith.constant 6 : index
    %c0_119 = arith.constant 0 : index
    %186 = vector.load %arg8[%c0_117, %c6_118, %c0_119] : memref<10x22x128xf32, #tpu.memory_space<vmem>>, vector<4x16x128xf32>
    %c6_120 = arith.constant 6 : index
    %c0_121 = arith.constant 0 : index
    %187 = vector.load %arg6[%c6_120, %c0_121] : memref<49x128xf32, #tpu.memory_space<vmem>>, vector<1x128xf32>
    %188 = vector.shape_cast %187 : vector<1x128xf32> to vector<1x1x128xf32>
    %189 = vector.broadcast %188 : vector<1x1x128xf32> to vector<4x16x128xf32>
    %190 = arith.mulf %186, %189 : vector<4x16x128xf32>
    %191 = arith.addf %185, %190 : vector<4x16x128xf32>
    %c1_122 = arith.constant 1 : index
    %c0_123 = arith.constant 0 : index
    %c0_124 = arith.constant 0 : index
    %192 = vector.load %arg8[%c1_122, %c0_123, %c0_124] : memref<10x22x128xf32, #tpu.memory_space<vmem>>, vector<4x16x128xf32>
    %c7_125 = arith.constant 7 : index
    %c0_126 = arith.constant 0 : index
    %193 = vector.load %arg6[%c7_125, %c0_126] : memref<49x128xf32, #tpu.memory_space<vmem>>, vector<1x128xf32>
    %194 = vector.shape_cast %193 : vector<1x128xf32> to vector<1x1x128xf32>
    %195 = vector.broadcast %194 : vector<1x1x128xf32> to vector<4x16x128xf32>
    %196 = arith.mulf %192, %195 : vector<4x16x128xf32>
    %197 = arith.addf %191, %196 : vector<4x16x128xf32>
    %c1_127 = arith.constant 1 : index
    %c1_128 = arith.constant 1 : index
    %c0_129 = arith.constant 0 : index
    %198 = vector.load %arg8[%c1_127, %c1_128, %c0_129] : memref<10x22x128xf32, #tpu.memory_space<vmem>>, vector<4x16x128xf32>
    %c8 = arith.constant 8 : index
    %c0_130 = arith.constant 0 : index
    %199 = vector.load %arg6[%c8, %c0_130] : memref<49x128xf32, #tpu.memory_space<vmem>>, vector<1x128xf32>
    %200 = vector.shape_cast %199 : vector<1x128xf32> to vector<1x1x128xf32>
    %201 = vector.broadcast %200 : vector<1x1x128xf32> to vector<4x16x128xf32>
    %202 = arith.mulf %198, %201 : vector<4x16x128xf32>
    %203 = arith.addf %197, %202 : vector<4x16x128xf32>
    %c1_131 = arith.constant 1 : index
    %c2_132 = arith.constant 2 : index
    %c0_133 = arith.constant 0 : index
    %204 = vector.load %arg8[%c1_131, %c2_132, %c0_133] : memref<10x22x128xf32, #tpu.memory_space<vmem>>, vector<4x16x128xf32>
    %c9 = arith.constant 9 : index
    %c0_134 = arith.constant 0 : index
    %205 = vector.load %arg6[%c9, %c0_134] : memref<49x128xf32, #tpu.memory_space<vmem>>, vector<1x128xf32>
    %206 = vector.shape_cast %205 : vector<1x128xf32> to vector<1x1x128xf32>
    %207 = vector.broadcast %206 : vector<1x1x128xf32> to vector<4x16x128xf32>
    %208 = arith.mulf %204, %207 : vector<4x16x128xf32>
    %209 = arith.addf %203, %208 : vector<4x16x128xf32>
    %c1_135 = arith.constant 1 : index
    %c3_136 = arith.constant 3 : index
    %c0_137 = arith.constant 0 : index
    %210 = vector.load %arg8[%c1_135, %c3_136, %c0_137] : memref<10x22x128xf32, #tpu.memory_space<vmem>>, vector<4x16x128xf32>
    %c10 = arith.constant 10 : index
    %c0_138 = arith.constant 0 : index
    %211 = vector.load %arg6[%c10, %c0_138] : memref<49x128xf32, #tpu.memory_space<vmem>>, vector<1x128xf32>
    %212 = vector.shape_cast %211 : vector<1x128xf32> to vector<1x1x128xf32>
    %213 = vector.broadcast %212 : vector<1x1x128xf32> to vector<4x16x128xf32>
    %214 = arith.mulf %210, %213 : vector<4x16x128xf32>
    %215 = arith.addf %209, %214 : vector<4x16x128xf32>
    %c1_139 = arith.constant 1 : index
    %c4_140 = arith.constant 4 : index
    %c0_141 = arith.constant 0 : index
    %216 = vector.load %arg8[%c1_139, %c4_140, %c0_141] : memref<10x22x128xf32, #tpu.memory_space<vmem>>, vector<4x16x128xf32>
    %c11 = arith.constant 11 : index
    %c0_142 = arith.constant 0 : index
    %217 = vector.load %arg6[%c11, %c0_142] : memref<49x128xf32, #tpu.memory_space<vmem>>, vector<1x128xf32>
    %218 = vector.shape_cast %217 : vector<1x128xf32> to vector<1x1x128xf32>
    %219 = vector.broadcast %218 : vector<1x1x128xf32> to vector<4x16x128xf32>
    %220 = arith.mulf %216, %219 : vector<4x16x128xf32>
    %221 = arith.addf %215, %220 : vector<4x16x128xf32>
    %c1_143 = arith.constant 1 : index
    %c5_144 = arith.constant 5 : index
    %c0_145 = arith.constant 0 : index
    %222 = vector.load %arg8[%c1_143, %c5_144, %c0_145] : memref<10x22x128xf32, #tpu.memory_space<vmem>>, vector<4x16x128xf32>
    %c12 = arith.constant 12 : index
    %c0_146 = arith.constant 0 : index
    %223 = vector.load %arg6[%c12, %c0_146] : memref<49x128xf32, #tpu.memory_space<vmem>>, vector<1x128xf32>
    %224 = vector.shape_cast %223 : vector<1x128xf32> to vector<1x1x128xf32>
    %225 = vector.broadcast %224 : vector<1x1x128xf32> to vector<4x16x128xf32>
    %226 = arith.mulf %222, %225 : vector<4x16x128xf32>
    %227 = arith.addf %221, %226 : vector<4x16x128xf32>
    %c1_147 = arith.constant 1 : index
    %c6_148 = arith.constant 6 : index
    %c0_149 = arith.constant 0 : index
    %228 = vector.load %arg8[%c1_147, %c6_148, %c0_149] : memref<10x22x128xf32, #tpu.memory_space<vmem>>, vector<4x16x128xf32>
    %c13 = arith.constant 13 : index
    %c0_150 = arith.constant 0 : index
    %229 = vector.load %arg6[%c13, %c0_150] : memref<49x128xf32, #tpu.memory_space<vmem>>, vector<1x128xf32>
    %230 = vector.shape_cast %229 : vector<1x128xf32> to vector<1x1x128xf32>
    %231 = vector.broadcast %230 : vector<1x1x128xf32> to vector<4x16x128xf32>
    %232 = arith.mulf %228, %231 : vector<4x16x128xf32>
    %233 = arith.addf %227, %232 : vector<4x16x128xf32>
    %c2_151 = arith.constant 2 : index
    %c0_152 = arith.constant 0 : index
    %c0_153 = arith.constant 0 : index
    %234 = vector.load %arg8[%c2_151, %c0_152, %c0_153] : memref<10x22x128xf32, #tpu.memory_space<vmem>>, vector<4x16x128xf32>
    %c14 = arith.constant 14 : index
    %c0_154 = arith.constant 0 : index
    %235 = vector.load %arg6[%c14, %c0_154] : memref<49x128xf32, #tpu.memory_space<vmem>>, vector<1x128xf32>
    %236 = vector.shape_cast %235 : vector<1x128xf32> to vector<1x1x128xf32>
    %237 = vector.broadcast %236 : vector<1x1x128xf32> to vector<4x16x128xf32>
    %238 = arith.mulf %234, %237 : vector<4x16x128xf32>
    %239 = arith.addf %233, %238 : vector<4x16x128xf32>
    %c2_155 = arith.constant 2 : index
    %c1_156 = arith.constant 1 : index
    %c0_157 = arith.constant 0 : index
    %240 = vector.load %arg8[%c2_155, %c1_156, %c0_157] : memref<10x22x128xf32, #tpu.memory_space<vmem>>, vector<4x16x128xf32>
    %c15 = arith.constant 15 : index
    %c0_158 = arith.constant 0 : index
    %241 = vector.load %arg6[%c15, %c0_158] : memref<49x128xf32, #tpu.memory_space<vmem>>, vector<1x128xf32>
    %242 = vector.shape_cast %241 : vector<1x128xf32> to vector<1x1x128xf32>
    %243 = vector.broadcast %242 : vector<1x1x128xf32> to vector<4x16x128xf32>
    %244 = arith.mulf %240, %243 : vector<4x16x128xf32>
    %245 = arith.addf %239, %244 : vector<4x16x128xf32>
    %c2_159 = arith.constant 2 : index
    %c2_160 = arith.constant 2 : index
    %c0_161 = arith.constant 0 : index
    %246 = vector.load %arg8[%c2_159, %c2_160, %c0_161] : memref<10x22x128xf32, #tpu.memory_space<vmem>>, vector<4x16x128xf32>
    %c16 = arith.constant 16 : index
    %c0_162 = arith.constant 0 : index
    %247 = vector.load %arg6[%c16, %c0_162] : memref<49x128xf32, #tpu.memory_space<vmem>>, vector<1x128xf32>
    %248 = vector.shape_cast %247 : vector<1x128xf32> to vector<1x1x128xf32>
    %249 = vector.broadcast %248 : vector<1x1x128xf32> to vector<4x16x128xf32>
    %250 = arith.mulf %246, %249 : vector<4x16x128xf32>
    %251 = arith.addf %245, %250 : vector<4x16x128xf32>
    %c2_163 = arith.constant 2 : index
    %c3_164 = arith.constant 3 : index
    %c0_165 = arith.constant 0 : index
    %252 = vector.load %arg8[%c2_163, %c3_164, %c0_165] : memref<10x22x128xf32, #tpu.memory_space<vmem>>, vector<4x16x128xf32>
    %c17 = arith.constant 17 : index
    %c0_166 = arith.constant 0 : index
    %253 = vector.load %arg6[%c17, %c0_166] : memref<49x128xf32, #tpu.memory_space<vmem>>, vector<1x128xf32>
    %254 = vector.shape_cast %253 : vector<1x128xf32> to vector<1x1x128xf32>
    %255 = vector.broadcast %254 : vector<1x1x128xf32> to vector<4x16x128xf32>
    %256 = arith.mulf %252, %255 : vector<4x16x128xf32>
    %257 = arith.addf %251, %256 : vector<4x16x128xf32>
    %c2_167 = arith.constant 2 : index
    %c4_168 = arith.constant 4 : index
    %c0_169 = arith.constant 0 : index
    %258 = vector.load %arg8[%c2_167, %c4_168, %c0_169] : memref<10x22x128xf32, #tpu.memory_space<vmem>>, vector<4x16x128xf32>
    %c18 = arith.constant 18 : index
    %c0_170 = arith.constant 0 : index
    %259 = vector.load %arg6[%c18, %c0_170] : memref<49x128xf32, #tpu.memory_space<vmem>>, vector<1x128xf32>
    %260 = vector.shape_cast %259 : vector<1x128xf32> to vector<1x1x128xf32>
    %261 = vector.broadcast %260 : vector<1x1x128xf32> to vector<4x16x128xf32>
    %262 = arith.mulf %258, %261 : vector<4x16x128xf32>
    %263 = arith.addf %257, %262 : vector<4x16x128xf32>
    %c2_171 = arith.constant 2 : index
    %c5_172 = arith.constant 5 : index
    %c0_173 = arith.constant 0 : index
    %264 = vector.load %arg8[%c2_171, %c5_172, %c0_173] : memref<10x22x128xf32, #tpu.memory_space<vmem>>, vector<4x16x128xf32>
    %c19_174 = arith.constant 19 : index
    %c0_175 = arith.constant 0 : index
    %265 = vector.load %arg6[%c19_174, %c0_175] : memref<49x128xf32, #tpu.memory_space<vmem>>, vector<1x128xf32>
    %266 = vector.shape_cast %265 : vector<1x128xf32> to vector<1x1x128xf32>
    %267 = vector.broadcast %266 : vector<1x1x128xf32> to vector<4x16x128xf32>
    %268 = arith.mulf %264, %267 : vector<4x16x128xf32>
    %269 = arith.addf %263, %268 : vector<4x16x128xf32>
    %c2_176 = arith.constant 2 : index
    %c6_177 = arith.constant 6 : index
    %c0_178 = arith.constant 0 : index
    %270 = vector.load %arg8[%c2_176, %c6_177, %c0_178] : memref<10x22x128xf32, #tpu.memory_space<vmem>>, vector<4x16x128xf32>
    %c20 = arith.constant 20 : index
    %c0_179 = arith.constant 0 : index
    %271 = vector.load %arg6[%c20, %c0_179] : memref<49x128xf32, #tpu.memory_space<vmem>>, vector<1x128xf32>
    %272 = vector.shape_cast %271 : vector<1x128xf32> to vector<1x1x128xf32>
    %273 = vector.broadcast %272 : vector<1x1x128xf32> to vector<4x16x128xf32>
    %274 = arith.mulf %270, %273 : vector<4x16x128xf32>
    %275 = arith.addf %269, %274 : vector<4x16x128xf32>
    %c3_180 = arith.constant 3 : index
    %c0_181 = arith.constant 0 : index
    %c0_182 = arith.constant 0 : index
    %276 = vector.load %arg8[%c3_180, %c0_181, %c0_182] : memref<10x22x128xf32, #tpu.memory_space<vmem>>, vector<4x16x128xf32>
    %c21 = arith.constant 21 : index
    %c0_183 = arith.constant 0 : index
    %277 = vector.load %arg6[%c21, %c0_183] : memref<49x128xf32, #tpu.memory_space<vmem>>, vector<1x128xf32>
    %278 = vector.shape_cast %277 : vector<1x128xf32> to vector<1x1x128xf32>
    %279 = vector.broadcast %278 : vector<1x1x128xf32> to vector<4x16x128xf32>
    %280 = arith.mulf %276, %279 : vector<4x16x128xf32>
    %281 = arith.addf %275, %280 : vector<4x16x128xf32>
    %c3_184 = arith.constant 3 : index
    %c1_185 = arith.constant 1 : index
    %c0_186 = arith.constant 0 : index
    %282 = vector.load %arg8[%c3_184, %c1_185, %c0_186] : memref<10x22x128xf32, #tpu.memory_space<vmem>>, vector<4x16x128xf32>
    %c22 = arith.constant 22 : index
    %c0_187 = arith.constant 0 : index
    %283 = vector.load %arg6[%c22, %c0_187] : memref<49x128xf32, #tpu.memory_space<vmem>>, vector<1x128xf32>
    %284 = vector.shape_cast %283 : vector<1x128xf32> to vector<1x1x128xf32>
    %285 = vector.broadcast %284 : vector<1x1x128xf32> to vector<4x16x128xf32>
    %286 = arith.mulf %282, %285 : vector<4x16x128xf32>
    %287 = arith.addf %281, %286 : vector<4x16x128xf32>
    %c3_188 = arith.constant 3 : index
    %c2_189 = arith.constant 2 : index
    %c0_190 = arith.constant 0 : index
    %288 = vector.load %arg8[%c3_188, %c2_189, %c0_190] : memref<10x22x128xf32, #tpu.memory_space<vmem>>, vector<4x16x128xf32>
    %c23 = arith.constant 23 : index
    %c0_191 = arith.constant 0 : index
    %289 = vector.load %arg6[%c23, %c0_191] : memref<49x128xf32, #tpu.memory_space<vmem>>, vector<1x128xf32>
    %290 = vector.shape_cast %289 : vector<1x128xf32> to vector<1x1x128xf32>
    %291 = vector.broadcast %290 : vector<1x1x128xf32> to vector<4x16x128xf32>
    %292 = arith.mulf %288, %291 : vector<4x16x128xf32>
    %293 = arith.addf %287, %292 : vector<4x16x128xf32>
    %c3_192 = arith.constant 3 : index
    %c3_193 = arith.constant 3 : index
    %c0_194 = arith.constant 0 : index
    %294 = vector.load %arg8[%c3_192, %c3_193, %c0_194] : memref<10x22x128xf32, #tpu.memory_space<vmem>>, vector<4x16x128xf32>
    %c24 = arith.constant 24 : index
    %c0_195 = arith.constant 0 : index
    %295 = vector.load %arg6[%c24, %c0_195] : memref<49x128xf32, #tpu.memory_space<vmem>>, vector<1x128xf32>
    %296 = vector.shape_cast %295 : vector<1x128xf32> to vector<1x1x128xf32>
    %297 = vector.broadcast %296 : vector<1x1x128xf32> to vector<4x16x128xf32>
    %298 = arith.mulf %294, %297 : vector<4x16x128xf32>
    %299 = arith.addf %293, %298 : vector<4x16x128xf32>
    %c3_196 = arith.constant 3 : index
    %c4_197 = arith.constant 4 : index
    %c0_198 = arith.constant 0 : index
    %300 = vector.load %arg8[%c3_196, %c4_197, %c0_198] : memref<10x22x128xf32, #tpu.memory_space<vmem>>, vector<4x16x128xf32>
    %c25 = arith.constant 25 : index
    %c0_199 = arith.constant 0 : index
    %301 = vector.load %arg6[%c25, %c0_199] : memref<49x128xf32, #tpu.memory_space<vmem>>, vector<1x128xf32>
    %302 = vector.shape_cast %301 : vector<1x128xf32> to vector<1x1x128xf32>
    %303 = vector.broadcast %302 : vector<1x1x128xf32> to vector<4x16x128xf32>
    %304 = arith.mulf %300, %303 : vector<4x16x128xf32>
    %305 = arith.addf %299, %304 : vector<4x16x128xf32>
    %c3_200 = arith.constant 3 : index
    %c5_201 = arith.constant 5 : index
    %c0_202 = arith.constant 0 : index
    %306 = vector.load %arg8[%c3_200, %c5_201, %c0_202] : memref<10x22x128xf32, #tpu.memory_space<vmem>>, vector<4x16x128xf32>
    %c26 = arith.constant 26 : index
    %c0_203 = arith.constant 0 : index
    %307 = vector.load %arg6[%c26, %c0_203] : memref<49x128xf32, #tpu.memory_space<vmem>>, vector<1x128xf32>
    %308 = vector.shape_cast %307 : vector<1x128xf32> to vector<1x1x128xf32>
    %309 = vector.broadcast %308 : vector<1x1x128xf32> to vector<4x16x128xf32>
    %310 = arith.mulf %306, %309 : vector<4x16x128xf32>
    %311 = arith.addf %305, %310 : vector<4x16x128xf32>
    %c3_204 = arith.constant 3 : index
    %c6_205 = arith.constant 6 : index
    %c0_206 = arith.constant 0 : index
    %312 = vector.load %arg8[%c3_204, %c6_205, %c0_206] : memref<10x22x128xf32, #tpu.memory_space<vmem>>, vector<4x16x128xf32>
    %c27 = arith.constant 27 : index
    %c0_207 = arith.constant 0 : index
    %313 = vector.load %arg6[%c27, %c0_207] : memref<49x128xf32, #tpu.memory_space<vmem>>, vector<1x128xf32>
    %314 = vector.shape_cast %313 : vector<1x128xf32> to vector<1x1x128xf32>
    %315 = vector.broadcast %314 : vector<1x1x128xf32> to vector<4x16x128xf32>
    %316 = arith.mulf %312, %315 : vector<4x16x128xf32>
    %317 = arith.addf %311, %316 : vector<4x16x128xf32>
    %c4_208 = arith.constant 4 : index
    %c0_209 = arith.constant 0 : index
    %c0_210 = arith.constant 0 : index
    %318 = vector.load %arg8[%c4_208, %c0_209, %c0_210] : memref<10x22x128xf32, #tpu.memory_space<vmem>>, vector<4x16x128xf32>
    %c28 = arith.constant 28 : index
    %c0_211 = arith.constant 0 : index
    %319 = vector.load %arg6[%c28, %c0_211] : memref<49x128xf32, #tpu.memory_space<vmem>>, vector<1x128xf32>
    %320 = vector.shape_cast %319 : vector<1x128xf32> to vector<1x1x128xf32>
    %321 = vector.broadcast %320 : vector<1x1x128xf32> to vector<4x16x128xf32>
    %322 = arith.mulf %318, %321 : vector<4x16x128xf32>
    %323 = arith.addf %317, %322 : vector<4x16x128xf32>
    %c4_212 = arith.constant 4 : index
    %c1_213 = arith.constant 1 : index
    %c0_214 = arith.constant 0 : index
    %324 = vector.load %arg8[%c4_212, %c1_213, %c0_214] : memref<10x22x128xf32, #tpu.memory_space<vmem>>, vector<4x16x128xf32>
    %c29 = arith.constant 29 : index
    %c0_215 = arith.constant 0 : index
    %325 = vector.load %arg6[%c29, %c0_215] : memref<49x128xf32, #tpu.memory_space<vmem>>, vector<1x128xf32>
    %326 = vector.shape_cast %325 : vector<1x128xf32> to vector<1x1x128xf32>
    %327 = vector.broadcast %326 : vector<1x1x128xf32> to vector<4x16x128xf32>
    %328 = arith.mulf %324, %327 : vector<4x16x128xf32>
    %329 = arith.addf %323, %328 : vector<4x16x128xf32>
    %c4_216 = arith.constant 4 : index
    %c2_217 = arith.constant 2 : index
    %c0_218 = arith.constant 0 : index
    %330 = vector.load %arg8[%c4_216, %c2_217, %c0_218] : memref<10x22x128xf32, #tpu.memory_space<vmem>>, vector<4x16x128xf32>
    %c30 = arith.constant 30 : index
    %c0_219 = arith.constant 0 : index
    %331 = vector.load %arg6[%c30, %c0_219] : memref<49x128xf32, #tpu.memory_space<vmem>>, vector<1x128xf32>
    %332 = vector.shape_cast %331 : vector<1x128xf32> to vector<1x1x128xf32>
    %333 = vector.broadcast %332 : vector<1x1x128xf32> to vector<4x16x128xf32>
    %334 = arith.mulf %330, %333 : vector<4x16x128xf32>
    %335 = arith.addf %329, %334 : vector<4x16x128xf32>
    %c4_220 = arith.constant 4 : index
    %c3_221 = arith.constant 3 : index
    %c0_222 = arith.constant 0 : index
    %336 = vector.load %arg8[%c4_220, %c3_221, %c0_222] : memref<10x22x128xf32, #tpu.memory_space<vmem>>, vector<4x16x128xf32>
    %c31 = arith.constant 31 : index
    %c0_223 = arith.constant 0 : index
    %337 = vector.load %arg6[%c31, %c0_223] : memref<49x128xf32, #tpu.memory_space<vmem>>, vector<1x128xf32>
    %338 = vector.shape_cast %337 : vector<1x128xf32> to vector<1x1x128xf32>
    %339 = vector.broadcast %338 : vector<1x1x128xf32> to vector<4x16x128xf32>
    %340 = arith.mulf %336, %339 : vector<4x16x128xf32>
    %341 = arith.addf %335, %340 : vector<4x16x128xf32>
    %c4_224 = arith.constant 4 : index
    %c4_225 = arith.constant 4 : index
    %c0_226 = arith.constant 0 : index
    %342 = vector.load %arg8[%c4_224, %c4_225, %c0_226] : memref<10x22x128xf32, #tpu.memory_space<vmem>>, vector<4x16x128xf32>
    %c32 = arith.constant 32 : index
    %c0_227 = arith.constant 0 : index
    %343 = vector.load %arg6[%c32, %c0_227] : memref<49x128xf32, #tpu.memory_space<vmem>>, vector<1x128xf32>
    %344 = vector.shape_cast %343 : vector<1x128xf32> to vector<1x1x128xf32>
    %345 = vector.broadcast %344 : vector<1x1x128xf32> to vector<4x16x128xf32>
    %346 = arith.mulf %342, %345 : vector<4x16x128xf32>
    %347 = arith.addf %341, %346 : vector<4x16x128xf32>
    %c4_228 = arith.constant 4 : index
    %c5_229 = arith.constant 5 : index
    %c0_230 = arith.constant 0 : index
    %348 = vector.load %arg8[%c4_228, %c5_229, %c0_230] : memref<10x22x128xf32, #tpu.memory_space<vmem>>, vector<4x16x128xf32>
    %c33 = arith.constant 33 : index
    %c0_231 = arith.constant 0 : index
    %349 = vector.load %arg6[%c33, %c0_231] : memref<49x128xf32, #tpu.memory_space<vmem>>, vector<1x128xf32>
    %350 = vector.shape_cast %349 : vector<1x128xf32> to vector<1x1x128xf32>
    %351 = vector.broadcast %350 : vector<1x1x128xf32> to vector<4x16x128xf32>
    %352 = arith.mulf %348, %351 : vector<4x16x128xf32>
    %353 = arith.addf %347, %352 : vector<4x16x128xf32>
    %c4_232 = arith.constant 4 : index
    %c6_233 = arith.constant 6 : index
    %c0_234 = arith.constant 0 : index
    %354 = vector.load %arg8[%c4_232, %c6_233, %c0_234] : memref<10x22x128xf32, #tpu.memory_space<vmem>>, vector<4x16x128xf32>
    %c34 = arith.constant 34 : index
    %c0_235 = arith.constant 0 : index
    %355 = vector.load %arg6[%c34, %c0_235] : memref<49x128xf32, #tpu.memory_space<vmem>>, vector<1x128xf32>
    %356 = vector.shape_cast %355 : vector<1x128xf32> to vector<1x1x128xf32>
    %357 = vector.broadcast %356 : vector<1x1x128xf32> to vector<4x16x128xf32>
    %358 = arith.mulf %354, %357 : vector<4x16x128xf32>
    %359 = arith.addf %353, %358 : vector<4x16x128xf32>
    %c5_236 = arith.constant 5 : index
    %c0_237 = arith.constant 0 : index
    %c0_238 = arith.constant 0 : index
    %360 = vector.load %arg8[%c5_236, %c0_237, %c0_238] : memref<10x22x128xf32, #tpu.memory_space<vmem>>, vector<4x16x128xf32>
    %c35 = arith.constant 35 : index
    %c0_239 = arith.constant 0 : index
    %361 = vector.load %arg6[%c35, %c0_239] : memref<49x128xf32, #tpu.memory_space<vmem>>, vector<1x128xf32>
    %362 = vector.shape_cast %361 : vector<1x128xf32> to vector<1x1x128xf32>
    %363 = vector.broadcast %362 : vector<1x1x128xf32> to vector<4x16x128xf32>
    %364 = arith.mulf %360, %363 : vector<4x16x128xf32>
    %365 = arith.addf %359, %364 : vector<4x16x128xf32>
    %c5_240 = arith.constant 5 : index
    %c1_241 = arith.constant 1 : index
    %c0_242 = arith.constant 0 : index
    %366 = vector.load %arg8[%c5_240, %c1_241, %c0_242] : memref<10x22x128xf32, #tpu.memory_space<vmem>>, vector<4x16x128xf32>
    %c36 = arith.constant 36 : index
    %c0_243 = arith.constant 0 : index
    %367 = vector.load %arg6[%c36, %c0_243] : memref<49x128xf32, #tpu.memory_space<vmem>>, vector<1x128xf32>
    %368 = vector.shape_cast %367 : vector<1x128xf32> to vector<1x1x128xf32>
    %369 = vector.broadcast %368 : vector<1x1x128xf32> to vector<4x16x128xf32>
    %370 = arith.mulf %366, %369 : vector<4x16x128xf32>
    %371 = arith.addf %365, %370 : vector<4x16x128xf32>
    %c5_244 = arith.constant 5 : index
    %c2_245 = arith.constant 2 : index
    %c0_246 = arith.constant 0 : index
    %372 = vector.load %arg8[%c5_244, %c2_245, %c0_246] : memref<10x22x128xf32, #tpu.memory_space<vmem>>, vector<4x16x128xf32>
    %c37 = arith.constant 37 : index
    %c0_247 = arith.constant 0 : index
    %373 = vector.load %arg6[%c37, %c0_247] : memref<49x128xf32, #tpu.memory_space<vmem>>, vector<1x128xf32>
    %374 = vector.shape_cast %373 : vector<1x128xf32> to vector<1x1x128xf32>
    %375 = vector.broadcast %374 : vector<1x1x128xf32> to vector<4x16x128xf32>
    %376 = arith.mulf %372, %375 : vector<4x16x128xf32>
    %377 = arith.addf %371, %376 : vector<4x16x128xf32>
    %c5_248 = arith.constant 5 : index
    %c3_249 = arith.constant 3 : index
    %c0_250 = arith.constant 0 : index
    %378 = vector.load %arg8[%c5_248, %c3_249, %c0_250] : memref<10x22x128xf32, #tpu.memory_space<vmem>>, vector<4x16x128xf32>
    %c38 = arith.constant 38 : index
    %c0_251 = arith.constant 0 : index
    %379 = vector.load %arg6[%c38, %c0_251] : memref<49x128xf32, #tpu.memory_space<vmem>>, vector<1x128xf32>
    %380 = vector.shape_cast %379 : vector<1x128xf32> to vector<1x1x128xf32>
    %381 = vector.broadcast %380 : vector<1x1x128xf32> to vector<4x16x128xf32>
    %382 = arith.mulf %378, %381 : vector<4x16x128xf32>
    %383 = arith.addf %377, %382 : vector<4x16x128xf32>
    %c5_252 = arith.constant 5 : index
    %c4_253 = arith.constant 4 : index
    %c0_254 = arith.constant 0 : index
    %384 = vector.load %arg8[%c5_252, %c4_253, %c0_254] : memref<10x22x128xf32, #tpu.memory_space<vmem>>, vector<4x16x128xf32>
    %c39 = arith.constant 39 : index
    %c0_255 = arith.constant 0 : index
    %385 = vector.load %arg6[%c39, %c0_255] : memref<49x128xf32, #tpu.memory_space<vmem>>, vector<1x128xf32>
    %386 = vector.shape_cast %385 : vector<1x128xf32> to vector<1x1x128xf32>
    %387 = vector.broadcast %386 : vector<1x1x128xf32> to vector<4x16x128xf32>
    %388 = arith.mulf %384, %387 : vector<4x16x128xf32>
    %389 = arith.addf %383, %388 : vector<4x16x128xf32>
    %c5_256 = arith.constant 5 : index
    %c5_257 = arith.constant 5 : index
    %c0_258 = arith.constant 0 : index
    %390 = vector.load %arg8[%c5_256, %c5_257, %c0_258] : memref<10x22x128xf32, #tpu.memory_space<vmem>>, vector<4x16x128xf32>
    %c40 = arith.constant 40 : index
    %c0_259 = arith.constant 0 : index
    %391 = vector.load %arg6[%c40, %c0_259] : memref<49x128xf32, #tpu.memory_space<vmem>>, vector<1x128xf32>
    %392 = vector.shape_cast %391 : vector<1x128xf32> to vector<1x1x128xf32>
    %393 = vector.broadcast %392 : vector<1x1x128xf32> to vector<4x16x128xf32>
    %394 = arith.mulf %390, %393 : vector<4x16x128xf32>
    %395 = arith.addf %389, %394 : vector<4x16x128xf32>
    %c5_260 = arith.constant 5 : index
    %c6_261 = arith.constant 6 : index
    %c0_262 = arith.constant 0 : index
    %396 = vector.load %arg8[%c5_260, %c6_261, %c0_262] : memref<10x22x128xf32, #tpu.memory_space<vmem>>, vector<4x16x128xf32>
    %c41 = arith.constant 41 : index
    %c0_263 = arith.constant 0 : index
    %397 = vector.load %arg6[%c41, %c0_263] : memref<49x128xf32, #tpu.memory_space<vmem>>, vector<1x128xf32>
    %398 = vector.shape_cast %397 : vector<1x128xf32> to vector<1x1x128xf32>
    %399 = vector.broadcast %398 : vector<1x1x128xf32> to vector<4x16x128xf32>
    %400 = arith.mulf %396, %399 : vector<4x16x128xf32>
    %401 = arith.addf %395, %400 : vector<4x16x128xf32>
    %c6_264 = arith.constant 6 : index
    %c0_265 = arith.constant 0 : index
    %c0_266 = arith.constant 0 : index
    %402 = vector.load %arg8[%c6_264, %c0_265, %c0_266] : memref<10x22x128xf32, #tpu.memory_space<vmem>>, vector<4x16x128xf32>
    %c42 = arith.constant 42 : index
    %c0_267 = arith.constant 0 : index
    %403 = vector.load %arg6[%c42, %c0_267] : memref<49x128xf32, #tpu.memory_space<vmem>>, vector<1x128xf32>
    %404 = vector.shape_cast %403 : vector<1x128xf32> to vector<1x1x128xf32>
    %405 = vector.broadcast %404 : vector<1x1x128xf32> to vector<4x16x128xf32>
    %406 = arith.mulf %402, %405 : vector<4x16x128xf32>
    %407 = arith.addf %401, %406 : vector<4x16x128xf32>
    %c6_268 = arith.constant 6 : index
    %c1_269 = arith.constant 1 : index
    %c0_270 = arith.constant 0 : index
    %408 = vector.load %arg8[%c6_268, %c1_269, %c0_270] : memref<10x22x128xf32, #tpu.memory_space<vmem>>, vector<4x16x128xf32>
    %c43 = arith.constant 43 : index
    %c0_271 = arith.constant 0 : index
    %409 = vector.load %arg6[%c43, %c0_271] : memref<49x128xf32, #tpu.memory_space<vmem>>, vector<1x128xf32>
    %410 = vector.shape_cast %409 : vector<1x128xf32> to vector<1x1x128xf32>
    %411 = vector.broadcast %410 : vector<1x1x128xf32> to vector<4x16x128xf32>
    %412 = arith.mulf %408, %411 : vector<4x16x128xf32>
    %413 = arith.addf %407, %412 : vector<4x16x128xf32>
    %c6_272 = arith.constant 6 : index
    %c2_273 = arith.constant 2 : index
    %c0_274 = arith.constant 0 : index
    %414 = vector.load %arg8[%c6_272, %c2_273, %c0_274] : memref<10x22x128xf32, #tpu.memory_space<vmem>>, vector<4x16x128xf32>
    %c44 = arith.constant 44 : index
    %c0_275 = arith.constant 0 : index
    %415 = vector.load %arg6[%c44, %c0_275] : memref<49x128xf32, #tpu.memory_space<vmem>>, vector<1x128xf32>
    %416 = vector.shape_cast %415 : vector<1x128xf32> to vector<1x1x128xf32>
    %417 = vector.broadcast %416 : vector<1x1x128xf32> to vector<4x16x128xf32>
    %418 = arith.mulf %414, %417 : vector<4x16x128xf32>
    %419 = arith.addf %413, %418 : vector<4x16x128xf32>
    %c6_276 = arith.constant 6 : index
    %c3_277 = arith.constant 3 : index
    %c0_278 = arith.constant 0 : index
    %420 = vector.load %arg8[%c6_276, %c3_277, %c0_278] : memref<10x22x128xf32, #tpu.memory_space<vmem>>, vector<4x16x128xf32>
    %c45 = arith.constant 45 : index
    %c0_279 = arith.constant 0 : index
    %421 = vector.load %arg6[%c45, %c0_279] : memref<49x128xf32, #tpu.memory_space<vmem>>, vector<1x128xf32>
    %422 = vector.shape_cast %421 : vector<1x128xf32> to vector<1x1x128xf32>
    %423 = vector.broadcast %422 : vector<1x1x128xf32> to vector<4x16x128xf32>
    %424 = arith.mulf %420, %423 : vector<4x16x128xf32>
    %425 = arith.addf %419, %424 : vector<4x16x128xf32>
    %c6_280 = arith.constant 6 : index
    %c4_281 = arith.constant 4 : index
    %c0_282 = arith.constant 0 : index
    %426 = vector.load %arg8[%c6_280, %c4_281, %c0_282] : memref<10x22x128xf32, #tpu.memory_space<vmem>>, vector<4x16x128xf32>
    %c46 = arith.constant 46 : index
    %c0_283 = arith.constant 0 : index
    %427 = vector.load %arg6[%c46, %c0_283] : memref<49x128xf32, #tpu.memory_space<vmem>>, vector<1x128xf32>
    %428 = vector.shape_cast %427 : vector<1x128xf32> to vector<1x1x128xf32>
    %429 = vector.broadcast %428 : vector<1x1x128xf32> to vector<4x16x128xf32>
    %430 = arith.mulf %426, %429 : vector<4x16x128xf32>
    %431 = arith.addf %425, %430 : vector<4x16x128xf32>
    %c6_284 = arith.constant 6 : index
    %c5_285 = arith.constant 5 : index
    %c0_286 = arith.constant 0 : index
    %432 = vector.load %arg8[%c6_284, %c5_285, %c0_286] : memref<10x22x128xf32, #tpu.memory_space<vmem>>, vector<4x16x128xf32>
    %c47 = arith.constant 47 : index
    %c0_287 = arith.constant 0 : index
    %433 = vector.load %arg6[%c47, %c0_287] : memref<49x128xf32, #tpu.memory_space<vmem>>, vector<1x128xf32>
    %434 = vector.shape_cast %433 : vector<1x128xf32> to vector<1x1x128xf32>
    %435 = vector.broadcast %434 : vector<1x1x128xf32> to vector<4x16x128xf32>
    %436 = arith.mulf %432, %435 : vector<4x16x128xf32>
    %437 = arith.addf %431, %436 : vector<4x16x128xf32>
    %c6_288 = arith.constant 6 : index
    %c6_289 = arith.constant 6 : index
    %c0_290 = arith.constant 0 : index
    %438 = vector.load %arg8[%c6_288, %c6_289, %c0_290] : memref<10x22x128xf32, #tpu.memory_space<vmem>>, vector<4x16x128xf32>
    %c48 = arith.constant 48 : index
    %c0_291 = arith.constant 0 : index
    %439 = vector.load %arg6[%c48, %c0_291] : memref<49x128xf32, #tpu.memory_space<vmem>>, vector<1x128xf32>
    %440 = vector.shape_cast %439 : vector<1x128xf32> to vector<1x1x128xf32>
    %441 = vector.broadcast %440 : vector<1x1x128xf32> to vector<4x16x128xf32>
    %442 = arith.mulf %438, %441 : vector<4x16x128xf32>
    %443 = arith.addf %437, %442 : vector<4x16x128xf32>
    %444 = vector.shape_cast %21 : vector<1x128xf32> to vector<1x1x128xf32>
    %445 = vector.broadcast %444 : vector<1x1x128xf32> to vector<4x16x128xf32>
    %446 = arith.addf %443, %445 : vector<4x16x128xf32>
    %447 = vector.shape_cast %446 : vector<4x16x128xf32> to vector<64x128xf32>
    %448 = arith.mulf %64, %447 : vector<64x128xf32>
    %449 = arith.truncf %448 : vector<64x128xf32> to vector<64x128xbf16>
    %cst_292 = arith.constant dense<0.000000e+00> : vector<64x128xf32>
    %450 = tpu.matmul %449, %25, %cst_292 {dimension_numbers = #tpu.dot_dimension_numbers<[1], [0], [0], [1], [0, 0, 1, 1], [], []>} : vector<64x128xbf16>, vector<128x128xbf16>, vector<64x128xf32> -> vector<64x128xf32>
    %451 = vector.broadcast %22 : vector<1x128xf32> to vector<64x128xf32>
    %452 = arith.addf %450, %451 : vector<64x128xf32>
    %453 = vector.broadcast %23 : vector<1x128xf32> to vector<64x128xf32>
    %454 = arith.mulf %452, %453 : vector<64x128xf32>
    %455 = arith.addf %454, %33 : vector<64x128xf32>
    %456 = vector.shape_cast %455 : vector<64x128xf32> to vector<4x16x128xf32>
    %c0_293 = arith.constant 0 : index
    %c0_294 = arith.constant 0 : index
    %c0_295 = arith.constant 0 : index
    %c0_296 = arith.constant 0 : index
    %457 = vector.load %arg7[%c0_293, %c0_294, %c0_295, %c0_296] : memref<1x4x16x128xf32, #tpu.memory_space<vmem>>, vector<1x4x16x128xf32>
    %458 = vector.shape_cast %457 : vector<1x4x16x128xf32> to vector<4x16x128xf32>
    %459 = vector.shape_cast %456 : vector<4x16x128xf32> to vector<1x4x16x128xf32>
    tpu.vector_store %arg7[%c0_293, %c0_294, %c0_295, %c0_296], %459 {strides = array<i32>} : memref<1x4x16x128xf32, #tpu.memory_space<vmem>>, vector<1x4x16x128xf32>,
    return
  }
  func.func @transform_0(%arg0: i32, %arg1: i32) -> (i32, i32, i32, i32) {
    %c0_i32 = arith.constant 0 : i32
    %c0_i32_0 = arith.constant 0 : i32
    %c0_i32_1 = arith.constant 0 : i32
    return %arg0, %arg1, %c0_i32, %c0_i32_0 : i32, i32, i32, i32
  }
  func.func @transform_2(%arg0: i32, %arg1: i32) -> (i32, i32) {
    %c0_i32 = arith.constant 0 : i32
    %c0_i32_0 = arith.constant 0 : i32
    %c0_i32_1 = arith.constant 0 : i32
    return %c0_i32, %c0_i32_0 : i32, i32
  }
  func.func @transform_3(%arg0: i32, %arg1: i32) -> (i32, i32) {
    %c0_i32 = arith.constant 0 : i32
    %c0_i32_0 = arith.constant 0 : i32
    %c0_i32_1 = arith.constant 0 : i32
    return %c0_i32, %c0_i32_0 : i32, i32
  }
  func.func @transform_4(%arg0: i32, %arg1: i32) -> (i32, i32) {
    %c0_i32 = arith.constant 0 : i32
    %c0_i32_0 = arith.constant 0 : i32
    %c0_i32_1 = arith.constant 0 : i32
    return %c0_i32, %c0_i32_0 : i32, i32
  }
  func.func @transform_5(%arg0: i32, %arg1: i32) -> (i32, i32, i32, i32) {
    %c0_i32 = arith.constant 0 : i32
    %c0_i32_0 = arith.constant 0 : i32
    %c0_i32_1 = arith.constant 0 : i32
    return %arg0, %arg1, %c0_i32, %c0_i32_0 : i32, i32, i32, i32
  }
}

</mosaic_0001>

<bundles_post_ra>
// kernel: gsau_pallas.1
= control target key start
LH: loop header
LB: loop body
LE: loop exit
PB: predicated region body
PF: predicated region fallthrough
CT: control target
= control target key end

     0   :  { %s3067_s18 = smov 0   ;;  %s3069_s19 = smov 0   ;;  %s4999_s0 = inlined_call_operand.vmem [shape: f32[2,16,16,128], index: 0, kind: input, shape index: {}, may-alias: {0,1}]   ;;  %s5000_s1 = inlined_call_operand.vmem [shape: f32[2,16,16,128], index: 1, kind: input, shape index: {}, may-alias: {0,1}]   ;;  %s5001_s2 = inlined_call_operand.vmem [shape: f32[8,128], index: 2, kind: input, shape index: {}]   ;;  %s5002_s3 = inlined_call_operand.vmem [shape: bf16[128,384], index: 3, kind: input, shape index: {}]   ;;  %s5003_s4 = inlined_call_operand.vmem [shape: f32[49,128], index: 4, kind: input, shape index: {}]   ;;  %s5004_s5 = inlined_call_operand.vmem [shape: f32[2,16,16,128], index: 5, kind: output, shape index: {}]  }
   0x1   :  { %s3071_s20 = smov 0   ;;  %s3073_s21 = smov 0  }
   0x2   :  { %s3075_s22 = smov 0  }
   0x3 LB: > { %s24_s23 = sadd.s32 1, %s3024_s20  ;;  %s27_s24 = sadd.s32 1, %s3028_s21  ;;  %s3032_s22 = sphi %s3075_s22, %s15_s22   ;;  %s3028_s21 = sphi %s3073_s21, %s5126_s21   ;;  %s3024_s20 = sphi %s3071_s20, %s5125_s20   ;;  %s3020_s19 = sphi %s3069_s19, %s5124_s19   ;;  %s3016_s18 = sphi %s3067_s18, %s5123_s18  }
   0x4   : > { %p25_p0 = scmp.ge.s32.totalorder %s24_s23, 4  ;;  %p2656_p1 = scmp.ge.s32.totalorder %s3032_s22, 1 }
   0x5   : > { %p185_p2 = scmp.lt.s32.totalorder %s3032_s22, 9 }
   0x6   : > { %s5128_s23 = smov (%p25_p0, %s24_s23), 0  ;;  %s5130_s24 = smov (!%p25_p0, %s27_s24), %s3028_s21 }
   0x7   : > { %p186_p3 = pnand %p2656_p1, %p185_p2  ;;  %p29_p4 = scmp.ge.s32.totalorder %s5130_s24, 2 }
   0x9   : > { %s5132_s24 = smov (%p29_p4, %s5130_s24), 0  ;;  %189 = sbr.rel (%p186_p3) target bundleno = 1365 (0x555), region = 36 }
   0xe   : > { %s2657_s25 = sshll.u32 %s3016_s18, 2  ;;  %p222_p5 = scmp.lt.s32.totalorder %s3020_s19, 1 }
   0xf   : > { %p224_p6 = scmp.lt.s32.totalorder %s2657_s25, 15  ;;  %s2666_s26 = sadd.s32 4294967293, %s2657_s25 }
  0x10   : > { %s223_s27 = scalar_select %p222_p5, %s3020_s19, 1 }
  0x11   : > { %s225_s28 = scalar_select %p224_p6, %s2657_s25, 15 }
  0x12   : > { %s2659_s29 = sshll.u32 %s223_s27, 5  ;;  %p245_p7 = scmp.gt.s32.totalorder %s2666_s26, 0 }
  0x13   : > { %s2658_s30 = sshll.u32 %s225_s28, 1  ;;  %s247_s6 = sadd.s32 4, %s2657_s25 }
  0x14   : > { %s228_s7 = sadd.s32 %s2659_s29, %s2658_s30  ;;  %p248_p8 = scmp.lt.s32.totalorder %s247_s6, 13 }
  0x15   : > { %s2660_s8 = sshll.u32 %s228_s7, 3  ;;  %s2668_s9 = sshll.u32 %s3020_s19, 8 }
  0x16   : > { %s3108_s12 = scalar_lea.vmem %s4999_s0, %s2660_s8  ;;  %s3113_s15 = scalar_lea.vmem %s5004_s5, %s2660_s8 }
  0x17   : > { %s5134_s26 = smov (!%p245_p7, %s2666_s26), 0  ;;  %s5136_s6 = smov (!%p248_p8, %s247_s6), 13 }
  0x18   : > { %s2667_s16 = sshll.u32 %s5134_s26, 4 }
  0x19   : > { %s252_s17 = sadd.s32 %s2668_s9, %s2667_s16 }
  0x1a   : > { %s253_s28 = scalar_lea.vmem %s5000_s1, %s252_s17 }
  0x1b   : > { %v3118_v0 = vld [vmem:[%s253_s28] sm:$0xff]  ;;  %v3120_v1 = vld [vmem:[%s253_s28 + $0x8] sm:$0xff]  ;;  %v3122_v2 = vld [vmem:[%s253_s28 + $0x10] sm:$0xff] }
  0x1c   : > { %v3124_v3 = vld [vmem:[%s253_s28 + $0x18] sm:$0xff]  ;;  %v3126_v4 = vld [vmem:[%s253_s28 + $0x20] sm:$0xff]  ;;  %v3128_v5 = vld [vmem:[%s253_s28 + $0x28] sm:$0xff] }
  0x1d   : > { %281 = vsyncadd [#allocation4], 768  ;;  %s2669_s19 = sshll.u32 %s5136_s6, 4  ;;  %v3146_v12 = vld [vmem:[%s3108_s12 + $0x20] sm:$0xff]  ;;  %v3149_v13 = vld [vmem:[%s3108_s12 + $0x10] sm:$0xff] }
  0x1e   : > { %s283_s26 = sadd.s32 %s2669_s19, %s2668_s9  ;;  %5034 = vst [vmem:[#allocation9_spill] sm:$0xff] %v3146_v12  ;;  %v3152_v14 = vld [vmem:[%s3108_s12] sm:$0xff]  ;;  %375 = vadd.xlane.f32.xlu2 %v3146_v12  ;;  %371 = vadd.xlane.f32.xlu1 %v3149_v13 }
  0x1f   : > { %s284_s7 = scalar_lea.vmem %s5000_s1, %s283_s26  ;;  %5035 = vst [vmem:[#allocation10_spill] sm:$0xff] %v3149_v13  ;;  %367 = vadd.xlane.f32.xlu0 %v3152_v14 }
  0x20   : > { %v3133_v6 = vld [vmem:[%s284_s7] sm:$0xff]  ;;  %v3135_v7 = vld [vmem:[%s284_s7 + $0x8] sm:$0xff]  ;;  %v3137_v8 = vld [vmem:[%s284_s7 + $0x10] sm:$0xff]  ;;  %5036 = vst [vmem:[#allocation11_spill] sm:$0xff] %v3152_v14 }
  0x21   : > { %v3139_v9 = vld [vmem:[%s284_s7 + $0x18] sm:$0xff]  ;;  %v3141_v10 = vld [vmem:[%s284_s7 + $0x20] sm:$0xff]  ;;  %v3143_v11 = vld [vmem:[%s284_s7 + $0x28] sm:$0xff] }
  0x22   : > { %314 = vsyncadd [#allocation4 + $0x1], 768  ;;  %v3158_v15 = vld [vmem:[%s3108_s12 + $0x28] sm:$0xff]  ;;  %v3161_v16 = vld [vmem:[%s3108_s12 + $0x18] sm:$0xff]  ;;  %v354_v20 = vlaneseq  ;;  %v5005_v27 = vmov 0.0  }
  0x23   : > { %5037 = vst [vmem:[#allocation12_spill] sm:$0xff] %v3158_v15  ;;  %v3164_v17 = vld [vmem:[%s3108_s12 + $0x8] sm:$0xff]  ;;  %v3170_v18 = vld [vmem:[%s3108_s12 + $0x38] sm:$0xff]  ;;  %v3173_v19 = vld [vmem:[%s3108_s12 + $0x30] sm:$0xff] }
  0x24   : > { %5038 = vst [vmem:[#allocation13_spill] sm:$0xff] %v3161_v16  ;;  %v355_v21 = vand.u32 127, %v354_v20  ;;  %v2729_v20 = vld [vmem:[%s5002_s3 + $0xa8] sm:$0xf] }
  0x25   : > { %5039 = vst [vmem:[#allocation14_spill] sm:$0xff] %v3164_v17 }
  0x26   : > { %377 = vadd.xlane.f32.xlu2 %v3158_v15  ;;  %373 = vadd.xlane.f32.xlu1 %v3161_v16  ;;  %5040 = vst [vmem:[#allocation15_spill] sm:$0xff] %v3170_v18  ;;  %vm356_vm0 = vcmp.lt.s32.totalorder %v355_v21, 4  ;;  %v2788_v21 = vld [vmem:[%s5002_s3 + $0xb0] sm:$0xf0] }
  0x27   : > { %369 = vadd.xlane.f32.xlu0 %v3164_v17  ;;  %5041 = vst [vmem:[#allocation16_spill] sm:$0xff] %v3173_v19  ;;  %v3178_v28 = vsel %vm356_vm0, 1.0, %v5005_v27  ;;  %v2774_v27 = vld [vmem:[%s5002_s3 + $0x8] sm:$0xf0] }
  0x2e   : > { %381 = vadd.xlane.f32.xlu1 %v3170_v18 }
  0x2f   : > { %379 = vadd.xlane.f32.xlu0 %v3173_v19 }
  0x91   : > { %v376_v22 = vpop.xlane.xlu2 %375  ;;  %v372_v23 = vpop.xlane.xlu1 %371 }
  0x92   : > { %v385_v24 = vmul.f32 0.25, %v372_v23  ;;  %v368_v25 = vpop.xlane.xlu0 %367  ;;  %v387_v40 = vmul.f32 0.25, %v376_v22  ;;  %v2787_v22 = vld [vmem:[%s5002_s3 + $0xac] sm:$0xf]  ;;  %v3237_v23 = vor.u32 %v2788_v21, %v2729_v20  ;;  %v2691_v20 = vld [vmem:[%s5002_s3 + $0x3c] sm:$0xf0] }
  0x93   : > { %v383_v26 = vmul.f32 0.25, %v368_v25 }
  0x94   : > { %v393_v29 = vsub.f32 %v3149_v13, %v385_v24  ;;  %v395_v47 = vsub.f32 %v3146_v12, %v387_v40  ;;  %v2731_v24 = vld [vmem:[%s5002_s3 + $0xb4] sm:$0xf0]  ;;  %637 = vmatpush.bf16.msra.mxu0 %v3237_v23  ;;  %v2715_v40 = vld [vmem:[%s5002_s3 + $0x84] sm:$0xf0] }
  0x95   : > { %v391_v30 = vsub.f32 %v3152_v14, %v383_v26  ;;  %v2734_v25 = vor.u32 %v2787_v22, %v2731_v24  ;;  %v2721_v26 = vld [vmem:[%s5002_s3 + $0x90] sm:$0xf]  ;;  %v3320_v22 = vld [vmem:[%s5001_s2 + $0x4] sm:$0x1]  ;;  %v3325_v24 = vld [vmem:[%s5001_s2 + $0x5] sm:$0x1] }
  0x96   : > { %v3183_v31 = vmul.f32 %v3178_v28, %v393_v29  ;;  %v3212_v56 = vmul.f32 %v3178_v28, %v395_v47  ;;  %v2786_v29 = vld [vmem:[%s5002_s3 + $0x98] sm:$0xf0]  ;;  %5042 = vst [vmem:[#allocation17_spill] sm:$0xff] %v3320_v22 }
  0x97   : > { %v3186_v32 = vmul.f32 %v3178_v28, %v391_v30  ;;  %666 = vmatpush.bf16.msra.mxu1 %v2734_v25  ;;  %v2785_v30 = vld [vmem:[%s5002_s3 + $0x94] sm:$0xf]  ;;  %5043 = vst [vmem:[#allocation18_spill] sm:$0xff] %v3325_v24  ;;  %v3330_v25 = vld [vmem:[%s5001_s2 + $0x6] sm:$0x1] }
  0x98   : > { %v409_v33 = vmul.f32 %v3183_v31, %v3183_v31  ;;  %v411_v59 = vmul.f32 %v3212_v56, %v3212_v56  ;;  %5044 = vst [vmem:[#allocation19_spill] sm:$0xff] %v3330_v25 }
  0x99   : > { %v378_v34 = vpop.xlane.xlu2 %377  ;;  %v374_v35 = vpop.xlane.xlu1 %373  ;;  %v407_v36 = vmul.f32 %v3186_v32, %v3186_v32 }
  0x9a   : > { %v388_v37 = vmul.f32 0.25, %v378_v34  ;;  %v386_v38 = vmul.f32 0.25, %v374_v35  ;;  %v370_v39 = vpop.xlane.xlu0 %369  ;;  %419 = vadd.xlane.f32.xlu1 %v409_v33  ;;  %v3252_v33 = vor.u32 %v2786_v29, %v2721_v26  ;;  %v2723_v34 = vld [vmem:[%s5002_s3 + $0x9c] sm:$0xf0]  ;;  %v3336_v26 = vld [vmem:[%s5002_s3 + $0x8] sm:$0xf] }
  0x9b   : > { %v384_v41 = vmul.f32 0.25, %v370_v39  ;;  %415 = vadd.xlane.f32.xlu2 %v407_v36  ;;  %v2726_v35 = vor.u32 %v2785_v30, %v2723_v34  ;;  %v2713_v36 = vld [vmem:[%s5002_s3 + $0x78] sm:$0xf]  ;;  %5045 = vst [vmem:[#allocation20_spill] sm:$0xff] %v3336_v26  ;;  %v3341_v29 = vld [vmem:[%s5002_s3 + $0x10] sm:$0xf0] }
  0x9c   : > { %v396_v42 = vsub.f32 %v3158_v15, %v388_v37  ;;  %v394_v43 = vsub.f32 %v3161_v16, %v386_v38  ;;  %638 = vmatpush.bf16.msra.mxu0 %v3252_v33  ;;  %v2784_v37 = vld [vmem:[%s5002_s3 + $0x80] sm:$0xf0]  ;;  %v2783_v38 = vld [vmem:[%s5002_s3 + $0x7c] sm:$0xf]  ;;  %5046 = vst [vmem:[#allocation21_spill] sm:$0xff] %v3341_v29 }
  0x9d   : > { %v392_v44 = vsub.f32 %v3164_v17, %v384_v41  ;;  %667 = vmatpush.bf16.msra.mxu1 %v2726_v35  ;;  %v3267_v39 = vor.u32 %v2784_v37, %v2713_v36  ;;  %v2718_v41 = vor.u32 %v2783_v38, %v2715_v40  ;;  %v3346_v30 = vld [vmem:[%s5002_s3 + $0x20] sm:$0xf]  ;;  %v3351_v35 = vld [vmem:[%s5002_s3 + $0x28] sm:$0xf0]  ;;  %v3356_v36 = vld [vmem:[%s5002_s3 + $0x38] sm:$0xf] }
  0x9e   : > { %v3196_v45 = vmul.f32 %v3178_v28, %v396_v42  ;;  %v3199_v46 = vmul.f32 %v3178_v28, %v394_v43  ;;  %v2705_v42 = vld [vmem:[%s5002_s3 + $0x60] sm:$0xf]  ;;  %v2782_v43 = vld [vmem:[%s5002_s3 + $0x68] sm:$0xf0]  ;;  %5047 = vst [vmem:[#allocation22_spill] sm:$0xff] %v3346_v30 }
  0x9f   : > { %v3203_v48 = vmul.f32 %v3178_v28, %v392_v44  ;;  %v2781_v44 = vld [vmem:[%s5002_s3 + $0x64] sm:$0xf]  ;;  %v3282_v47 = vor.u32 %v2782_v43, %v2705_v42  ;;  %5048 = vst [vmem:[#allocation23_spill] sm:$0xff] %v3351_v35  ;;  %v3366_v40 = vld [vmem:[%s5002_s3 + $0x50] sm:$0xf] }
  0xa0   : > { %v412_v49 = vmul.f32 %v3196_v45, %v3196_v45  ;;  %v410_v50 = vmul.f32 %v3199_v46, %v3199_v46  ;;  %639 = vmatpush.bf16.msra.mxu0 %v3267_v39  ;;  %5049 = vst [vmem:[#allocation24_spill] sm:$0xff] %v3356_v36  ;;  %v3361_v37 = vld [vmem:[%s5002_s3 + $0x40] sm:$0xf0]  ;;  %v3376_v43 = vld [vmem:[%s5002_s3 + $0x68] sm:$0xf] }
  0xa1   : > { %v408_v51 = vmul.f32 %v3203_v48, %v3203_v48  ;;  %v382_v52 = vpop.xlane.xlu1 %381  ;;  %668 = vmatpush.bf16.msra.mxu1 %v2718_v41  ;;  %5050 = vst [vmem:[#allocation25_spill] sm:$0xff] %v3361_v37  ;;  %v3371_v41 = vld [vmem:[%s5002_s3 + $0x58] sm:$0xf0] }
  0xa2   : > { %v380_v53 = vpop.xlane.xlu0 %379  ;;  %425 = vadd.xlane.f32.xlu1 %v412_v49  ;;  %v390_v55 = vmul.f32 0.25, %v382_v52  ;;  %v2707_v49 = vld [vmem:[%s5002_s3 + $0x6c] sm:$0xf0]  ;;  %v2780_v52 = vld [vmem:[%s5002_s3 + $0x50] sm:$0xf0] }
  0xa3   : > { %v389_v54 = vmul.f32 0.25, %v380_v53  ;;  %417 = vadd.xlane.f32.xlu0 %v408_v51  ;;  %421 = vadd.xlane.f32.xlu2 %v410_v50  ;;  %v2710_v50 = vor.u32 %v2781_v44, %v2707_v49  ;;  %v2697_v51 = vld [vmem:[%s5002_s3 + $0x48] sm:$0xf]  ;;  %v2779_v53 = vld [vmem:[%s5002_s3 + $0x4c] sm:$0xf] }
  0xa4   : > { %v398_v58 = vsub.f32 %v3170_v18, %v390_v55  ;;  %640 = vmatpush.bf16.msra.mxu0 %v3282_v47  ;;  %v2699_v55 = vld [vmem:[%s5002_s3 + $0x54] sm:$0xf0]  ;;  %v3381_v44 = vld [vmem:[%s5002_s3 + $0x70] sm:$0xf0]  ;;  %v2773_v18 = vld [vmem:[%s5002_s3 + $0x4] sm:$0xf] }
  0xa5   : > { %v397_v57 = vsub.f32 %v3173_v19, %v389_v54  ;;  %669 = vmatpush.bf16.msra.mxu1 %v2710_v50  ;;  %v3297_v54 = vor.u32 %v2780_v52, %v2697_v51  ;;  %v3386_v50 = vld [vmem:[%s5002_s3 + $0x80] sm:$0xf]  ;;  %v3391_v51 = vld [vmem:[%s5002_s3 + $0x88] sm:$0xf0] }
  0xa6   : > { %v3224_v62 = vmul.f32 %v3178_v28, %v398_v58  ;;  %v2689_v58 = vld [vmem:[%s5002_s3 + $0x30] sm:$0xf] }
  0xa7   : > { %v3219_v60 = vmul.f32 %v3178_v28, %v397_v57  ;;  %v2702_v57 = vor.u32 %v2779_v53, %v2699_v55  ;;  %v3396_v53 = vld [vmem:[%s5002_s3 + $0x98] sm:$0xf]  ;;  %v3401_v55 = vld [vmem:[%s5002_s3 + $0xa0] sm:$0xf0] }
  0xa8   : > { %v414_v63 = vmul.f32 %v3224_v62, %v3224_v62  ;;  %641 = vmatpush.bf16.msra.mxu0 %v3297_v54 }
  0xa9   : > { %v413_v61 = vmul.f32 %v3219_v60, %v3219_v60  ;;  %670 = vmatpush.bf16.msra.mxu1 %v2702_v57  ;;  %v3406_v57 = vld [vmem:[%s5002_s3 + $0xb0] sm:$0xf] }
  0xab   : > { %423 = vadd.xlane.f32.xlu0 %v411_v59  ;;  %427 = vadd.xlane.f32.xlu2 %v413_v61  ;;  %v2778_v59 = vld [vmem:[%s5002_s3 + $0x38] sm:$0xf0]  ;;  %v2777_v61 = vld [vmem:[%s5002_s3 + $0x34] sm:$0xf] }
  0xac   : > { %v2694_v21 = vor.u32 %v2777_v61, %v2691_v20  ;;  %v2776_v61 = vld [vmem:[%s5002_s3 + $0x20] sm:$0xf0]  ;;  %v2775_v20 = vld [vmem:[%s5002_s3 + $0x1c] sm:$0xf] }
  0xae   : > { %671 = vmatpush.bf16.msra.mxu1 %v2694_v21  ;;  %v2683_v21 = vld [vmem:[%s5002_s3 + $0x24] sm:$0xf0] }
  0xb3   : > { %429 = vadd.xlane.f32.xlu0 %v414_v63  ;;  %v3312_v63 = vor.u32 %v2778_v59, %v2689_v58  ;;  %v3411_v58 = vld [vmem:[%s5002_s3 + $0xb8] sm:$0xf0]  ;;  %v2681_v59 = vld [vmem:[%s5002_s3 + $0x18] sm:$0xf] }
  0xb5   : > { %642 = vmatpush.bf16.msra.mxu0 %v3312_v63 }
 0x10d   : > { %v420_v34 = vpop.xlane.xlu1 %419 }
 0x10e   : > { %v416_v38 = vpop.xlane.xlu2 %415  ;;  %v433_v49 = vmul.f32 0.25, %v420_v34  ;;  %v3425_v34 = vor.u32 %v2776_v61, %v2681_v59  ;;  %v2675_v59 = vld [vmem:[%s5002_s3 + $0xc] sm:$0xf0] }
 0x10f   : > { %v431_v42 = vmul.f32 0.25, %v416_v38  ;;  %v2686_v38 = vor.u32 %v2775_v20, %v2683_v21  ;;  %v2678_v16 = vor.u32 %v2773_v18, %v2675_v59 }
 0x110   : > { %v3436_v19 = vadd.f32 1e-06, %v433_v49  ;;  %643 = vmatpush.bf16.msra.mxu0 %v3425_v34 }
 0x111   : > { %v439_v52 = vadd.f32 1e-06, %v431_v42  ;;  %v2673_v42 = vld [vmem:[%s5002_s3] sm:$0xf]  ;;  %672 = vmatpush.bf16.msra.mxu1 %v2686_v38 }
 0x112   : > { %v3442_v21 = vor.u32 %v2774_v27, %v2673_v42  ;;  %vm473_vm9 = vweird.f32 %v3436_v19 }
 0x113   : > { %2852 = vrsqrt.f32 %v439_v52  ;;  %vm453_vm2 = vweird.f32 %v439_v52 }
 0x114   : > { %2854 = vrsqrt.f32 %v3436_v19  ;;  %644 = vmatpush.bf16.msra.mxu0 %v3442_v21 }
 0x115   : > { %673 = vmatpush.bf16.msra.mxu1 %v2678_v16  ;;  %v426_v22 = vpop.xlane.xlu1 %425 }
 0x116   : > { %v418_v61 = vpop.xlane.xlu0 %417  ;;  %v422_v20 = vpop.xlane.xlu2 %421 }
 0x117   : > { %v432_v13 = vmul.f32 0.25, %v418_v61  ;;  %v434_v15 = vmul.f32 0.25, %v422_v20  ;;  %v436_v61 = vmul.f32 0.25, %v426_v22 }
 0x119   : > { %v2853_v12 = vpop.eup %2852  ;;  %v440_v17 = vadd.f32 1e-06, %v432_v13  ;;  %v442_v49 = vadd.f32 1e-06, %v434_v15 }
 0x11a   : > { %v448_v14 = vmul.f32 %v2853_v12, %v439_v52  ;;  %v3446_v27 = vpop.eup %2854  ;;  %vm454_vm1 = vweird.f32 %v2853_v12 }
 0x11b   : > { %2856 = vrsqrt.f32 %v440_v17  ;;  %v468_v13 = vmul.f32 %v3446_v27, %v3436_v19  ;;  %vm455_vm3 = vmor %vm453_vm2, %vm454_vm1  ;;  %vm463_vm5 = vweird.f32 %v440_v17  ;;  %vm483_vm7 = vweird.f32 %v442_v49 }
 0x11c   : > { %v449_v25 = vmul.f32 %v2853_v12, %v448_v14  ;;  %2858 = vrsqrt.f32 %v442_v49  ;;  %vm474_vm10 = vweird.f32 %v3446_v27 }
 0x11d   : > { %vm475_vm12 = vmor %vm473_vm9, %vm474_vm10 }
 0x11e   : > { %v450_v24 = vmul.f32 0.5, %v449_v25  ;;  %v424_v38 = vpop.xlane.xlu0 %423  ;;  %v3452_v25 = vadd.f32 1e-06, %v436_v61 }
 0x11f   : > { %v435_v18 = vmul.f32 0.25, %v424_v38 }
 0x120   : > { %v451_v42 = vsub.f32 1.5, %v450_v24  ;;  %v469_v24 = vmul.f32 %v3446_v27, %v468_v13  ;;  %vm503_vm15 = vweird.f32 %v3452_v25 }
 0x121   : > { %v2857_v59 = vpop.eup %2856  ;;  %v3450_v26 = vadd.f32 1e-06, %v435_v18 }
 0x122   : > { %v2859_v20 = vpop.eup %2858  ;;  %v452_v15 = vmul.f32 %v2853_v12, %v451_v42  ;;  %v458_v29 = vmul.f32 %v2857_v59, %v440_v17  ;;  %vm464_vm4 = vweird.f32 %v2857_v59  ;;  %v470_v52 = vmul.f32 0.5, %v469_v24 }
 0x123   : > { %v478_v16 = vmul.f32 %v2859_v20, %v442_v49  ;;  %2860 = vrsqrt.f32 %v3450_v26  ;;  %vm465_vm6 = vmor %vm463_vm5, %vm464_vm4  ;;  %vm484_vm8 = vweird.f32 %v2859_v20  ;;  %vm493_vm13 = vweird.f32 %v3450_v26 }
 0x124   : > { %v459_v14 = vmul.f32 %v2857_v59, %v458_v29  ;;  %v456_v22 = vsel %vm455_vm3, %v2853_v12, %v452_v15  ;;  %2862 = vrsqrt.f32 %v3452_v25  ;;  %v3461_v29 = vld [vmem:[%s5001_s2] ss:$0 sm:$0xff]  ;;  %vm3477_vm11 = vmor %vm483_vm7, %vm484_vm8 }
 0x125   : > { %v479_v35 = vmul.f32 %v2859_v20, %v478_v16  ;;  %v527_v18 = vmul.f32 %v456_v22, %v3186_v32  ;;  %v3470_v32 = vld [vmem:[%s5001_s2 + $0x1] ss:$0 sm:$0xff] }
 0x126   : > { %v460_v38 = vmul.f32 0.5, %v459_v14  ;;  %v430_v12 = vpop.xlane.xlu0 %429 }
 0x127   : > { %v480_v42 = vmul.f32 0.5, %v479_v35  ;;  %v536_v14 = vmul.f32 %v3461_v29, %v527_v18  ;;  %v438_v24 = vmul.f32 0.25, %v430_v12 }
 0x128   : > { %v461_v30 = vsub.f32 1.5, %v460_v38  ;;  %v471_v38 = vsub.f32 1.5, %v470_v52 }
 0x129   : > { %v481_v13 = vsub.f32 1.5, %v480_v42  ;;  %v3463_v16 = vpop.eup %2860  ;;  %v545_v49 = vadd.f32 %v3470_v32, %v536_v14  ;;  %v446_v19 = vadd.f32 1e-06, %v438_v24 }
 0x12a   : > { %v462_v61 = vmul.f32 %v2857_v59, %v461_v30  ;;  %v428_v30 = vpop.xlane.xlu2 %427  ;;  %v2863_v17 = vpop.eup %2862  ;;  %vm494_vm14 = vweird.f32 %v3463_v16 }
 0x12b   : > { %v437_v18 = vmul.f32 0.25, %v428_v30  ;;  %v498_v12 = vmul.f32 %v2863_v17, %v3452_v25  ;;  %2864 = vrsqrt.f32 %v446_v19  ;;  %vm504_vm0 = vweird.f32 %v2863_v17  ;;  %vm495_vm1 = vmor %vm493_vm13, %vm494_vm14 }
 0x12c   : > { %v466_v15 = vsel %vm465_vm6, %v2857_v59, %v462_v61  ;;  %v488_v59 = vmul.f32 %v3463_v16, %v3450_v26  ;;  %v472_v61 = vmul.f32 %v3446_v27, %v471_v38  ;;  %vm505_vm2 = vmor %vm503_vm15, %vm504_vm0  ;;  %vm523_vm3 = vweird.f32 %v446_v19 }
 0x12d   : > { %v528_v35 = vmul.f32 %v466_v15, %v3203_v48  ;;  %v482_v48 = vmul.f32 %v2859_v20, %v481_v13  ;;  %v445_v37 = vadd.f32 1e-06, %v437_v18  ;;  %v499_v30 = vmul.f32 %v2863_v17, %v498_v12 }
 0x12e   : > { %v489_v13 = vmul.f32 %v3463_v16, %v488_v59  ;;  %v476_v14 = vsel %vm475_vm12, %v3446_v27, %v472_v61 }
 0x12f   : > { %v537_v22 = vmul.f32 %v3461_v29, %v528_v35  ;;  %v486_v35 = vsel %vm3477_vm11, %v2859_v20, %v482_v48  ;;  %2866 = vrsqrt.f32 %v445_v37  ;;  %v529_v36 = vmul.f32 %v476_v14, %v3183_v31 }
 0x130   : > { %v490_v38 = vmul.f32 0.5, %v489_v13  ;;  %v500_v24 = vmul.f32 0.5, %v499_v30  ;;  %vm513_vm5 = vweird.f32 %v445_v37 }
 0x131   : > { %v546_v52 = vadd.f32 %v3470_v32, %v537_v22  ;;  %v530_v22 = vmul.f32 %v486_v35, %v3199_v46  ;;  %v538_v20 = vmul.f32 %v3461_v29, %v529_v36 }
 0x132   : > { %v491_v59 = vsub.f32 1.5, %v490_v38  ;;  %v501_v48 = vsub.f32 1.5, %v500_v24 }
 0x133   : > { %v553_v15 = vpack.c.bf16 %v546_v52, %v545_v49  ;;  %v539_v49 = vmul.f32 %v3461_v29, %v530_v22  ;;  %v2865_v52 = vpop.eup %2864  ;;  %v547_v18 = vadd.f32 %v3470_v32, %v538_v20 }
 0x134   : > { %v492_v31 = vmul.f32 %v3463_v16, %v491_v59  ;;  %v518_v46 = vmul.f32 %v2865_v52, %v446_v19  ;;  %v502_v61 = vmul.f32 %v2863_v17, %v501_v48  ;;  %vm524_vm4 = vweird.f32 %v2865_v52 }
 0x135   : > { %645 = vmatmul.bf16.vlgmr.msra.gmra.mxu0 %v553_v15  ;;  %674 = vmatmul.bf16.vlgmr.msra.gmra.mxu1 %v553_v15  ;;  %v2867_v27 = vpop.eup %2866  ;;  %v548_v42 = vadd.f32 %v3470_v32, %v539_v49  ;;  %vm525_vm7 = vmor %vm523_vm3, %vm524_vm4 }
 0x136   : > { %v508_v12 = vmul.f32 %v2867_v27, %v445_v37  ;;  %v519_v15 = vmul.f32 %v2865_v52, %v518_v46  ;;  %v496_v26 = vsel %vm495_vm1, %v3463_v16, %v492_v31  ;;  %v506_v13 = vsel %vm505_vm2, %v2863_v17, %v502_v61 }
 0x137   : > { %v554_v36 = vpack.c.bf16 %v548_v42, %v547_v18  ;;  %v531_v25 = vmul.f32 %v496_v26, %v3212_v56  ;;  %v532_v14 = vmul.f32 %v506_v13, %v3196_v45  ;;  %vm514_vm6 = vweird.f32 %v2867_v27 }
 0x138   : > { %v509_v35 = vmul.f32 %v2867_v27, %v508_v12  ;;  %v520_v30 = vmul.f32 0.5, %v519_v15  ;;  %vm515_vm8 = vmor %vm513_vm5, %vm514_vm6 }
 0x139   : > { %v540_v38 = vmul.f32 %v3461_v29, %v531_v25  ;;  %v541_v49 = vmul.f32 %v3461_v29, %v532_v14 }
 0x13a   : > { %v510_v22 = vmul.f32 0.5, %v509_v35  ;;  %v521_v24 = vsub.f32 1.5, %v520_v30 }
 0x13b   : > { %v549_v16 = vadd.f32 %v3470_v32, %v540_v38  ;;  %v550_v56 = vadd.f32 %v3470_v32, %v541_v49 }
 0x13c   : > { %v511_v59 = vsub.f32 1.5, %v510_v22  ;;  %v522_v17 = vmul.f32 %v2865_v52, %v521_v24 }
 0x13d   : > { %v555_v45 = vpack.c.bf16 %v550_v56, %v549_v16 }
 0x13e   : > { %v512_v20 = vmul.f32 %v2867_v27, %v511_v59  ;;  %v526_v48 = vsel %vm525_vm7, %v2865_v52, %v522_v17  ;;  %v3515_v52 = vld [vmem:[%s5001_s2 + $0x2] ss:$0 sm:$0xff] }
 0x13f   : > { %v534_v31 = vmul.f32 %v526_v48, %v3224_v62 }
 0x140   : > { %v516_v42 = vsel %vm515_vm8, %v2867_v27, %v512_v20 }
 0x141   : > { %v533_v19 = vmul.f32 %v516_v42, %v3219_v60  ;;  %v543_v46 = vmul.f32 %v3461_v29, %v534_v31  ;;  %v2851_v60 = vld [vmem:[%s5001_s2 + $0x3] ss:$0 sm:$0xff] }
 0x143   : > { %v542_v37 = vmul.f32 %v3461_v29, %v533_v19  ;;  %v552_v18 = vadd.f32 %v3470_v32, %v543_v46 }
 0x145   : > { %650 = vmatmul.bf16.gmra.mxu0 %v554_v36  ;;  %679 = vmatmul.bf16.gmra.mxu1 %v554_v36  ;;  %v551_v61 = vadd.f32 %v3470_v32, %v542_v37 }
 0x147   : > { %v556_v12 = vpack.c.bf16 %v552_v18, %v551_v61 }
 0x155   : > { %655 = vmatmul.bf16.gmra.mxu0 %v555_v45  ;;  %684 = vmatmul.bf16.gmra.mxu1 %v555_v45 }
 0x165   : > { %660 = vmatmul.bf16.gmra.mxu0 %v556_v12  ;;  %689 = vmatmul.bf16.gmra.mxu1 %v556_v12 }
 0x1b2   : > { %v646_v62 = vpop.f32.mrf.mxu0  ;;  %v675_v27 = vpop.f32.mrf.mxu1 }
 0x1b3   : > { %v3521_v36 = vadd.f32 %v3515_v52, %v646_v62  ;;  %v3523_v15 = vadd.f32 %v2851_v60, %v675_v27 }
 0x1b5   : > { %5053 = vst [vmem:[#allocation26_spill] sm:$0xff] %v3523_v15 }
 0x1ba   : > { %v648_v26 = vpop.f32.mrf.mxu0  ;;  %v677_v13 = vpop.f32.mrf.mxu1 }
 0x1bb   : > { %v3526_v35 = vadd.f32 %v3515_v52, %v648_v26  ;;  %v3528_v25 = vadd.f32 %v2851_v60, %v677_v13 }
 0x1bd   : > { %5054 = vst [vmem:[#allocation27_spill] sm:$0xff] %v3528_v25 }
 0x1c2   : > { %v651_v30 = vpop.f32.mrf.mxu0  ;;  %v680_v14 = vpop.f32.mrf.mxu1 }
 0x1c3   : > { %v3531_v22 = vadd.f32 %v3515_v52, %v651_v30  ;;  %v3533_v38 = vadd.f32 %v2851_v60, %v680_v14 }
 0x1c5   : > { %5055 = vst [vmem:[#allocation28_spill] sm:$0xff] %v3533_v38 }
 0x1ca   : > { %v653_v24 = vpop.f32.mrf.mxu0  ;;  %v682_v49 = vpop.f32.mrf.mxu1 }
 0x1cb   : > { %v3536_v59 = vadd.f32 %v3515_v52, %v653_v24  ;;  %v3538_v16 = vadd.f32 %v2851_v60, %v682_v49 }
 0x1cd   : > { %5056 = vst [vmem:[#allocation29_spill] sm:$0xff] %v3538_v16 }
 0x1d2   : > { %v656_v17 = vpop.f32.mrf.mxu0  ;;  %v685_v56 = vpop.f32.mrf.mxu1 }
 0x1d3   : > { %v3541_v20 = vadd.f32 %v3515_v52, %v656_v17  ;;  %v3543_v45 = vadd.f32 %v2851_v60, %v685_v56 }
 0x1d5   : > { %5057 = vst [vmem:[#allocation30_spill] sm:$0xff] %v3543_v45 }
 0x1da   : > { %v658_v48 = vpop.f32.mrf.mxu0  ;;  %v687_v42 = vpop.f32.mrf.mxu1 }
 0x1db   : > { %v3546_v31 = vadd.f32 %v3515_v52, %v658_v48  ;;  %v3548_v19 = vadd.f32 %v2851_v60, %v687_v42 }
 0x1dd   : > { %5058 = vst [vmem:[#allocation31_spill] sm:$0xff] %v3548_v19 }
 0x1e2   : > { %v661_v46 = vpop.f32.mrf.mxu0  ;;  %v690_v37 = vpop.f32.mrf.mxu1 }
 0x1e3   : > { %v702_v18 = vadd.f32 %v3515_v52, %v661_v46  ;;  %v3551_v61 = vadd.f32 %v2851_v60, %v690_v37 }
 0x1e5   : > { %5059 = vst [vmem:[#allocation32_spill] sm:$0xff] %v3551_v61 }
 0x1ea   : > { %v663_v12 = vpop.f32.mrf.mxu0  ;;  %v692_v62 = vpop.f32.mrf.mxu1 }
 0x1eb   : > { %v703_v27 = vadd.f32 %v3515_v52, %v663_v12  ;;  %v3554_v26 = vadd.f32 %v2851_v60, %v692_v62 }
 0x1ed   : > { %5060 = vst [vmem:[#allocation33_spill] sm:$0xff] %v3554_v26 }
 0x1ee   : > { %3010 = dma.done.wait [#allocation4], 768 }
 0x1ef   : > { %3011 = vsyncadd [#allocation4], 4294966528  ;;  %729 = vadd.xlane.f32.xlu2 %v3122_v2  ;;  %896 = vadd.xlane.f32.xlu1 %v3133_v6 }
 0x1f0   : > { %3012 = dma.done.wait [#allocation4 + $0x1], 768 }
 0x1f1   : > { %3013 = vsyncadd [#allocation4 + $0x1], 4294966528  ;;  %725 = vadd.xlane.f32.xlu0 %v3118_v0  ;;  %866 = vmatpush.bf16.msra.mxu2 %v3237_v23  ;;  %v5061_v13 = vmov 0.0   ;;  %1082 = vst [vmem:[#allocation2 + $0x4b] sm:$0xff] %v3521_v36  ;;  %p2735_p9 = scmp.ne.s32.totalorder %s3016_s18, 0 }
 0x1f2   : > { %1061 = vst [vmem:[#allocation2] sm:$0x7] %v5061_v13  ;;  %1037 = vmatpush.bf16.msra.mxu3 %v3237_v23 }
 0x1f3   : > { %1062 = vst [vmem:[#allocation2 + $0x18] sm:$0x7] %v5061_v13 }
 0x1f4   : > { %1063 = vst [vmem:[#allocation2 + $0x30] sm:$0x7] %v5061_v13 }
 0x1f5   : > { %1064 = vst [vmem:[#allocation2 + $0x48] sm:$0x7] %v5061_v13  ;;  %867 = vmatpush.bf16.msra.mxu2 %v3252_v33 }
 0x1f6   : > { %1065 = vst [vmem:[#allocation2 + $0x60] sm:$0x7] %v5061_v13  ;;  %1038 = vmatpush.bf16.msra.mxu3 %v3252_v33 }
 0x1f7   : > { %1066 = vst [vmem:[#allocation2 + $0x78] sm:$0x7] %v5061_v13  ;;  %731 = vadd.xlane.f32.xlu2 %v3124_v3  ;;  %898 = vadd.xlane.f32.xlu1 %v3135_v7 }
 0x1f8   : > { %1067 = vst [vmem:[#allocation2 + $0x90] sm:$0x7] %v5061_v13 }
 0x1f9   : > { %1068 = vst [vmem:[#allocation2 + $0xa8] sm:$0x7] %v5061_v13  ;;  %727 = vadd.xlane.f32.xlu0 %v3120_v1  ;;  %868 = vmatpush.bf16.msra.mxu2 %v3267_v39 }
 0x1fa   : > { %1069 = vst [vmem:[#allocation2 + $0xc0] sm:$0x7] %v5061_v13  ;;  %1039 = vmatpush.bf16.msra.mxu3 %v3267_v39 }
 0x1fb   : > { %1070 = vst [vmem:[#allocation2 + $0xd8] sm:$0x7] %v5061_v13 }
 0x1fc   : > { %1071 = vst [vmem:[#allocation2 + $0x13] sm:$0x7] %v5061_v13 }
 0x1fd   : > { %1072 = vst [vmem:[#allocation2 + $0x2b] sm:$0x7] %v5061_v13  ;;  %869 = vmatpush.bf16.msra.mxu2 %v3282_v47 }
 0x1fe   : > { %1073 = vst [vmem:[#allocation2 + $0x43] sm:$0x7] %v5061_v13  ;;  %1040 = vmatpush.bf16.msra.mxu3 %v3282_v47 }
 0x1ff   : > { %1074 = vst [vmem:[#allocation2 + $0x5b] sm:$0x7] %v5061_v13  ;;  %733 = vadd.xlane.f32.xlu2 %v3126_v4  ;;  %902 = vadd.xlane.f32.xlu1 %v3139_v9 }
 0x200   : > { %1075 = vst [vmem:[#allocation2 + $0x73] sm:$0x7] %v5061_v13 }
 0x201   : > { %1076 = vst [vmem:[#allocation2 + $0x8b] sm:$0x7] %v5061_v13  ;;  %900 = vadd.xlane.f32.xlu0 %v3137_v8  ;;  %870 = vmatpush.bf16.msra.mxu2 %v3297_v54 }
 0x202   : > { %1077 = vst [vmem:[#allocation2 + $0xa3] sm:$0x7] %v5061_v13  ;;  %1041 = vmatpush.bf16.msra.mxu3 %v3297_v54 }
 0x203   : > { %1078 = vst [vmem:[#allocation2 + $0xbb] sm:$0x7] %v5061_v13 }
 0x204   : > { %1079 = vst [vmem:[#allocation2 + $0xd3] sm:$0x7] %v5061_v13 }
 0x205   : > { %1080 = vst [vmem:[#allocation2 + $0xeb] sm:$0x7] %v5061_v13  ;;  %871 = vmatpush.bf16.msra.mxu2 %v3312_v63 }
 0x206   : > { %1042 = vmatpush.bf16.msra.mxu3 %v3312_v63  ;;  %1083 = vst [vmem:[#allocation2 + $0x53] sm:$0xff] %v3526_v35 }
 0x207   : > { %1084 = vst [vmem:[#allocation2 + $0x63] sm:$0xff] %v3531_v22  ;;  %906 = vadd.xlane.f32.xlu2 %v3143_v11  ;;  %904 = vadd.xlane.f32.xlu1 %v3141_v10 }
 0x208   : > { %1085 = vst [vmem:[#allocation2 + $0x6b] sm:$0xff] %v3536_v59 }
 0x209   : > { %735 = vadd.xlane.f32.xlu0 %v3128_v5  ;;  %872 = vmatpush.bf16.msra.mxu2 %v3425_v34  ;;  %1086 = vst [vmem:[#allocation2 + $0x7b] sm:$0xff] %v3541_v20 }
 0x20a   : > { %1043 = vmatpush.bf16.msra.mxu3 %v3425_v34  ;;  %1087 = vst [vmem:[#allocation2 + $0x83] sm:$0xff] %v3546_v31 }
 0x20b   : > { %1088 = vst [vmem:[#allocation2 + $0x93] sm:$0xff] %v702_v18 }
 0x20c   : > { %1089 = vst [vmem:[#allocation2 + $0x9b] sm:$0xff] %v703_v27 }
 0x20d   : > { %873 = vmatpush.bf16.msra.mxu2 %v3442_v21 }
 0x20e   : > { %1044 = vmatpush.bf16.msra.mxu3 %v3442_v21 }
 0x262   : > { %v730_v23 = vpop.xlane.xlu2 %729  ;;  %v897_v33 = vpop.xlane.xlu1 %896 }
 0x263   : > { %v908_v39 = vmul.f32 0.25, %v897_v33 }
 0x264   : > { %v726_v47 = vpop.xlane.xlu0 %725 }
 0x265   : > { %v737_v54 = vmul.f32 0.25, %v726_v47  ;;  %v914_v63 = vsub.f32 %v3133_v6, %v908_v39  ;;  %v739_v6 = vmul.f32 0.25, %v730_v23 }
 0x267   : > { %v743_v60 = vsub.f32 %v3118_v0, %v737_v54  ;;  %v3613_v36 = vmul.f32 %v3178_v28, %v914_v63  ;;  %v745_v42 = vsub.f32 %v3122_v2, %v739_v6 }
 0x269   : > { %v3616_v34 = vmul.f32 %v3178_v28, %v743_v60  ;;  %v926_v35 = vmul.f32 %v3613_v36, %v3613_v36  ;;  %v3642_v62 = vmul.f32 %v3178_v28, %v745_v42 }
 0x26a   : > { %v732_v30 = vpop.xlane.xlu2 %731  ;;  %v899_v21 = vpop.xlane.xlu1 %898 }
 0x26b   : > { %v755_v14 = vmul.f32 %v3616_v34, %v3616_v34  ;;  %v740_v22 = vmul.f32 0.25, %v732_v30  ;;  %v909_v24 = vmul.f32 0.25, %v899_v21  ;;  %932 = vadd.xlane.f32.xlu2 %v926_v35  ;;  %v757_v54 = vmul.f32 %v3642_v62, %v3642_v62 }
 0x26c   : > { %v728_v49 = vpop.xlane.xlu0 %727 }
 0x26d   : > { %v738_v0 = vmul.f32 0.25, %v728_v49  ;;  %761 = vadd.xlane.f32.xlu0 %v755_v14  ;;  %v746_v59 = vsub.f32 %v3124_v3, %v740_v22  ;;  %v915_v17 = vsub.f32 %v3135_v7, %v909_v24 }
 0x26f   : > { %v744_v56 = vsub.f32 %v3120_v1, %v738_v0  ;;  %v3626_v20 = vmul.f32 %v3178_v28, %v746_v59  ;;  %v3629_v48 = vmul.f32 %v3178_v28, %v915_v17 }
 0x271   : > { %v3633_v31 = vmul.f32 %v3178_v28, %v744_v56  ;;  %v758_v46 = vmul.f32 %v3626_v20, %v3626_v20  ;;  %v927_v3 = vmul.f32 %v3629_v48, %v3629_v48 }
 0x272   : > { %v734_v7 = vpop.xlane.xlu2 %733  ;;  %v903_v37 = vpop.xlane.xlu1 %902 }
 0x273   : > { %v756_v1 = vmul.f32 %v3633_v31, %v3633_v31  ;;  %v741_v18 = vmul.f32 0.25, %v734_v7  ;;  %767 = vadd.xlane.f32.xlu2 %v758_v46  ;;  %v911_v27 = vmul.f32 0.25, %v903_v37 }
 0x274   : > { %v901_v12 = vpop.xlane.xlu0 %900 }
 0x275   : > { %v910_v2 = vmul.f32 0.25, %v901_v12  ;;  %934 = vadd.xlane.f32.xlu0 %v927_v3  ;;  %763 = vadd.xlane.f32.xlu1 %v756_v1  ;;  %v747_v13 = vsub.f32 %v3126_v4, %v741_v18  ;;  %v917_v47 = vsub.f32 %v3139_v9, %v911_v27 }
 0x277   : > { %v916_v23 = vsub.f32 %v3137_v8, %v910_v2  ;;  %v3647_v33 = vmul.f32 %v3178_v28, %v747_v13  ;;  %v3660_v21 = vmul.f32 %v3178_v28, %v917_v47 }
 0x279   : > { %v3650_v39 = vmul.f32 %v3178_v28, %v916_v23  ;;  %v759_v63 = vmul.f32 %v3647_v33, %v3647_v33  ;;  %v929_v59 = vmul.f32 %v3660_v21, %v3660_v21 }
 0x27a   : > { %v907_v60 = vpop.xlane.xlu2 %906  ;;  %v905_v35 = vpop.xlane.xlu1 %904 }
 0x27b   : > { %v928_v4 = vmul.f32 %v3650_v39, %v3650_v39  ;;  %v913_v8 = vmul.f32 0.25, %v907_v60  ;;  %769 = vadd.xlane.f32.xlu2 %v759_v63  ;;  %v912_v9 = vmul.f32 0.25, %v905_v35 }
 0x27c   : > { %v736_v30 = vpop.xlane.xlu0 %735 }
 0x27d   : > { %v742_v14 = vmul.f32 0.25, %v736_v30  ;;  %765 = vadd.xlane.f32.xlu1 %v757_v54  ;;  %936 = vadd.xlane.f32.xlu0 %v928_v4  ;;  %v919_v22 = vsub.f32 %v3143_v11, %v913_v8  ;;  %v918_v0 = vsub.f32 %v3141_v10, %v912_v9 }
 0x27f   : > { %v748_v24 = vsub.f32 %v3128_v5, %v742_v14  ;;  %v3665_v49 = vmul.f32 %v3178_v28, %v919_v22  ;;  %v3678_v5 = vmul.f32 %v3178_v28, %v918_v0 }
 0x281   : > { %v3668_v6 = vmul.f32 %v3178_v28, %v748_v24  ;;  %v931_v17 = vmul.f32 %v3665_v49, %v3665_v49  ;;  %v930_v11 = vmul.f32 %v3678_v5, %v3678_v5 }
 0x283   : > { %v760_v56 = vmul.f32 %v3668_v6, %v3668_v6  ;;  %942 = vadd.xlane.f32.xlu2 %v931_v17 }
 0x285   : > { %938 = vadd.xlane.f32.xlu1 %v929_v59  ;;  %771 = vadd.xlane.f32.xlu0 %v760_v56 }
 0x28d   : > { %940 = vadd.xlane.f32.xlu1 %v930_v11 }
 0x2de   : > { %v933_v10 = vpop.xlane.xlu2 %932 }
 0x2df   : > { %v944_v42 = vmul.f32 0.25, %v933_v10 }
 0x2e0   : > { %v762_v46 = vpop.xlane.xlu0 %761 }
 0x2e1   : > { %v773_v3 = vmul.f32 0.25, %v762_v46  ;;  %v3682_v7 = vadd.f32 1e-06, %v944_v42 }
 0x2e3   : > { %v779_v1 = vadd.f32 1e-06, %v773_v3  ;;  %2868 = vrsqrt.f32 %v3682_v7  ;;  %vm962_vm9 = vweird.f32 %v3682_v7 }
 0x2e5   : > { %2870 = vrsqrt.f32 %v779_v1  ;;  %vm791_vm11 = vweird.f32 %v779_v1 }
 0x2e6   : > { %v768_v37 = vpop.xlane.xlu2 %767 }
 0x2e7   : > { %v776_v18 = vmul.f32 0.25, %v768_v37 }
 0x2e8   : > { %v764_v28 = vpop.xlane.xlu1 %763  ;;  %v935_v12 = vpop.xlane.xlu0 %934 }
 0x2e9   : > { %v774_v2 = vmul.f32 0.25, %v764_v28  ;;  %v945_v27 = vmul.f32 0.25, %v935_v12  ;;  %v3685_v13 = vpop.eup %2868  ;;  %v3691_v54 = vadd.f32 1e-06, %v776_v18 }
 0x2ea   : > { %v957_v47 = vmul.f32 %v3685_v13, %v3682_v7  ;;  %vm963_vm12 = vweird.f32 %v3685_v13 }
 0x2eb   : > { %v3687_v23 = vpop.eup %2870  ;;  %v3693_v63 = vadd.f32 1e-06, %v774_v2  ;;  %v3695_v60 = vadd.f32 1e-06, %v945_v27  ;;  %vm3761_vm1 = vmor %vm962_vm9, %vm963_vm12  ;;  %vm821_vm5 = vweird.f32 %v3691_v54 }
 0x2ec   : > { %v786_v4 = vmul.f32 %v3687_v23, %v779_v1  ;;  %v958_v8 = vmul.f32 %v3685_v13, %v957_v47  ;;  %vm792_vm10 = vweird.f32 %v3687_v23 }
 0x2ed   : > { %2872 = vrsqrt.f32 %v3693_v63  ;;  %vm801_vm13 = vweird.f32 %v3693_v63  ;;  %vm3734_vm14 = vmor %vm791_vm11, %vm792_vm10  ;;  %vm972_vm0 = vweird.f32 %v3695_v60 }
 0x2ee   : > { %v787_v35 = vmul.f32 %v3687_v23, %v786_v4  ;;  %2874 = vrsqrt.f32 %v3695_v60  ;;  %v770_v30 = vpop.xlane.xlu2 %769  ;;  %v959_v17 = vmul.f32 0.5, %v958_v8 }
 0x2ef   : > { %2876 = vrsqrt.f32 %v3691_v54  ;;  %v777_v3 = vmul.f32 0.25, %v770_v30 }
 0x2f0   : > { %v788_v14 = vmul.f32 0.5, %v787_v35  ;;  %v766_v9 = vpop.xlane.xlu1 %765  ;;  %v937_v22 = vpop.xlane.xlu0 %936  ;;  %v960_v12 = vsub.f32 1.5, %v959_v17 }
 0x2f1   : > { %v775_v24 = vmul.f32 0.25, %v766_v9  ;;  %v946_v0 = vmul.f32 0.25, %v937_v22  ;;  %v3725_v35 = vadd.f32 1e-06, %v777_v3 }
 0x2f2   : > { %v789_v42 = vsub.f32 1.5, %v788_v14 }
 0x2f3   : > { %v3703_v59 = vpop.eup %2872  ;;  %v3705_v56 = vadd.f32 1e-06, %v775_v24  ;;  %v3707_v11 = vadd.f32 1e-06, %v946_v0 }
 0x2f4   : > { %v3709_v10 = vpop.eup %2874  ;;  %v796_v46 = vmul.f32 %v3703_v59, %v3693_v63  ;;  %v790_v14 = vmul.f32 %v3687_v23, %v789_v42  ;;  %vm802_vm15 = vweird.f32 %v3703_v59 }
 0x2f5   : > { %v3713_v37 = vpop.eup %2876  ;;  %v967_v18 = vmul.f32 %v3709_v10, %v3695_v60  ;;  %2878 = vrsqrt.f32 %v3705_v56  ;;  %vm973_vm2 = vweird.f32 %v3709_v10  ;;  %vm803_vm3 = vmor %vm801_vm13, %vm802_vm15  ;;  %vm811_vm7 = vweird.f32 %v3705_v56 }
 0x2f6   : > { %v797_v28 = vmul.f32 %v3703_v59, %v796_v46  ;;  %2880 = vrsqrt.f32 %v3707_v11  ;;  %v943_v27 = vpop.xlane.xlu2 %942  ;;  %v816_v47 = vmul.f32 %v3713_v37, %v3691_v54  ;;  %vm3784_vm4 = vmor %vm972_vm0, %vm973_vm2  ;;  %vm822_vm6 = vweird.f32 %v3713_v37 }
 0x2f7   : > { %v968_v2 = vmul.f32 %v3709_v10, %v967_v18  ;;  %v949_v22 = vmul.f32 0.25, %v943_v27  ;;  %v961_v18 = vmul.f32 %v3685_v13, %v960_v12  ;;  %2882 = vrsqrt.f32 %v3725_v35  ;;  %vm3819_vm9 = vmor %vm821_vm5, %vm822_vm6 }
 0x2f8   : > { %v798_v4 = vmul.f32 0.5, %v797_v28  ;;  %v939_v8 = vpop.xlane.xlu1 %938  ;;  %v772_v30 = vpop.xlane.xlu0 %771  ;;  %vm982_vm10 = vweird.f32 %v3707_v11 }
 0x2f9   : > { %v969_v9 = vmul.f32 0.5, %v968_v2  ;;  %v947_v24 = vmul.f32 0.25, %v939_v8  ;;  %v778_v17 = vmul.f32 0.25, %v772_v30  ;;  %v817_v2 = vmul.f32 %v3713_v37, %v816_v47 }
 0x2fa   : > { %v799_v0 = vsub.f32 1.5, %v798_v4  ;;  %v794_v4 = vsel %vm3734_vm14, %v3687_v23, %v790_v14  ;;  %v3754_v30 = vadd.f32 1e-06, %v949_v22  ;;  %v965_v22 = vsel %vm3761_vm1, %v3685_v13, %v961_v18 }
 0x2fb   : > { %v3730_v46 = vpop.eup %2878  ;;  %v970_v1 = vsub.f32 1.5, %v969_v9  ;;  %v3739_v42 = vadd.f32 1e-06, %v947_v24  ;;  %v3767_v47 = vadd.f32 1e-06, %v778_v17  ;;  %v845_v7 = vmul.f32 %v794_v4, %v3616_v34 }
 0x2fc   : > { %v3742_v28 = vpop.eup %2880  ;;  %v806_v27 = vmul.f32 %v3730_v46, %v3705_v56  ;;  %v800_v14 = vmul.f32 %v3703_v59, %v799_v0  ;;  %v818_v3 = vmul.f32 0.5, %v817_v2  ;;  %v1016_v60 = vmul.f32 %v965_v22, %v3613_v36 }
 0x2fd   : > { %v977_v8 = vmul.f32 %v3742_v28, %v3707_v11  ;;  %2884 = vrsqrt.f32 %v3739_v42  ;;  %v971_v24 = vmul.f32 %v3709_v10, %v970_v1  ;;  %v3790_v1 = vpop.eup %2882  ;;  %v851_v2 = vmul.f32 %v3461_v29, %v845_v7 }
 0x2fe   : > { %v807_v23 = vmul.f32 %v3730_v46, %v806_v27  ;;  %2886 = vrsqrt.f32 %v3767_v47  ;;  %v804_v27 = vsel %vm803_vm3, %v3703_v59, %v800_v14  ;;  %vm812_vm8 = vweird.f32 %v3730_v46 }
 0x2ff   : > { %v978_v9 = vmul.f32 %v3742_v28, %v977_v8  ;;  %2888 = vrsqrt.f32 %v3754_v30  ;;  %v846_v13 = vmul.f32 %v804_v27, %v3633_v31  ;;  %v975_v59 = vsel %vm3784_vm4, %v3709_v10, %v971_v24  ;;  %vm3833_vm11 = vmor %vm811_vm7, %vm812_vm8 }
 0x300   : > { %v808_v17 = vmul.f32 0.5, %v807_v23  ;;  %v941_v0 = vpop.xlane.xlu1 %940  ;;  %v819_v31 = vsub.f32 1.5, %v818_v3  ;;  %v857_v36 = vadd.f32 %v3470_v32, %v851_v2  ;;  %v1017_v10 = vmul.f32 %v975_v59, %v3629_v48 }
 0x301   : > { %v979_v34 = vmul.f32 0.5, %v978_v9  ;;  %v948_v4 = vmul.f32 0.25, %v941_v0  ;;  %v852_v14 = vmul.f32 %v3461_v29, %v846_v13  ;;  %v1022_v3 = vmul.f32 %v3461_v29, %v1016_v60 }
 0x302   : > { %v809_v18 = vsub.f32 1.5, %v808_v17  ;;  %v826_v48 = vmul.f32 %v3790_v1, %v3725_v35  ;;  %vm983_vm12 = vweird.f32 %v3742_v28  ;;  %v820_v56 = vmul.f32 %v3713_v37, %v819_v31 }
 0x303   : > { %v2885_v8 = vpop.eup %2884  ;;  %v3800_v12 = vadd.f32 1e-06, %v948_v4  ;;  %v980_v9 = vsub.f32 1.5, %v979_v34  ;;  %v858_v24 = vadd.f32 %v3470_v32, %v852_v14  ;;  %v1023_v34 = vmul.f32 %v3461_v29, %v1017_v10  ;;  %vm984_vm14 = vmor %vm982_vm10, %vm983_vm12 }
 0x304   : > { %v987_v23 = vmul.f32 %v2885_v8, %v3739_v42  ;;  %v3808_v7 = vpop.eup %2886  ;;  %v810_v17 = vmul.f32 %v3730_v46, %v809_v18  ;;  %v1028_v18 = vadd.f32 %v3470_v32, %v1022_v3  ;;  %vm993_vm13 = vweird.f32 %v2885_v8 }
 0x305   : > { %2890 = vrsqrt.f32 %v3800_v12  ;;  %v3813_v0 = vpop.eup %2888  ;;  %v836_v63 = vmul.f32 %v3808_v7, %v3767_v47  ;;  %v863_v13 = vpack.c.bf16 %v858_v24, %v857_v36  ;;  %v1029_v59 = vadd.f32 %v3470_v32, %v1023_v34 }
 0x306   : > { %v988_v22 = vmul.f32 %v2885_v8, %v987_v23  ;;  %v814_v60 = vsel %vm3833_vm11, %v3730_v46, %v810_v17  ;;  %v1007_v23 = vmul.f32 %v3813_v0, %v3754_v30  ;;  %v981_v10 = vmul.f32 %v3742_v28, %v980_v9 }
 0x307   : > { %v837_v2 = vmul.f32 %v3808_v7, %v836_v63  ;;  %874 = vmatmul.bf16.vlgmr.msra.gmra.mxu2 %v863_v13  ;;  %v1034_v24 = vpack.c.bf16 %v1029_v59, %v1028_v18  ;;  %v824_v3 = vsel %vm3819_vm9, %v3713_v37, %v820_v56  ;;  %v847_v31 = vmul.f32 %v814_v60, %v3642_v62 }
 0x308   : > { %v989_v4 = vmul.f32 0.5, %v988_v22  ;;  %v827_v22 = vmul.f32 %v3790_v1, %v826_v48  ;;  %vm992_vm15 = vweird.f32 %v3739_v42  ;;  %v985_v17 = vsel %vm984_vm14, %v3742_v28, %v981_v10 }
 0x309   : > { %v838_v9 = vmul.f32 0.5, %v837_v2  ;;  %1045 = vmatmul.bf16.vlgmr.msra.gmra.mxu3 %v1034_v24  ;;  %v1008_v63 = vmul.f32 %v3813_v0, %v1007_v23  ;;  %vm994_vm0 = vmor %vm992_vm15, %vm993_vm13  ;;  %v848_v27 = vmul.f32 %v824_v3, %v3626_v20  ;;  %v1018_v54 = vmul.f32 %v985_v17, %v3650_v39 }
 0x30a   : > { %v990_v14 = vsub.f32 1.5, %v989_v4  ;;  %v828_v34 = vmul.f32 0.5, %v827_v22  ;;  %v853_v62 = vmul.f32 %v3461_v29, %v847_v31  ;;  %vm841_vm1 = vweird.f32 %v3767_v47 }
 0x30b   : > { %v2891_v36 = vpop.eup %2890  ;;  %v839_v13 = vsub.f32 1.5, %v838_v9  ;;  %v1009_v18 = vmul.f32 0.5, %v1008_v63  ;;  %v854_v28 = vmul.f32 %v3461_v29, %v848_v27  ;;  %vm842_vm2 = vweird.f32 %v3808_v7 }
 0x30c   : > { %v997_v46 = vmul.f32 %v2891_v36, %v3800_v12  ;;  %v991_v48 = vmul.f32 %v2885_v8, %v990_v14  ;;  %v829_v59 = vsub.f32 1.5, %v828_v34  ;;  %v1024_v20 = vmul.f32 %v3461_v29, %v1018_v54  ;;  %vm3875_vm5 = vmor %vm841_vm1, %vm842_vm2 }
 0x30d   : > { %v859_v39 = vadd.f32 %v3470_v32, %v853_v62  ;;  %vm831_vm3 = vweird.f32 %v3725_v35  ;;  %vm832_vm4 = vweird.f32 %v3790_v1  ;;  %v1010_v56 = vsub.f32 1.5, %v1009_v18 }
 0x30e   : > { %v998_v37 = vmul.f32 %v2891_v36, %v997_v46  ;;  %v995_v11 = vsel %vm994_vm0, %v2885_v8, %v991_v48  ;;  %v860_v47 = vadd.f32 %v3470_v32, %v854_v28  ;;  %vm1012_vm6 = vweird.f32 %v3754_v30  ;;  %vm833_vm8 = vmor %vm831_vm3, %vm832_vm4 }
 0x30f   : > { %v1019_v42 = vmul.f32 %v995_v11, %v3660_v21  ;;  %v840_v21 = vmul.f32 %v3808_v7, %v839_v13  ;;  %vm1013_vm7 = vweird.f32 %v3813_v0  ;;  %v1030_v14 = vadd.f32 %v3470_v32, %v1024_v20 }
 0x310   : > { %v999_v4 = vmul.f32 0.5, %v998_v37  ;;  %v830_v35 = vmul.f32 %v3790_v1, %v829_v59  ;;  %vm1002_vm9 = vweird.f32 %v3800_v12  ;;  %vm1003_vm10 = vweird.f32 %v2891_v36  ;;  %vm1014_vm11 = vmor %vm1012_vm6, %vm1013_vm7 }
 0x311   : > { %v1025_v2 = vmul.f32 %v3461_v29, %v1019_v42  ;;  %v864_v22 = vpack.c.bf16 %v860_v47, %v859_v39  ;;  %v844_v3 = vsel %vm3875_vm5, %v3808_v7, %v840_v21  ;;  %v1011_v46 = vmul.f32 %v3813_v0, %v1010_v56  ;;  %vm1004_vm12 = vmor %vm1002_vm9, %vm1003_vm10 }
 0x312   : > { %v1000_v8 = vsub.f32 1.5, %v999_v4  ;;  %v834_v30 = vsel %vm833_vm8, %v3790_v1, %v830_v35  ;;  %v850_v31 = vmul.f32 %v844_v3, %v3668_v6 }
 0x313   : > { %v1031_v60 = vadd.f32 %v3470_v32, %v1025_v2  ;;  %v849_v12 = vmul.f32 %v834_v30, %v3647_v33  ;;  %v1015_v17 = vsel %vm1014_vm11, %v3813_v0, %v1011_v46 }
 0x314   : > { %v1001_v10 = vmul.f32 %v2891_v36, %v1000_v8  ;;  %v856_v63 = vmul.f32 %v3461_v29, %v850_v31  ;;  %v1021_v7 = vmul.f32 %v1015_v17, %v3665_v49 }
 0x315   : > { %v1035_v24 = vpack.c.bf16 %v1031_v60, %v1030_v14  ;;  %v855_v37 = vmul.f32 %v3461_v29, %v849_v12 }
 0x316   : > { %v1005_v9 = vsel %vm1004_vm12, %v2891_v36, %v1001_v10  ;;  %v862_v1 = vadd.f32 %v3470_v32, %v856_v63  ;;  %v1027_v6 = vmul.f32 %v3461_v29, %v1021_v7 }
 0x317   : > { %879 = vmatmul.bf16.gmra.mxu2 %v864_v22  ;;  %v1020_v48 = vmul.f32 %v1005_v9, %v3678_v5  ;;  %v861_v36 = vadd.f32 %v3470_v32, %v855_v37 }
 0x318   : > { %v1033_v0 = vadd.f32 %v3470_v32, %v1027_v6 }
 0x319   : > { %1050 = vmatmul.bf16.gmra.mxu3 %v1035_v24  ;;  %v1026_v27 = vmul.f32 %v3461_v29, %v1020_v48  ;;  %v865_v34 = vpack.c.bf16 %v862_v1, %v861_v36 }
 0x31b   : > { %v1032_v33 = vadd.f32 %v3470_v32, %v1026_v27 }
 0x31d   : > { %v1036_v5 = vpack.c.bf16 %v1033_v0, %v1032_v33 }
 0x327   : > { %884 = vmatmul.bf16.gmra.mxu2 %v865_v34 }
 0x329   : > { %1055 = vmatmul.bf16.gmra.mxu3 %v1036_v5 }
 0x38a   : > { %v875_v11 = vpop.f32.mrf.mxu2 }
 0x38b   : > { %v876_v49 = vadd.f32 %v3515_v52, %v875_v11 }
 0x38c   : > { %v1046_v54 = vpop.f32.mrf.mxu3 }
 0x38d   : > { %1090 = vst [vmem:[#allocation2 + $0x3] sm:$0xff] %v876_v49  ;;  %v1047_v4 = vadd.f32 %v3515_v52, %v1046_v54 }
 0x38f   : > { %1097 = vst [vmem:[#allocation2 + $0xab] sm:$0xff] %v1047_v4 }
 0x392   : > { %v877_v62 = vpop.f32.mrf.mxu2 }
 0x393   : > { %v878_v29 = vadd.f32 %v3515_v52, %v877_v62 }
 0x394   : > { %v1048_v42 = vpop.f32.mrf.mxu3 }
 0x395   : > { %1091 = vst [vmem:[#allocation2 + $0xb] sm:$0xff] %v878_v29  ;;  %v1049_v13 = vadd.f32 %v3515_v52, %v1048_v42 }
 0x397   : > { %1098 = vst [vmem:[#allocation2 + $0xb3] sm:$0xff] %v1049_v13 }
 0x39a   : > { %v880_v32 = vpop.f32.mrf.mxu2 }
 0x39b   : > { %v881_v18 = vadd.f32 %v3515_v52, %v880_v32 }
 0x39c   : > { %v1051_v28 = vpop.f32.mrf.mxu3 }
 0x39d   : > { %1092 = vst [vmem:[#allocation2 + $0x1b] sm:$0xff] %v881_v18  ;;  %v1052_v2 = vadd.f32 %v3515_v52, %v1051_v28 }
 0x39f   : > { %1099 = vst [vmem:[#allocation2 + $0xc3] sm:$0xff] %v1052_v2 }
 0x3a2   : > { %v882_v59 = vpop.f32.mrf.mxu2 }
 0x3a3   : > { %v883_v20 = vadd.f32 %v3515_v52, %v882_v59 }
 0x3a4   : > { %v1053_v8 = vpop.f32.mrf.mxu3 }
 0x3a5   : > { %1093 = vst [vmem:[#allocation2 + $0x23] sm:$0xff] %v883_v20  ;;  %v1054_v39 = vadd.f32 %v3515_v52, %v1053_v8 }
 0x3a7   : > { %1100 = vst [vmem:[#allocation2 + $0xcb] sm:$0xff] %v1054_v39 }
 0x3aa   : > { %v885_v21 = vpop.f32.mrf.mxu2 }
 0x3ab   : > { %v886_v60 = vadd.f32 %v3515_v52, %v885_v21 }
 0x3ac   : > { %v1056_v56 = vpop.f32.mrf.mxu3 }
 0x3ad   : > { %1094 = vst [vmem:[#allocation2 + $0x33] sm:$0xff] %v886_v60  ;;  %v1057_v23 = vadd.f32 %v3515_v52, %v1056_v56 }
 0x3af   : > { %1101 = vst [vmem:[#allocation2 + $0xdb] sm:$0xff] %v1057_v23 }
 0x3b2   : > { %v887_v47 = vpop.f32.mrf.mxu2 }
 0x3b3   : > { %v888_v14 = vadd.f32 %v3515_v52, %v887_v47  ;;  %1106 = sbr.rel (%p2735_p9) target bundleno = 962 (0x3c2), region = 78 }
 0x3b4   : > { %v1058_v35 = vpop.f32.mrf.mxu3 }
 0x3b5   : > { %1095 = vst [vmem:[#allocation2 + $0x3b] sm:$0xff] %v888_v14  ;;  %v1059_v10 = vadd.f32 %v3515_v52, %v1058_v35 }
 0x3b7   : > { %1102 = vst [vmem:[#allocation2 + $0xe3] sm:$0xff] %v1059_v10 }
 0x3b8   : > { %v3035_v22 = vmov 0.0  }
 0x3b9   : > { %1107 = vst [vmem:[#allocation2] sm:$0xff] %v3035_v22 }
 0x3ba   : > { %1108 = vst [vmem:[#allocation2 + $0x8] sm:$0xff] %v3035_v22 }
 0x3bb   : > { %1109 = vst [vmem:[#allocation2 + $0x10] sm:$0x3f] %v3035_v22 }
 0x3bc   : > { %1110 = vst [vmem:[#allocation2 + $0x18] sm:$0xff] %v3035_v22 }
 0x3bd   : > { %1111 = vst [vmem:[#allocation2 + $0x20] sm:$0xff] %v3035_v22 }
 0x3be   : > { %1112 = vst [vmem:[#allocation2 + $0x28] sm:$0x3f] %v3035_v22 }
 0x3bf   : > { %1113 = vst [vmem:[#allocation2 + $0x30] sm:$0xff] %v3035_v22 }
 0x3c0   : > { %1114 = vst [vmem:[#allocation2 + $0x38] sm:$0xff] %v3035_v22 }
 0x3c1   : > { %1115 = vst [vmem:[#allocation2 + $0x40] sm:$0x3f] %v3035_v22 }
 0x3c2 PF: > { %p2736_p10 = scmp.ne.s32.totalorder %s3016_s18, 3 }
 0x3c4   : > { %1119 = sbr.rel (%p2736_p10) target bundleno = 979 (0x3d3), region = 82 }
 0x3c9   : > { %v3036_v24 = vmov 0.0  }
 0x3ca   : > { %1120 = vst [vmem:[#allocation2 + $0xa8] sm:$0xff] %v3036_v24 }
 0x3cb   : > { %1121 = vst [vmem:[#allocation2 + $0xb0] sm:$0xff] %v3036_v24 }
 0x3cc   : > { %1122 = vst [vmem:[#allocation2 + $0xb8] sm:$0x3f] %v3036_v24 }
 0x3cd   : > { %1123 = vst [vmem:[#allocation2 + $0xc0] sm:$0xff] %v3036_v24 }
 0x3ce   : > { %1124 = vst [vmem:[#allocation2 + $0xc8] sm:$0xff] %v3036_v24 }
 0x3cf   : > { %1125 = vst [vmem:[#allocation2 + $0xd0] sm:$0x3f] %v3036_v24 }
 0x3d0   : > { %1126 = vst [vmem:[#allocation2 + $0xd8] sm:$0xff] %v3036_v24 }
 0x3d1   : > { %1127 = vst [vmem:[#allocation2 + $0xe0] sm:$0xff] %v3036_v24 }
 0x3d2   : > { %1128 = vst [vmem:[#allocation2 + $0xe8] sm:$0x3f] %v3036_v24 }
 0x3d3 PF: > { %v2768_v52 = vor.u32 %v3411_v58, %v3406_v57  ;;  %v1129_v3 = vld [vmem:[#allocation2] sm:$0xff]  ;;  %v1130_v46 = vld [vmem:[#allocation2 + $0x8] sm:$0xff]  ;;  %v2764_v12 = vor.u32 %v3401_v55, %v3396_v53  ;;  %v2760_v0 = vor.u32 %v3391_v51, %v3386_v50  ;;  %v2756_v18 = vor.u32 %v3381_v44, %v3376_v43  ;;  %v1304_v60 = vld [vmem:[#allocation2 + $0x18] sm:$0xff] }
 0x3d4   : > { %v3922_v30 = vld [vmem:[%s5003_s4] ss:$0 sm:$0xff]  ;;  %v1147_v31 = vld [vmem:[#allocation2 + $0x1] sm:$0xff]  ;;  %v1148_v9 = vld [vmem:[#allocation2 + $0x9] sm:$0xff]  ;;  %v2752_v10 = vor.u32 %v3371_v41, %v3366_v40 }
 0x3d5   : > { %2470 = vmatpush.bf16.msrb.mxu2 %v2768_v52  ;;  %2797 = vmatpush.bf16.msrb.mxu3 %v2768_v52  ;;  %v3929_v17 = vld [vmem:[%s5003_s4 + $0x1] ss:$0 sm:$0xff]  ;;  %v1173_v57 = vld [vmem:[#allocation2 + $0x2] sm:$0xff]  ;;  %v1139_v58 = vmul.f32 %v3922_v30, %v1129_v3  ;;  %v1140_v48 = vmul.f32 %v3922_v30, %v1130_v46  ;;  %v1174_v63 = vld [vmem:[#allocation2 + $0xa] sm:$0xff] }
 0x3d6   : > { %v3936_v7 = vld [vmem:[%s5003_s4 + $0x2] ss:$0 sm:$0xff]  ;;  %v1157_v37 = vmul.f32 %v3929_v17, %v1147_v31  ;;  %v1158_v53 = vmul.f32 %v3929_v17, %v1148_v9  ;;  %v1199_v55 = vld [vmem:[#allocation2 + $0x3] sm:$0xff]  ;;  %v1200_v27 = vld [vmem:[#allocation2 + $0xb] sm:$0xff] }
 0x3d7   : > { %v1183_v1 = vmul.f32 %v3936_v7, %v1173_v57  ;;  %v1184_v6 = vmul.f32 %v3936_v7, %v1174_v63  ;;  %v3945_v36 = vld [vmem:[%s5003_s4 + $0x3] ss:$0 sm:$0xff]  ;;  %v1225_v33 = vld [vmem:[#allocation2 + $0x4] sm:$0xff]  ;;  %v1226_v34 = vld [vmem:[#allocation2 + $0xc] sm:$0xff] }
 0x3d8   : > { %v1165_v5 = vadd.f32 %v1157_v37, %v1139_v58  ;;  %v1166_v11 = vadd.f32 %v1158_v53, %v1140_v48  ;;  %v3952_v49 = vld [vmem:[%s5003_s4 + $0x4] ss:$0 sm:$0xff]  ;;  %v1251_v54 = vld [vmem:[#allocation2 + $0x5] sm:$0xff]  ;;  %v1209_v4 = vmul.f32 %v3945_v36, %v1199_v55  ;;  %v1210_v62 = vmul.f32 %v3945_v36, %v1200_v27  ;;  %v1252_v29 = vld [vmem:[#allocation2 + $0xd] sm:$0xff] }
 0x3d9   : > { %2471 = vmatpush.bf16.msrb.mxu2 %v2764_v12  ;;  %2798 = vmatpush.bf16.msrb.mxu3 %v2764_v12  ;;  %v3959_v42 = vld [vmem:[%s5003_s4 + $0x5] ss:$0 sm:$0xff]  ;;  %v1235_v51 = vmul.f32 %v3952_v49, %v1225_v33  ;;  %v1236_v32 = vmul.f32 %v3952_v49, %v1226_v34  ;;  %v1277_v2 = vld [vmem:[#allocation2 + $0x6] sm:$0xff]  ;;  %v1278_v59 = vld [vmem:[#allocation2 + $0xe] sm:$0xff] }
 0x3da   : > { %v1191_v13 = vadd.f32 %v1183_v1, %v1165_v5  ;;  %v1192_v50 = vadd.f32 %v1184_v6, %v1166_v11  ;;  %v1261_v28 = vmul.f32 %v3959_v42, %v1251_v54  ;;  %v3969_v20 = vld [vmem:[%s5003_s4 + $0x6] ss:$0 sm:$0xff]  ;;  %v1262_v21 = vmul.f32 %v3959_v42, %v1252_v29  ;;  %v3975_v43 = vld [vmem:[%s5003_s4 + $0x7] ss:$0 sm:$0xff]  ;;  %v3982_v35 = vld [vmem:[%s5003_s4 + $0x8] ss:$0 sm:$0xff] }
 0x3db   : > { %v1305_v44 = vld [vmem:[#allocation2 + $0x20] sm:$0xff]  ;;  %v1287_v47 = vmul.f32 %v3969_v20, %v1277_v2  ;;  %v1288_v14 = vmul.f32 %v3969_v20, %v1278_v59  ;;  %v1314_v22 = vmul.f32 %v3975_v43, %v1304_v60  ;;  %v3990_v3 = vld [vmem:[%s5003_s4 + $0x9] ss:$0 sm:$0xff]  ;;  %v3998_v37 = vld [vmem:[%s5003_s4 + $0xa] ss:$0 sm:$0xff] }
 0x3dc   : > { %v1217_v8 = vadd.f32 %v1209_v4, %v1191_v13  ;;  %v1218_v39 = vadd.f32 %v1210_v62, %v1192_v50  ;;  %v1330_v24 = vld [vmem:[#allocation2 + $0x19] sm:$0xff]  ;;  %v1331_v52 = vld [vmem:[#allocation2 + $0x21] sm:$0xff]  ;;  %v1315_v9 = vmul.f32 %v3975_v43, %v1305_v44  ;;  %v5075_v55 = vld [vmem:[#allocation25_spill] sm:$0xff] }
 0x3dd   : > { %2472 = vmatpush.bf16.msrb.mxu2 %v2760_v0  ;;  %2799 = vmatpush.bf16.msrb.mxu3 %v2760_v0  ;;  %v1356_v12 = vld [vmem:[#allocation2 + $0x1a] sm:$0xff]  ;;  %v1357_v57 = vld [vmem:[#allocation2 + $0x22] sm:$0xff]  ;;  %v1340_v40 = vmul.f32 %v3982_v35, %v1330_v24  ;;  %v1341_v41 = vmul.f32 %v3982_v35, %v1331_v52  ;;  %v4006_v34 = vld [vmem:[%s5003_s4 + $0xb] ss:$0 sm:$0xff] }
 0x3de   : > { %v1243_v56 = vadd.f32 %v1235_v51, %v1217_v8  ;;  %v1244_v23 = vadd.f32 %v1236_v32, %v1218_v39  ;;  %v1382_v63 = vld [vmem:[#allocation2 + $0x1b] sm:$0xff]  ;;  %v5074_v53 = vld [vmem:[#allocation24_spill] sm:$0xff]  ;;  %v1366_v1 = vmul.f32 %v3990_v3, %v1356_v12  ;;  %v1367_v11 = vmul.f32 %v3990_v3, %v1357_v57  ;;  %v1487_v4 = vld [vmem:[#allocation2 + $0x30] sm:$0xff] }
 0x3df   : > { %v2748_v27 = vor.u32 %v5075_v55, %v5074_v53  ;;  %v1383_v6 = vld [vmem:[#allocation2 + $0x23] sm:$0xff]  ;;  %v5076_v62 = vld [vmem:[#allocation22_spill] sm:$0xff]  ;;  %v4014_v32 = vld [vmem:[%s5003_s4 + $0xc] ss:$0 sm:$0xff]  ;;  %v1392_v8 = vmul.f32 %v3998_v37, %v1382_v63 }
 0x3e0   : > { %v1269_v46 = vadd.f32 %v1261_v28, %v1243_v56  ;;  %v1270_v31 = vadd.f32 %v1262_v21, %v1244_v23  ;;  %v1408_v33 = vld [vmem:[#allocation2 + $0x1c] sm:$0xff]  ;;  %v1409_v54 = vld [vmem:[#allocation2 + $0x24] sm:$0xff]  ;;  %v1143_v28 = vmul.f32 %v3922_v30, %v1487_v4  ;;  %v1393_v39 = vmul.f32 %v3998_v37, %v1383_v6  ;;  %v1513_v21 = vld [vmem:[#allocation2 + $0x31] sm:$0xff] }
 0x3e1   : > { %2473 = vmatpush.bf16.msrb.mxu2 %v2756_v18  ;;  %2800 = vmatpush.bf16.msrb.mxu3 %v2756_v18  ;;  %v5077_v29 = vld [vmem:[#allocation23_spill] sm:$0xff]  ;;  %v1488_v18 = vld [vmem:[#allocation2 + $0x38] sm:$0xff]  ;;  %v1418_v44 = vmul.f32 %v4006_v34, %v1408_v33  ;;  %v1419_v56 = vmul.f32 %v4006_v34, %v1409_v54  ;;  %v5078_v12 = vld [vmem:[#allocation20_spill] sm:$0xff] }
 0x3e2   : > { %v1295_v58 = vadd.f32 %v1287_v47, %v1269_v46  ;;  %v1296_v48 = vadd.f32 %v1288_v14, %v1270_v31  ;;  %v2744_v13 = vor.u32 %v5077_v29, %v5076_v62  ;;  %v1434_v50 = vld [vmem:[#allocation2 + $0x1d] sm:$0xff]  ;;  %v1435_v51 = vld [vmem:[#allocation2 + $0x25] sm:$0xff]  ;;  %v4024_v47 = vld [vmem:[%s5003_s4 + $0xd] ss:$0 sm:$0xff] }
 0x3e3   : > { %v1514_v60 = vld [vmem:[#allocation2 + $0x39] sm:$0xff]  ;;  %v1461_v46 = vld [vmem:[#allocation2 + $0x26] sm:$0xff]  ;;  %v5079_v57 = vld [vmem:[#allocation21_spill] sm:$0xff]  ;;  %v1445_v53 = vmul.f32 %v4014_v32, %v1435_v51 }
 0x3e4   : > { %v1322_v0 = vadd.f32 %v1314_v22, %v1295_v58  ;;  %v1323_v5 = vadd.f32 %v1315_v9, %v1296_v48  ;;  %v1460_v23 = vld [vmem:[#allocation2 + $0x1e] sm:$0xff]  ;;  %v1539_v14 = vld [vmem:[#allocation2 + $0x32] sm:$0xff]  ;;  %v1161_v22 = vmul.f32 %v3929_v17, %v1513_v21  ;;  %v1162_v9 = vmul.f32 %v3929_v17, %v1514_v60  ;;  %v4037_v55 = vld [vmem:[%s5003_s4 + $0xe] ss:$0 sm:$0xff] }
 0x3e5   : > { %2474 = vmatpush.bf16.msrb.mxu2 %v2752_v10  ;;  %2801 = vmatpush.bf16.msrb.mxu3 %v2752_v10  ;;  %v1144_v10 = vmul.f32 %v3922_v30, %v1488_v18  ;;  %v1540_v31 = vld [vmem:[#allocation2 + $0x3a] sm:$0xff]  ;;  %v2740_v58 = vor.u32 %v5079_v57, %v5078_v12  ;;  %v1444_v30 = vmul.f32 %v4014_v32, %v1434_v50  ;;  %v4044_v6 = vld [vmem:[%s5003_s4 + $0xf] ss:$0 sm:$0xff]  ;;  %v4208_v61 = vld [vmem:[#allocation2 + $0x66] sm:$0xff] }
 0x3e6   : > { %v1348_v2 = vadd.f32 %v1340_v40, %v1322_v0  ;;  %v1349_v59 = vadd.f32 %v1341_v41, %v1323_v5  ;;  %v1169_v48 = vadd.f32 %v1161_v22, %v1143_v28  ;;  %v1187_v40 = vmul.f32 %v3936_v7, %v1539_v14  ;;  %v1566_v54 = vld [vmem:[#allocation2 + $0x3b] sm:$0xff]  ;;  %v4066_v22 = vld [vmem:[%s5003_s4 + $0x12] ss:$0 sm:$0xff] }
 0x3e7   : > { %v1470_v17 = vmul.f32 %v4024_v47, %v1460_v23  ;;  %v1170_v33 = vadd.f32 %v1162_v9, %v1144_v10  ;;  %v1188_v0 = vmul.f32 %v3936_v7, %v1540_v31  ;;  %v1591_v29 = vld [vmem:[#allocation2 + $0x34] sm:$0xff]  ;;  %v4053_v7 = vld [vmem:[%s5003_s4 + $0x10] ss:$0 sm:$0xff]  ;;  %v1214_v23 = vmul.f32 %v3945_v36, %v1566_v54  ;;  %v2062_v15 = vld [vmem:[#allocation2 + $0x81] sm:$0xff] }
 0x3e8   : > { %v1374_v24 = vadd.f32 %v1366_v1, %v1348_v2  ;;  %v1375_v52 = vadd.f32 %v1367_v11, %v1349_v59  ;;  %v1471_v1 = vmul.f32 %v4024_v47, %v1461_v46  ;;  %v1195_v62 = vadd.f32 %v1187_v40, %v1169_v48  ;;  %v1644_v48 = vld [vmem:[#allocation2 + $0x3e] sm:$0xff] }
 0x3e9   : > { %2475 = vmatpush.bf16.msrb.mxu2 %v2748_v27  ;;  %2802 = vmatpush.bf16.msrb.mxu3 %v2748_v27  ;;  %v1565_v27 = vld [vmem:[#allocation2 + $0x33] sm:$0xff]  ;;  %v1196_v50 = vadd.f32 %v1188_v0, %v1170_v33  ;;  %v1497_v59 = vmul.f32 %v4037_v55, %v1487_v4  ;;  %v1550_v57 = vmul.f32 %v4053_v7, %v1540_v31  ;;  %v1669_v31 = vld [vmem:[#allocation2 + $0x48] sm:$0xff] }
 0x3ea   : > { %v1400_v41 = vadd.f32 %v1392_v8, %v1374_v24  ;;  %v1401_v63 = vadd.f32 %v1393_v39, %v1375_v52  ;;  %v1213_v51 = vmul.f32 %v3945_v36, %v1565_v27  ;;  %v1498_v8 = vmul.f32 %v4037_v55, %v1488_v18  ;;  %v1618_v24 = vld [vmem:[#allocation2 + $0x3d] sm:$0xff]  ;;  %v1670_v33 = vld [vmem:[#allocation2 + $0x50] sm:$0xff] }
 0x3eb   : > { %v1523_v39 = vmul.f32 %v4044_v6, %v1513_v21  ;;  %v1239_v21 = vmul.f32 %v3952_v49, %v1591_v29  ;;  %v1222_v52 = vadd.f32 %v1214_v23, %v1196_v50  ;;  %v1549_v36 = vmul.f32 %v4053_v7, %v1539_v14  ;;  %v4088_v50 = vld [vmem:[%s5003_s4 + $0x14] ss:$0 sm:$0xff]  ;;  %v4102_v23 = vld [vmem:[%s5003_s4 + $0x16] ss:$0 sm:$0xff]  ;;  %v2061_v25 = vld [vmem:[#allocation2 + $0x79] sm:$0xff] }
 0x3ec   : > { %v1426_v5 = vadd.f32 %v1418_v44, %v1400_v41  ;;  %v1427_v11 = vadd.f32 %v1419_v56, %v1401_v63  ;;  %v1524_v44 = vmul.f32 %v4044_v6, %v1514_v60  ;;  %v4060_v56 = vld [vmem:[%s5003_s4 + $0x11] ss:$0 sm:$0xff]  ;;  %v1221_v4 = vadd.f32 %v1213_v51, %v1195_v62  ;;  %v1617_v60 = vld [vmem:[#allocation2 + $0x35] sm:$0xff]  ;;  %v4077_v63 = vld [vmem:[%s5003_s4 + $0x13] ss:$0 sm:$0xff] }
 0x3ed   : > { %2476 = vmatpush.bf16.msrb.mxu2 %v2744_v13  ;;  %2803 = vmatpush.bf16.msrb.mxu3 %v2744_v13  ;;  %v1592_v13 = vld [vmem:[#allocation2 + $0x3c] sm:$0xff]  ;;  %v1575_v40 = vmul.f32 %v4060_v56, %v1565_v27  ;;  %v1576_v41 = vmul.f32 %v4060_v56, %v1566_v54  ;;  %v1266_v14 = vmul.f32 %v3959_v42, %v1618_v24 }
 0x3ee   : > { %v1452_v28 = vadd.f32 %v1444_v30, %v1426_v5  ;;  %v1453_v2 = vadd.f32 %v1445_v53, %v1427_v11  ;;  %v1240_v46 = vmul.f32 %v3952_v49, %v1592_v13  ;;  %v1247_v30 = vadd.f32 %v1239_v21, %v1221_v4 }
 0x3ef   : > { %v1292_v27 = vmul.f32 %v3969_v20, %v1644_v48  ;;  %v1601_v54 = vmul.f32 %v4066_v22, %v1591_v29  ;;  %v1602_v62 = vmul.f32 %v4066_v22, %v1592_v13  ;;  %v1627_v51 = vmul.f32 %v4077_v63, %v1617_v60 }
 0x3f0   : > { %v1478_v18 = vadd.f32 %v1470_v17, %v1452_v28  ;;  %v1479_v10 = vadd.f32 %v1471_v1, %v1453_v2  ;;  %v1248_v53 = vadd.f32 %v1240_v46, %v1222_v52  ;;  %v1265_v1 = vmul.f32 %v3959_v42, %v1617_v60  ;;  %v4095_v28 = vld [vmem:[%s5003_s4 + $0x15] ss:$0 sm:$0xff]  ;;  %v1721_v52 = vld [vmem:[#allocation2 + $0x4a] sm:$0xff] }
 0x3f1   : > { %2477 = vmatpush.bf16.msrb.mxu2 %v2740_v58  ;;  %2804 = vmatpush.bf16.msrb.mxu3 %v2740_v58  ;;  %v1643_v58 = vld [vmem:[#allocation2 + $0x36] sm:$0xff]  ;;  %v1628_v42 = vmul.f32 %v4077_v63, %v1618_v24  ;;  %v1318_v13 = vmul.f32 %v3975_v43, %v1669_v31  ;;  %v1654_v24 = vmul.f32 %v4088_v50, %v1644_v48  ;;  %v1747_v48 = vld [vmem:[#allocation2 + $0x4b] sm:$0xff] }
 0x3f2   : > { %v1505_v9 = vadd.f32 %v1497_v59, %v1478_v18  ;;  %v1506_v12 = vadd.f32 %v1498_v8, %v1479_v10  ;;  %v1291_v0 = vmul.f32 %v3969_v20, %v1643_v58  ;;  %v1273_v20 = vadd.f32 %v1265_v1, %v1247_v30  ;;  %v1695_v8 = vld [vmem:[#allocation2 + $0x49] sm:$0xff]  ;;  %v1722_v46 = vld [vmem:[#allocation2 + $0x52] sm:$0xff] }
 0x3f3   : > { %v1274_v2 = vadd.f32 %v1266_v14, %v1248_v53  ;;  %v1653_v60 = vmul.f32 %v4088_v50, %v1643_v58  ;;  %v1344_v30 = vmul.f32 %v3982_v35, %v1695_v8  ;;  %v1748_v53 = vld [vmem:[#allocation2 + $0x53] sm:$0xff] }
 0x3f4   : > { %v1531_v49 = vadd.f32 %v1523_v39, %v1505_v9  ;;  %v1532_v17 = vadd.f32 %v1524_v44, %v1506_v12  ;;  %v1319_v39 = vmul.f32 %v3975_v43, %v1670_v33  ;;  %v1696_v44 = vld [vmem:[#allocation2 + $0x51] sm:$0xff]  ;;  %v1299_v4 = vadd.f32 %v1291_v0, %v1273_v20 }
 0x3f5   : > { %v1300_v18 = vadd.f32 %v1292_v27, %v1274_v2  ;;  %v1679_v9 = vmul.f32 %v4095_v28, %v1669_v31  ;;  %v1680_v43 = vmul.f32 %v4095_v28, %v1670_v33  ;;  %v4111_v12 = vld [vmem:[%s5003_s4 + $0x17] ss:$0 sm:$0xff]  ;;  %v1345_v58 = vmul.f32 %v3982_v35, %v1696_v44  ;;  %v4122_v0 = vld [vmem:[%s5003_s4 + $0x18] ss:$0 sm:$0xff] }
 0x3f6   : > { %v1557_v5 = vadd.f32 %v1549_v36, %v1531_v49  ;;  %v1558_v11 = vadd.f32 %v1550_v57, %v1532_v17  ;;  %v1326_v36 = vadd.f32 %v1318_v13, %v1299_v4  ;;  %v1370_v49 = vmul.f32 %v3990_v3, %v1721_v52 }
 0x3f7   : > { %v1327_v57 = vadd.f32 %v1319_v39, %v1300_v18  ;;  %v1371_v17 = vmul.f32 %v3990_v3, %v1722_v46  ;;  %v1705_v31 = vmul.f32 %v4102_v23, %v1695_v8  ;;  %v1706_v33 = vmul.f32 %v4102_v23, %v1696_v44 }
 0x3f8   : > { %v1583_v59 = vadd.f32 %v1575_v40, %v1557_v5  ;;  %v1584_v29 = vadd.f32 %v1576_v41, %v1558_v11  ;;  %v1731_v27 = vmul.f32 %v4111_v12, %v1721_v52  ;;  %v1732_v35 = vmul.f32 %v4111_v12, %v1722_v46  ;;  %v4129_v5 = vld [vmem:[%s5003_s4 + $0x19] ss:$0 sm:$0xff] }
 0x3f9   : > { %v1352_v3 = vadd.f32 %v1344_v30, %v1326_v36  ;;  %v1353_v11 = vadd.f32 %v1345_v58, %v1327_v57  ;;  %v1396_v20 = vmul.f32 %v3998_v37, %v1747_v48  ;;  %v1397_v2 = vmul.f32 %v3998_v37, %v1748_v53  ;;  %v1825_v36 = vld [vmem:[#allocation2 + $0x4e] sm:$0xff]  ;;  %v1826_v57 = vld [vmem:[#allocation2 + $0x56] sm:$0xff] }
 0x3fa   : > { %v1609_v10 = vadd.f32 %v1601_v54, %v1583_v59  ;;  %v1610_v21 = vadd.f32 %v1602_v62, %v1584_v29  ;;  %v1799_v59 = vld [vmem:[#allocation2 + $0x4d] sm:$0xff]  ;;  %v4136_v29 = vld [vmem:[%s5003_s4 + $0x1a] ss:$0 sm:$0xff]  ;;  %v1757_v4 = vmul.f32 %v4122_v0, %v1747_v48  ;;  %v1758_v18 = vmul.f32 %v4122_v0, %v1748_v53  ;;  %v1852_v48 = vld [vmem:[#allocation2 + $0x60] sm:$0xff] }
 0x3fb   : > { %v1378_v8 = vadd.f32 %v1370_v49, %v1352_v3  ;;  %v1379_v13 = vadd.f32 %v1371_v17, %v1353_v11  ;;  %v1809_v30 = vmul.f32 %v4136_v29, %v1799_v59  ;;  %v4159_v53 = vld [vmem:[%s5003_s4 + $0x1d] ss:$0 sm:$0xff]  ;;  %v1448_v49 = vmul.f32 %v4014_v32, %v1799_v59  ;;  %v1878_v11 = vld [vmem:[#allocation2 + $0x61] sm:$0xff]  ;;  %v1905_v59 = vld [vmem:[#allocation2 + $0x6a] sm:$0xff] }
 0x3fc   : > { %v1635_v40 = vadd.f32 %v1627_v51, %v1609_v10  ;;  %v1636_v41 = vadd.f32 %v1628_v42, %v1610_v21  ;;  %v1773_v51 = vld [vmem:[#allocation2 + $0x4c] sm:$0xff]  ;;  %v1774_v42 = vld [vmem:[#allocation2 + $0x54] sm:$0xff]  ;;  %v1554_v38 = vmul.f32 %v4053_v7, %v1905_v59 }
 0x3fd   : > { %v1800_v10 = vld [vmem:[#allocation2 + $0x55] sm:$0xff]  ;;  %v1783_v37 = vmul.f32 %v4129_v5, %v1773_v51  ;;  %v1404_v52 = vadd.f32 %v1396_v20, %v1378_v8  ;;  %v1405_v46 = vadd.f32 %v1397_v2, %v1379_v13  ;;  %v1904_v2 = vld [vmem:[#allocation2 + $0x62] sm:$0xff]  ;;  %v1474_v8 = vmul.f32 %v4024_v47, %v1825_v36 }
 0x3fe   : > { %v1661_v1 = vadd.f32 %v1653_v60, %v1635_v40  ;;  %v1662_v14 = vadd.f32 %v1654_v24, %v1636_v41  ;;  %v4143_v21 = vld [vmem:[%s5003_s4 + $0x1b] ss:$0 sm:$0xff]  ;;  %v1784_v60 = vmul.f32 %v4129_v5, %v1774_v42  ;;  %v4150_v24 = vld [vmem:[%s5003_s4 + $0x1c] ss:$0 sm:$0xff]  ;;  %v1422_v40 = vmul.f32 %v4006_v34, %v1773_v51 }
 0x3ff   : > { %v1423_v41 = vmul.f32 %v4006_v34, %v1774_v42  ;;  %v1810_v58 = vmul.f32 %v4136_v29, %v1800_v10  ;;  %v1449_v17 = vmul.f32 %v4014_v32, %v1800_v10  ;;  %v1836_v34 = vmul.f32 %v4143_v21, %v1826_v57  ;;  %v4175_v32 = vld [vmem:[%s5003_s4 + $0x1f] ss:$0 sm:$0xff] }
 0x400   : > { %v1687_v54 = vadd.f32 %v1679_v9, %v1661_v1  ;;  %v1688_v62 = vadd.f32 %v1680_v43, %v1662_v14  ;;  %v1475_v13 = vmul.f32 %v4024_v47, %v1826_v57  ;;  %v4191_v47 = vld [vmem:[%s5003_s4 + $0x21] ss:$0 sm:$0xff]  ;;  %v1553_v16 = vmul.f32 %v4053_v7, %v1904_v2 }
 0x401   : > { %v1431_v51 = vadd.f32 %v1423_v41, %v1405_v46  ;;  %5080 = vst [vmem:[#allocation24_spill] sm:$0xff] %v4191_v47  ;;  %v1957_v41 = vld [vmem:[#allocation2 + $0x6c] sm:$0xff]  ;;  %v2087_v7 = vld [vmem:[#allocation2 + $0x7a] sm:$0xff] }
 0x402   : > { %v1713_v39 = vadd.f32 %v1705_v31, %v1687_v54  ;;  %v1714_v44 = vadd.f32 %v1706_v33, %v1688_v62  ;;  %v1835_v31 = vmul.f32 %v4143_v21, %v1825_v36  ;;  %v1853_v33 = vld [vmem:[#allocation2 + $0x68] sm:$0xff]  ;;  %v1430_v62 = vadd.f32 %v1422_v40, %v1404_v52 }
 0x403   : > { %v1863_v3 = vmul.f32 %v4150_v24, %v1853_v33  ;;  %v1879_v54 = vld [vmem:[#allocation2 + $0x69] sm:$0xff]  ;;  %v1457_v52 = vadd.f32 %v1449_v17, %v1431_v51  ;;  %v1501_v51 = vmul.f32 %v4037_v55, %v1852_v48 }
 0x404   : > { %v1739_v9 = vadd.f32 %v1731_v27, %v1713_v39  ;;  %v1740_v43 = vadd.f32 %v1732_v35, %v1714_v44  ;;  %v4168_v27 = vld [vmem:[%s5003_s4 + $0x1e] ss:$0 sm:$0xff]  ;;  %v1862_v35 = vmul.f32 %v4150_v24, %v1852_v48  ;;  %v1888_v39 = vmul.f32 %v4159_v53, %v1878_v11  ;;  %v1956_v40 = vld [vmem:[#allocation2 + $0x64] sm:$0xff] }
 0x405   : > { %v1889_v44 = vmul.f32 %v4159_v53, %v1879_v54  ;;  %v1456_v10 = vadd.f32 %v1448_v49, %v1430_v62  ;;  %v1914_v46 = vmul.f32 %v4168_v27, %v1904_v2  ;;  %v1483_v49 = vadd.f32 %v1475_v13, %v1457_v52  ;;  %v4202_v62 = vld [vmem:[#allocation2 + $0x6d] sm:$0xff]  ;;  %v4224_v52 = vld [vmem:[%s5003_s4 + $0x24] ss:$0 sm:$0xff]  ;;  %v4243_v2 = vld [vmem:[%s5003_s4 + $0x26] ss:$0 sm:$0xff] }
 0x406   : > { %v1765_v1 = vadd.f32 %v1757_v4, %v1739_v9  ;;  %v1766_v14 = vadd.f32 %v1758_v18, %v1740_v43  ;;  %v1930_v4 = vld [vmem:[#allocation2 + $0x63] sm:$0xff]  ;;  %v4184_v18 = vld [vmem:[%s5003_s4 + $0x20] ss:$0 sm:$0xff]  ;;  %v1915_v9 = vmul.f32 %v4168_v27, %v1905_v59  ;;  %v1931_v43 = vld [vmem:[#allocation2 + $0x6b] sm:$0xff]  ;;  %v1993_v48 = vmul.f32 %v4191_v47, %v4202_v62  ;;  %5083 = vst [vmem:[#allocation23_spill] sm:$0xff] %v4224_v52 }
 0x407   : > { %v1940_v36 = vmul.f32 %v4175_v32, %v1930_v4  ;;  %v1941_v57 = vmul.f32 %v4175_v32, %v1931_v43  ;;  %v1967_v26 = vmul.f32 %v4184_v18, %v1957_v41  ;;  %v4245_v59 = vld [vmem:[#allocation2 + $0x82] sm:$0xff] }
 0x408   : > { %v1791_v42 = vadd.f32 %v1783_v37, %v1765_v1  ;;  %v1792_v20 = vadd.f32 %v1784_v60, %v1766_v14  ;;  %v4200_v14 = vld [vmem:[#allocation2 + $0x65] sm:$0xff] }
 0x40a   : > { %v1817_v37 = vadd.f32 %v1809_v30, %v1791_v42  ;;  %v1818_v60 = vadd.f32 %v1810_v58, %v1792_v20  ;;  %v4198_v30 = vld [vmem:[%s5003_s4 + $0x22] ss:$0 sm:$0xff]  ;;  %v1482_v58 = vadd.f32 %v1474_v8, %v1456_v10  ;;  %v1502_v42 = vmul.f32 %v4037_v55, %v1853_v33  ;;  %v4213_v8 = vld [vmem:[%s5003_s4 + $0x23] ss:$0 sm:$0xff]  ;;  %v2009_v33 = vld [vmem:[#allocation2 + $0x6e] sm:$0xff] }
 0x40b   : > { %5081 = vst [vmem:[#allocation25_spill] sm:$0xff] %v4198_v30  ;;  %v1966_v20 = vmul.f32 %v4184_v18, %v1956_v40  ;;  %v1992_v55 = vmul.f32 %v4191_v47, %v4200_v14  ;;  %v1605_v47 = vmul.f32 %v4066_v22, %v1956_v40 }
 0x40c   : > { %v1843_v17 = vadd.f32 %v1835_v31, %v1817_v37  ;;  %v1844_v1 = vadd.f32 %v1836_v34, %v1818_v60  ;;  %5082 = vst [vmem:[#allocation22_spill] sm:$0xff] %v4213_v8  ;;  %v1527_v31 = vmul.f32 %v4044_v6, %v1878_v11  ;;  %v1528_v34 = vmul.f32 %v4044_v6, %v1879_v54  ;;  %v2035_v6 = vld [vmem:[#allocation2 + $0x78] sm:$0xff] }
 0x40d   : > { %v2018_v37 = vmul.f32 %v4198_v30, %v4208_v61  ;;  %v2019_v11 = vmul.f32 %v4198_v30, %v2009_v33  ;;  %v2045_v19 = vmul.f32 %v4213_v8, %v2035_v6 }
 0x40e   : > { %v1870_v13 = vadd.f32 %v1862_v35, %v1843_v17  ;;  %v1871_v10 = vadd.f32 %v1863_v3, %v1844_v1  ;;  %v1509_v35 = vadd.f32 %v1501_v51, %v1482_v58  ;;  %v1510_v3 = vadd.f32 %v1502_v42, %v1483_v49  ;;  %v2036_v17 = vld [vmem:[#allocation2 + $0x80] sm:$0xff] }
 0x40f   : > { %v4232_v1 = vld [vmem:[%s5003_s4 + $0x25] ss:$0 sm:$0xff]  ;;  %v2046_v45 = vmul.f32 %v4213_v8, %v2036_v17  ;;  %v2071_v51 = vmul.f32 %v4224_v52, %v2061_v25  ;;  %v2072_v42 = vmul.f32 %v4224_v52, %v2062_v15 }
 0x410   : > { %v1896_v54 = vadd.f32 %v1888_v39, %v1870_v13  ;;  %v1897_v60 = vadd.f32 %v1889_v44, %v1871_v10  ;;  %v1535_v58 = vadd.f32 %v1527_v31, %v1509_v35  ;;  %v1536_v49 = vadd.f32 %v1528_v34, %v1510_v3  ;;  %v4250_v13 = vld [vmem:[%s5003_s4 + $0x27] ss:$0 sm:$0xff] }
 0x411   : > { %v1580_v34 = vmul.f32 %v4060_v56, %v1931_v43  ;;  %v2097_v3 = vmul.f32 %v4232_v1, %v2087_v7  ;;  %v4257_v52 = vld [vmem:[#allocation2 + $0x83] sm:$0xff] }
 0x412   : > { %v1922_v39 = vadd.f32 %v1914_v46, %v1896_v54  ;;  %v1923_v44 = vadd.f32 %v1915_v9, %v1897_v60  ;;  %v1561_v31 = vadd.f32 %v1553_v16, %v1535_v58  ;;  %v1562_v46 = vadd.f32 %v1554_v38, %v1536_v49  ;;  %v2113_v60 = vld [vmem:[#allocation2 + $0x7b] sm:$0xff]  ;;  %v4270_v58 = vld [vmem:[%s5003_s4 + $0x28] ss:$0 sm:$0xff] }
 0x413   : > { %v1579_v9 = vmul.f32 %v4060_v56, %v1930_v4  ;;  %v2098_v54 = vmul.f32 %v4232_v1, %v4245_v59  ;;  %v1606_v38 = vmul.f32 %v4066_v22, %v1957_v41  ;;  %v2123_v56 = vmul.f32 %v4243_v2, %v2113_v60 }
 0x414   : > { %v1948_v10 = vadd.f32 %v1940_v36, %v1922_v39  ;;  %v1949_v35 = vadd.f32 %v1941_v57, %v1923_v44  ;;  %v1588_v30 = vadd.f32 %v1580_v34, %v1562_v46  ;;  %v2124_v43 = vmul.f32 %v4243_v2, %v4257_v52  ;;  %v2139_v36 = vld [vmem:[#allocation2 + $0x7c] sm:$0xff]  ;;  %v4282_v46 = vld [vmem:[%s5003_s4 + $0x29] ss:$0 sm:$0xff] }
 0x415   : > { %v1587_v8 = vadd.f32 %v1579_v9, %v1561_v31  ;;  %v4265_v57 = vmul.f32 %v4250_v13, %v2139_v36  ;;  %v1631_v22 = vmul.f32 %v4077_v63, %v4200_v14  ;;  %v1632_v39 = vmul.f32 %v4077_v63, %v4202_v62  ;;  %v2166_v9 = vld [vmem:[#allocation2 + $0x85] sm:$0xff] }
 0x416   : > { %v1974_v16 = vadd.f32 %v1966_v20, %v1948_v10  ;;  %v1975_v4 = vadd.f32 %v1967_v26, %v1949_v35  ;;  %v1614_v40 = vadd.f32 %v1606_v38, %v1588_v30  ;;  %v2140_v20 = vld [vmem:[#allocation2 + $0x84] sm:$0xff]  ;;  %v1657_v44 = vmul.f32 %v4088_v50, %v4208_v61 }
 0x417   : > { %v1613_v49 = vadd.f32 %v1605_v47, %v1587_v8  ;;  %v2150_v31 = vmul.f32 %v4250_v13, %v2140_v20  ;;  %v1658_v30 = vmul.f32 %v4088_v50, %v2009_v33  ;;  %v1683_v14 = vmul.f32 %v4095_v28, %v2035_v6  ;;  %v4292_v10 = vld [vmem:[%s5003_s4 + $0x2a] ss:$0 sm:$0xff] }
 0x418   : > { %v2000_v26 = vadd.f32 %v1992_v55, %v1974_v16  ;;  %v2001_v41 = vadd.f32 %v1993_v48, %v1975_v4  ;;  %v2165_v48 = vld [vmem:[#allocation2 + $0x7d] sm:$0xff]  ;;  %v1640_v63 = vadd.f32 %v1632_v39, %v1614_v40  ;;  %v1684_v62 = vmul.f32 %v4095_v28, %v2036_v17  ;;  %v2192_v6 = vld [vmem:[#allocation2 + $0x86] sm:$0xff] }
 0x419   : > { %v1639_v47 = vadd.f32 %v1631_v22, %v1613_v49  ;;  %v2175_v61 = vmul.f32 %v4270_v58, %v2165_v48  ;;  %v2176_v34 = vmul.f32 %v4270_v58, %v2166_v9  ;;  %v1709_v50 = vmul.f32 %v4102_v23, %v2061_v25  ;;  %v4301_v4 = vld [vmem:[%s5003_s4 + $0x2b] ss:$0 sm:$0xff]  ;;  %v2219_v22 = vld [vmem:[#allocation2 + $0x98] sm:$0xff]  ;;  %v4311_v39 = vld [vmem:[%s5003_s4 + $0x2c] ss:$0 sm:$0xff] }
 0x41a   : > { %v2026_v8 = vadd.f32 %v2018_v37, %v2000_v26  ;;  %v2027_v55 = vadd.f32 %v2019_v11, %v2001_v41  ;;  %v2191_v11 = vld [vmem:[#allocation2 + $0x7e] sm:$0xff]  ;;  %v1666_v38 = vadd.f32 %v1658_v30, %v1640_v63  ;;  %v1710_v16 = vmul.f32 %v4102_v23, %v2062_v15 }
 0x41b   : > { %v1665_v35 = vadd.f32 %v1657_v44, %v1639_v47  ;;  %v2201_v28 = vmul.f32 %v4282_v46, %v2191_v11  ;;  %v2202_v17 = vmul.f32 %v4282_v46, %v2192_v6  ;;  %v1735_v40 = vmul.f32 %v4111_v12, %v2087_v7  ;;  %v2244_v47 = vld [vmem:[#allocation2 + $0x91] sm:$0xff]  ;;  %v2245_v30 = vld [vmem:[#allocation2 + $0x99] sm:$0xff] }
 0x41c   : > { %v2053_v33 = vadd.f32 %v2045_v19, %v2026_v8  ;;  %v2054_v37 = vadd.f32 %v2046_v45, %v2027_v55  ;;  %v2218_v45 = vld [vmem:[#allocation2 + $0x90] sm:$0xff]  ;;  %v1692_v26 = vadd.f32 %v1684_v62, %v1666_v38  ;;  %v1736_v15 = vmul.f32 %v4111_v12, %v4245_v59  ;;  %v4321_v55 = vld [vmem:[%s5003_s4 + $0x2d] ss:$0 sm:$0xff] }
 0x41d   : > { %v1691_v49 = vadd.f32 %v1683_v14, %v1665_v35  ;;  %v2228_v23 = vmul.f32 %v4292_v10, %v2218_v45  ;;  %v2229_v41 = vmul.f32 %v4292_v10, %v2219_v22  ;;  %v1761_v7 = vmul.f32 %v4122_v0, %v2113_v60  ;;  %v2270_v62 = vld [vmem:[#allocation2 + $0x92] sm:$0xff]  ;;  %v2271_v35 = vld [vmem:[#allocation2 + $0x9a] sm:$0xff] }
 0x41e   : > { %v2079_v25 = vadd.f32 %v2071_v51, %v2053_v33  ;;  %v2080_v19 = vadd.f32 %v2072_v42, %v2054_v37  ;;  %v1718_v14 = vadd.f32 %v1710_v16, %v1692_v26  ;;  %v1762_v12 = vmul.f32 %v4122_v0, %v4257_v52  ;;  %v4330_v37 = vld [vmem:[%s5003_s4 + $0x2e] ss:$0 sm:$0xff] }
 0x41f   : > { %v1717_v44 = vadd.f32 %v1709_v50, %v1691_v49  ;;  %v2254_v59 = vmul.f32 %v4301_v4, %v2244_v47  ;;  %v2255_v8 = vmul.f32 %v4301_v4, %v2245_v30  ;;  %v1787_v60 = vmul.f32 %v4129_v5, %v2139_v36  ;;  %v2296_v36 = vld [vmem:[#allocation2 + $0x93] sm:$0xff]  ;;  %v2297_v49 = vld [vmem:[#allocation2 + $0x9b] sm:$0xff] }
 0x420   : > { %v2105_v51 = vadd.f32 %v2097_v3, %v2079_v25  ;;  %v2106_v42 = vadd.f32 %v2098_v54, %v2080_v19  ;;  %v1744_v50 = vadd.f32 %v1736_v15, %v1718_v14  ;;  %v1788_v33 = vmul.f32 %v4129_v5, %v2140_v20  ;;  %v4340_v19 = vld [vmem:[%s5003_s4 + $0x2f] ss:$0 sm:$0xff] }
 0x421   : > { %v1743_v63 = vadd.f32 %v1735_v40, %v1717_v44  ;;  %v2280_v0 = vmul.f32 %v4311_v39, %v2270_v62  ;;  %v2281_v52 = vmul.f32 %v4311_v39, %v2271_v35  ;;  %v1813_v16 = vmul.f32 %v4136_v29, %v2165_v48  ;;  %v2323_v44 = vld [vmem:[#allocation2 + $0x9c] sm:$0xff] }
 0x422   : > { %v2131_v3 = vadd.f32 %v2123_v56, %v2105_v51  ;;  %v2132_v54 = vadd.f32 %v2124_v43, %v2106_v42  ;;  %v1770_v40 = vadd.f32 %v1762_v12, %v1744_v50  ;;  %v1814_v5 = vmul.f32 %v4136_v29, %v2166_v9  ;;  %v4349_v42 = vld [vmem:[%s5003_s4 + $0x30] ss:$0 sm:$0xff] }
 0x423   : > { %v1769_v38 = vadd.f32 %v1761_v7, %v1743_v63  ;;  %v2306_v20 = vmul.f32 %v4321_v55, %v2296_v36  ;;  %v2307_v25 = vmul.f32 %v4321_v55, %v2297_v49  ;;  %v1839_v48 = vmul.f32 %v4143_v21, %v2191_v11  ;;  %v2349_v63 = vld [vmem:[#allocation2 + $0x9d] sm:$0xff] }
 0x424   : > { %v2157_v56 = vadd.f32 %v4265_v57, %v2131_v3  ;;  %v2158_v43 = vadd.f32 %v2150_v31, %v2132_v54  ;;  %v2322_v31 = vld [vmem:[#allocation2 + $0x94] sm:$0xff]  ;;  %v1796_v7 = vadd.f32 %v1788_v33, %v1770_v40  ;;  %v1840_v51 = vmul.f32 %v4143_v21, %v2192_v6 }
 0x425   : > { %v1795_v26 = vadd.f32 %v1787_v60, %v1769_v38  ;;  %v2332_v29 = vmul.f32 %v4330_v37, %v2322_v31  ;;  %v2333_v9 = vmul.f32 %v4330_v37, %v2323_v44  ;;  %v1866_v12 = vmul.f32 %v4150_v24, %v2218_v45 }
 0x426   : > { %v2183_v15 = vadd.f32 %v2175_v61, %v2157_v56  ;;  %v2184_v57 = vadd.f32 %v2176_v34, %v2158_v43  ;;  %v2348_v34 = vld [vmem:[#allocation2 + $0x95] sm:$0xff]  ;;  %v1822_v60 = vadd.f32 %v1814_v5, %v1796_v7  ;;  %v1867_v3 = vmul.f32 %v4150_v24, %v2219_v22 }
 0x427   : > { %v1821_v14 = vadd.f32 %v1813_v16, %v1795_v26  ;;  %v2358_v21 = vmul.f32 %v4340_v19, %v2348_v34  ;;  %v2359_v6 = vmul.f32 %v4340_v19, %v2349_v63  ;;  %v1892_v50 = vmul.f32 %v4159_v53, %v2244_v47  ;;  %v2374_v56 = vld [vmem:[#allocation2 + $0x96] sm:$0xff]  ;;  %v2375_v16 = vld [vmem:[#allocation2 + $0x9e] sm:$0xff] }
 0x428   : > { %v2209_v11 = vadd.f32 %v2201_v28, %v2183_v15  ;;  %v2210_v61 = vadd.f32 %v2202_v17, %v2184_v57  ;;  %v1848_v43 = vadd.f32 %v1840_v51, %v1822_v60  ;;  %v1893_v28 = vmul.f32 %v4159_v53, %v2245_v30  ;;  %v5084_v47 = vld [vmem:[#allocation17_spill] sm:$0xff] }
 0x429   : > { %v1847_v54 = vadd.f32 %v1839_v48, %v1821_v14  ;;  %v2384_v17 = vmul.f32 %v4349_v42, %v2374_v56  ;;  %v2385_v45 = vmul.f32 %v4349_v42, %v2375_v16  ;;  %v1918_v24 = vmul.f32 %v4168_v27, %v2270_v62  ;;  %v4367_v14 = vld [vmem:[#allocation2 + $0xa8] sm:$0xff]  ;;  %v4381_v60 = vld [vmem:[#allocation2 + $0xb2] sm:$0xff] }
 0x42a   : > { %v2236_v33 = vadd.f32 %v2228_v23, %v2209_v11  ;;  %v2237_v38 = vadd.f32 %v2229_v41, %v2210_v61  ;;  %v1875_v26 = vadd.f32 %v1867_v3, %v1848_v43  ;;  %v1919_v48 = vmul.f32 %v4168_v27, %v2271_v35  ;;  %v5086_v62 = vld [vmem:[#allocation24_spill] sm:$0xff]  ;;  %v4377_v61 = vld [vmem:[#allocation2 + $0xb1] sm:$0xff] }
 0x42b   : > { %v1874_v40 = vadd.f32 %v1866_v12, %v1847_v54  ;;  %v4362_v23 = vperm.slane %v5084_v47, 0  ;;  %v1944_v15 = vmul.f32 %v4175_v32, %v2296_v36  ;;  %v1945_v53 = vmul.f32 %v4175_v32, %v2297_v49  ;;  %v4374_v11 = vld [vmem:[#allocation2 + $0xa9] sm:$0xff]  ;;  %v1131_v43 = vld [vmem:[#allocation2 + $0x18] sm:$0xff]  ;;  %v1150_v47 = vld [vmem:[#allocation2 + $0x21] sm:$0xff] }
 0x42c   : > { %v2262_v22 = vadd.f32 %v2254_v59, %v2236_v33  ;;  %v2263_v5 = vadd.f32 %v2255_v8, %v2237_v38  ;;  %v1901_v7 = vadd.f32 %v1893_v28, %v1875_v26  ;;  %v1970_v51 = vmul.f32 %v4184_v18, %v2322_v31  ;;  %v4369_v59 = vld [vmem:[#allocation2 + $0xb0] sm:$0xff]  ;;  %v5089_v33 = vld [vmem:[#allocation23_spill] sm:$0xff] }
 0x42d   : > { %5085 = vst [vmem:[#allocation20_spill] sm:$0xff] %v4362_v23  ;;  %v1900_v41 = vadd.f32 %v1892_v50, %v1874_v40  ;;  %v1971_v27 = vmul.f32 %v4184_v18, %v2323_v44  ;;  %v1996_v35 = vmul.f32 %v5086_v62, %v2348_v34  ;;  %v1997_v12 = vmul.f32 %v5086_v62, %v2349_v63  ;;  %v4379_v31 = vld [vmem:[#allocation2 + $0xaa] sm:$0xff]  ;;  %v5088_v44 = vld [vmem:[#allocation22_spill] sm:$0xff]  ;;  %v1132_v28 = vld [vmem:[#allocation2 + $0x20] sm:$0xff] }
 0x42e   : > { %v2288_v30 = vadd.f32 %v2280_v0, %v2262_v22  ;;  %v2289_v57 = vadd.f32 %v2281_v52, %v2263_v5  ;;  %v1927_v0 = vadd.f32 %v1919_v48, %v1901_v7  ;;  %v5087_v52 = vld [vmem:[#allocation25_spill] sm:$0xff]  ;;  %v2049_v34 = vmul.f32 %v5088_v44, %v4367_v14  ;;  %v1202_v62 = vld [vmem:[#allocation2 + $0x23] sm:$0xff] }
 0x42f   : > { %v1926_v8 = vadd.f32 %v1918_v24, %v1900_v41  ;;  %v2022_v49 = vmul.f32 %v5087_v52, %v2374_v56  ;;  %v2023_v18 = vmul.f32 %v5087_v52, %v2375_v16  ;;  %v2050_v63 = vmul.f32 %v5088_v44, %v4369_v59  ;;  %v4392_v56 = vld [vmem:[#allocation2 + $0xb3] sm:$0xff]  ;;  %v1227_v44 = vld [vmem:[#allocation2 + $0x1c] sm:$0xff] }
 0x430   : > { %v2314_v36 = vadd.f32 %v2306_v20, %v2288_v30  ;;  %v2315_v32 = vadd.f32 %v2307_v25, %v2289_v57  ;;  %v4388_v20 = vld [vmem:[#allocation2 + $0xab] sm:$0xff]  ;;  %v1953_v50 = vadd.f32 %v1945_v53, %v1927_v0  ;;  %v2075_v38 = vmul.f32 %v5089_v33, %v4374_v11  ;;  %v1175_v41 = vld [vmem:[#allocation2 + $0x1a] sm:$0xff] }
 0x431   : > { %v1952_v3 = vadd.f32 %v1944_v15, %v1926_v8  ;;  %v2076_v16 = vmul.f32 %v5089_v33, %v4377_v61  ;;  %v2101_v24 = vmul.f32 %v4232_v1, %v4379_v31  ;;  %v4400_v22 = vmul.f32 %v4232_v1, %v4381_v60  ;;  %v1176_v15 = vld [vmem:[#allocation2 + $0x22] sm:$0xff]  ;;  %v4413_v1 = vld [vmem:[%s5003_s4] ss:$0 sm:$0xff]  ;;  %v4420_v8 = vld [vmem:[%s5003_s4 + $0x1] ss:$0 sm:$0xff] }
 0x432   : > { %v2340_v25 = vadd.f32 %v2332_v29, %v2314_v36  ;;  %v2341_v54 = vadd.f32 %v2333_v9, %v2315_v32  ;;  %v1149_v29 = vld [vmem:[#allocation2 + $0x19] sm:$0xff]  ;;  %v1979_v26 = vadd.f32 %v1971_v27, %v1953_v50  ;;  %v4404_v48 = vmul.f32 %v4243_v2, %v4388_v20  ;;  %v4427_v32 = vld [vmem:[%s5003_s4 + $0x2] ss:$0 sm:$0xff]  ;;  %v4436_v50 = vld [vmem:[%s5003_s4 + $0x3] ss:$0 sm:$0xff] }
 0x433   : > { %v1978_v40 = vadd.f32 %v1970_v51, %v1952_v3  ;;  %v4408_v30 = vmul.f32 %v4243_v2, %v4392_v56  ;;  %v1159_v2 = vmul.f32 %v4420_v8, %v1149_v29  ;;  %v1201_v27 = vld [vmem:[#allocation2 + $0x1b] sm:$0xff]  ;;  %v1160_v36 = vmul.f32 %v4420_v8, %v1150_v47 }
 0x434   : > { %v2366_v9 = vadd.f32 %v2358_v21, %v2340_v25  ;;  %v2367_v5 = vadd.f32 %v2359_v6, %v2341_v54  ;;  %v1141_v21 = vmul.f32 %v4413_v1, %v1131_v43  ;;  %v1142_v6 = vmul.f32 %v4413_v1, %v1132_v28  ;;  %v1228_v25 = vld [vmem:[#allocation2 + $0x24] sm:$0xff] }
 0x435   : > { %v2004_v53 = vadd.f32 %v1996_v35, %v1978_v40  ;;  %v2005_v51 = vadd.f32 %v1997_v12, %v1979_v26  ;;  %v1211_v33 = vmul.f32 %v4436_v50, %v1201_v27  ;;  %v1212_v43 = vmul.f32 %v4436_v50, %v1202_v62  ;;  %v1253_v28 = vld [vmem:[#allocation2 + $0x1d] sm:$0xff]  ;;  %v4442_v26 = vld [vmem:[#allocation2 + $0xac] sm:$0xff] }
 0x436   : > { %v2392_v57 = vadd.f32 %v2384_v17, %v2366_v9  ;;  %v2393_v7 = vadd.f32 %v2385_v45, %v2367_v5  ;;  %v1185_v17 = vmul.f32 %v4427_v32, %v1175_v41  ;;  %v1186_v45 = vmul.f32 %v4427_v32, %v1176_v15  ;;  %v5090_v40 = vld [vmem:[#allocation26_spill] sm:$0xff]  ;;  %v5091_v9 = vld [vmem:[#allocation27_spill] sm:$0xff] }
 0x437   : > { %v2030_v35 = vadd.f32 %v2022_v49, %v2004_v53  ;;  %v2031_v52 = vadd.f32 %v2023_v18, %v2005_v51  ;;  %v1167_v3 = vadd.f32 %v1159_v2, %v1141_v21  ;;  %v1168_v54 = vadd.f32 %v1160_v36, %v1142_v6  ;;  %v4444_v15 = vld [vmem:[#allocation2 + $0xb4] sm:$0xff]  ;;  %v4449_v21 = vld [vmem:[%s5003_s4 + $0x4] ss:$0 sm:$0xff] }
 0x438   : > { %v2401_v12 = vadd.f32 %v4362_v23, %v2392_v57  ;;  %v2402_v0 = vadd.f32 %v4362_v23, %v2393_v7  ;;  %5092 = vst [vmem:[#allocation21_spill] sm:$0xff] %v4444_v15  ;;  %v1237_v6 = vmul.f32 %v4449_v21, %v1227_v44  ;;  %v1238_v57 = vmul.f32 %v4449_v21, %v1228_v25  ;;  %v1279_v7 = vld [vmem:[#allocation2 + $0x1e] sm:$0xff]  ;;  %v4453_v2 = vld [vmem:[#allocation2 + $0xad] sm:$0xff] }
 0x439   : > { %v2057_v49 = vadd.f32 %v2049_v34, %v2030_v35  ;;  %v2058_v18 = vadd.f32 %v2050_v63, %v2031_v52  ;;  %v1193_v47 = vadd.f32 %v1185_v17, %v1167_v3  ;;  %v1254_v34 = vld [vmem:[#allocation2 + $0x25] sm:$0xff]  ;;  %v1194_v53 = vadd.f32 %v1186_v45, %v1168_v54  ;;  %5093 = vst [vmem:[#allocation17_spill] sm:$0xff] %v4453_v2  ;;  %v4463_v45 = vld [vmem:[#allocation2 + $0xb5] sm:$0xff] }
 0x43a   : > { %v2409_v29 = vmul.f32 %v2401_v12, %v5090_v40  ;;  %v2410_v5 = vmul.f32 %v2402_v0, %v5091_v9  ;;  %v1280_v35 = vld [vmem:[#allocation2 + $0x26] sm:$0xff]  ;;  %v2153_v17 = vmul.f32 %v4250_v13, %v4442_v26  ;;  %5094 = vst [vmem:[#allocation24_spill] sm:$0xff] %v4463_v45  ;;  %v1306_v0 = vld [vmem:[#allocation2 + $0x30] sm:$0xff]  ;;  %v2154_v3 = vmul.f32 %v4250_v13, %v4444_v15  ;;  %v1307_v54 = vld [vmem:[#allocation2 + $0x38] sm:$0xff] }
 0x43b   : > { %v2083_v41 = vadd.f32 %v2075_v38, %v2057_v49  ;;  %v2084_v63 = vadd.f32 %v2076_v16, %v2058_v18  ;;  %v1219_v27 = vadd.f32 %v1211_v33, %v1193_v47  ;;  %v4458_v38 = vld [vmem:[%s5003_s4 + $0x5] ss:$0 sm:$0xff]  ;;  %v1220_v12 = vadd.f32 %v1212_v43, %v1194_v53  ;;  %v4469_v44 = vld [vmem:[#allocation2 + $0xae] sm:$0xff] }
 0x43c   : > { %v2417_v51 = vpack.c.bf16 %v2410_v5, %v2409_v29  ;;  %v1263_v62 = vmul.f32 %v4458_v38, %v1253_v28  ;;  %v1264_v16 = vmul.f32 %v4458_v38, %v1254_v34  ;;  %5095 = vst [vmem:[#allocation25_spill] sm:$0xff] %v4469_v44  ;;  %v2179_v43 = vmul.f32 %v4270_v58, %v4453_v2  ;;  %v1332_v40 = vld [vmem:[#allocation2 + $0x31] sm:$0xff]  ;;  %v2222_v5 = vld [vmem:[#allocation2 + $0xc0] sm:$0xff] }
 0x43d   : > { %v2109_v36 = vadd.f32 %v2101_v24, %v2083_v41  ;;  %v2110_v52 = vadd.f32 %v4400_v22, %v2084_v63  ;;  %v1245_v25 = vadd.f32 %v1237_v6, %v1219_v27  ;;  %v4474_v24 = vld [vmem:[%s5003_s4 + $0x6] ss:$0 sm:$0xff]  ;;  %v4480_v22 = vld [vmem:[#allocation2 + $0xb6] sm:$0xff]  ;;  %v1246_v28 = vadd.f32 %v1238_v57, %v1220_v12  ;;  %v2223_v6 = vld [vmem:[#allocation2 + $0xc8] sm:$0xff] }
 0x43e   : > { %2478 = vmatmul.bf16.vlgmr.msrb.gmra.mxu2 %v2417_v51  ;;  %v1289_v49 = vmul.f32 %v4474_v24, %v1279_v7  ;;  %5096 = vst [vmem:[#allocation22_spill] sm:$0xff] %v4480_v22  ;;  %v1290_v13 = vmul.f32 %v4474_v24, %v1280_v35  ;;  %v2180_v9 = vmul.f32 %v4270_v58, %v4463_v45  ;;  %v1333_v34 = vld [vmem:[#allocation2 + $0x39] sm:$0xff]  ;;  %v2248_v63 = vld [vmem:[#allocation2 + $0xc1] sm:$0xff]  ;;  %v4634_v2 = vld [vmem:[%s5003_s4 + $0x16] ss:$0 sm:$0xff] }
 0x43f   : > { %v2135_v33 = vadd.f32 %v4404_v48, %v2109_v36  ;;  %v2136_v29 = vadd.f32 %v4408_v30, %v2110_v52  ;;  %v1271_v18 = vadd.f32 %v1263_v62, %v1245_v25  ;;  %v4489_v48 = vld [vmem:[%s5003_s4 + $0x7] ss:$0 sm:$0xff]  ;;  %v2205_v53 = vmul.f32 %v4282_v46, %v4469_v44  ;;  %v1358_v7 = vld [vmem:[#allocation2 + $0x32] sm:$0xff]  ;;  %v4500_v62 = vld [vmem:[%s5003_s4 + $0x8] ss:$0 sm:$0xff] }
 0x440   : > { %v1316_v47 = vmul.f32 %v4489_v48, %v1306_v0  ;;  %v1272_v57 = vadd.f32 %v1264_v16, %v1246_v28  ;;  %v1317_v30 = vmul.f32 %v4489_v48, %v1307_v54  ;;  %v2206_v51 = vmul.f32 %v4282_v46, %v4480_v22  ;;  %v1359_v36 = vld [vmem:[#allocation2 + $0x3a] sm:$0xff]  ;;  %v2249_v16 = vld [vmem:[#allocation2 + $0xc9] sm:$0xff]  ;;  %v4620_v44 = vld [vmem:[%s5003_s4 + $0x15] ss:$0 sm:$0xff] }
 0x441   : > { %v2161_v41 = vadd.f32 %v2153_v17, %v2135_v33  ;;  %v2162_v58 = vadd.f32 %v2154_v3, %v2136_v29  ;;  %v1297_v27 = vadd.f32 %v1289_v49, %v1271_v18  ;;  %v1342_v35 = vmul.f32 %v4500_v62, %v1332_v40  ;;  %v1384_v3 = vld [vmem:[#allocation2 + $0x33] sm:$0xff]  ;;  %v2274_v49 = vld [vmem:[#allocation2 + $0xc2] sm:$0xff] }
 0x442   : > { %v2232_v12 = vmul.f32 %v4292_v10, %v2222_v5  ;;  %v1298_v0 = vadd.f32 %v1290_v13, %v1272_v57  ;;  %v1343_v52 = vmul.f32 %v4500_v62, %v1333_v34  ;;  %v2233_v46 = vmul.f32 %v4292_v10, %v2223_v6  ;;  %v4509_v33 = vld [vmem:[%s5003_s4 + $0x9] ss:$0 sm:$0xff]  ;;  %v2275_v13 = vld [vmem:[#allocation2 + $0xca] sm:$0xff]  ;;  %v4625_v45 = vld [vmem:[#allocation2 + $0x61] sm:$0xff] }
 0x443   : > { %v2187_v17 = vadd.f32 %v2179_v43, %v2161_v41  ;;  %v2188_v25 = vadd.f32 %v2180_v9, %v2162_v58  ;;  %v1324_v54 = vadd.f32 %v1316_v47, %v1297_v27  ;;  %v1368_v28 = vmul.f32 %v4509_v33, %v1358_v7  ;;  %v1385_v43 = vld [vmem:[#allocation2 + $0x3b] sm:$0xff]  ;;  %v2300_v47 = vld [vmem:[#allocation2 + $0xc3] sm:$0xff] }
 0x444   : > { %v2258_v29 = vmul.f32 %v4301_v4, %v2248_v63  ;;  %v1325_v5 = vadd.f32 %v1317_v30, %v1298_v0  ;;  %v1369_v18 = vmul.f32 %v4509_v33, %v1359_v36  ;;  %v1410_v9 = vld [vmem:[#allocation2 + $0x34] sm:$0xff]  ;;  %v2259_v10 = vmul.f32 %v4301_v4, %v2249_v16  ;;  %v4518_v6 = vld [vmem:[%s5003_s4 + $0xa] ss:$0 sm:$0xff]  ;;  %v2301_v30 = vld [vmem:[#allocation2 + $0xcb] sm:$0xff] }
 0x445   : > { %v2213_v40 = vadd.f32 %v2205_v53, %v2187_v17  ;;  %v2214_v34 = vadd.f32 %v2206_v51, %v2188_v25  ;;  %v1350_v41 = vadd.f32 %v1342_v35, %v1324_v54  ;;  %v1394_v57 = vmul.f32 %v4518_v6, %v1384_v3  ;;  %v1411_v53 = vld [vmem:[#allocation2 + $0x3c] sm:$0xff]  ;;  %v2326_v35 = vld [vmem:[#allocation2 + $0xc4] sm:$0xff] }
 0x446   : > { %v2284_v58 = vmul.f32 %v4311_v39, %v2274_v49  ;;  %v1351_v63 = vadd.f32 %v1343_v52, %v1325_v5  ;;  %v1395_v27 = vmul.f32 %v4518_v6, %v1385_v43  ;;  %v1436_v51 = vld [vmem:[#allocation2 + $0x35] sm:$0xff]  ;;  %v2285_v4 = vmul.f32 %v4311_v39, %v2275_v13  ;;  %v4527_v16 = vld [vmem:[%s5003_s4 + $0xb] ss:$0 sm:$0xff]  ;;  %v2327_v52 = vld [vmem:[#allocation2 + $0xcc] sm:$0xff] }
 0x447   : > { %v2240_v7 = vadd.f32 %v2232_v12, %v2213_v40  ;;  %v2241_v36 = vadd.f32 %v2233_v46, %v2214_v34  ;;  %v1376_v17 = vadd.f32 %v1368_v28, %v1350_v41  ;;  %v1420_v0 = vmul.f32 %v4527_v16, %v1410_v9  ;;  %v1437_v12 = vld [vmem:[#allocation2 + $0x3d] sm:$0xff]  ;;  %v2352_v28 = vld [vmem:[#allocation2 + $0xc5] sm:$0xff] }
 0x448   : > { %v2310_v25 = vmul.f32 %v4321_v55, %v2300_v47  ;;  %v1377_v49 = vadd.f32 %v1369_v18, %v1351_v63  ;;  %v1421_v54 = vmul.f32 %v4527_v16, %v1411_v53  ;;  %v1462_v46 = vld [vmem:[#allocation2 + $0x36] sm:$0xff]  ;;  %v2311_v39 = vmul.f32 %v4321_v55, %v2301_v30  ;;  %v4536_v13 = vld [vmem:[%s5003_s4 + $0xc] ss:$0 sm:$0xff]  ;;  %v2353_v18 = vld [vmem:[#allocation2 + $0xcd] sm:$0xff] }
 0x449   : > { %v2266_v3 = vadd.f32 %v2258_v29, %v2240_v7  ;;  %v2267_v43 = vadd.f32 %v2259_v10, %v2241_v36  ;;  %v1402_v40 = vadd.f32 %v1394_v57, %v1376_v17  ;;  %v1446_v5 = vmul.f32 %v4536_v13, %v1436_v51  ;;  %v1463_v29 = vld [vmem:[#allocation2 + $0x3e] sm:$0xff]  ;;  %v2378_v53 = vld [vmem:[#allocation2 + $0xc6] sm:$0xff]  ;;  %v2379_v51 = vld [vmem:[#allocation2 + $0xce] sm:$0xff] }
 0x44a   : > { %v2336_v34 = vmul.f32 %v4330_v37, %v2326_v35  ;;  %v1403_v47 = vadd.f32 %v1395_v27, %v1377_v49  ;;  %v1447_v41 = vmul.f32 %v4536_v13, %v1437_v12  ;;  %v2337_v55 = vmul.f32 %v4330_v37, %v2327_v52  ;;  %v4545_v7 = vld [vmem:[%s5003_s4 + $0xd] ss:$0 sm:$0xff]  ;;  %v4556_v12 = vld [vmem:[%s5003_s4 + $0xe] ss:$0 sm:$0xff]  ;;  %v4638_v15 = vld [vmem:[#allocation2 + $0x62] sm:$0xff] }
 0x44b   : > { %v2292_v9 = vadd.f32 %v2284_v58, %v2266_v3  ;;  %v2293_v10 = vadd.f32 %v2285_v4, %v2267_v43  ;;  %v1428_v57 = vadd.f32 %v1420_v0, %v1402_v40  ;;  %v1472_v30 = vmul.f32 %v4545_v7, %v1462_v46  ;;  %v4550_v35 = vld [vmem:[#allocation2 + $0x48] sm:$0xff]  ;;  %v1490_v0 = vld [vmem:[#allocation2 + $0x50] sm:$0xff] }
 0x44c   : > { %v2362_v58 = vmul.f32 %v4340_v19, %v2352_v28  ;;  %v1429_v36 = vadd.f32 %v1421_v54, %v1403_v47  ;;  %v1473_v27 = vmul.f32 %v4545_v7, %v1463_v29  ;;  %v2363_v37 = vmul.f32 %v4340_v19, %v2353_v18  ;;  %v1515_v46 = vld [vmem:[#allocation2 + $0x49] sm:$0xff]  ;;  %v1516_v28 = vld [vmem:[#allocation2 + $0x51] sm:$0xff] }
 0x44d   : > { %v2318_v63 = vadd.f32 %v2310_v25, %v2292_v9  ;;  %v2319_v4 = vadd.f32 %v2311_v39, %v2293_v10  ;;  %v1454_v17 = vadd.f32 %v1446_v5, %v1428_v57  ;;  %v1499_v3 = vmul.f32 %v4556_v12, %v4550_v35  ;;  %v4566_v40 = vld [vmem:[%s5003_s4 + $0xf] ss:$0 sm:$0xff]  ;;  %v1542_v10 = vld [vmem:[#allocation2 + $0x52] sm:$0xff] }
 0x44e   : > { %v2388_v52 = vmul.f32 %v4349_v42, %v2378_v53  ;;  %v1455_v49 = vadd.f32 %v1447_v41, %v1429_v36  ;;  %v1500_v54 = vmul.f32 %v4556_v12, %v1490_v0  ;;  %v2389_v19 = vmul.f32 %v4349_v42, %v2379_v51  ;;  %v1541_v18 = vld [vmem:[#allocation2 + $0x4a] sm:$0xff]  ;;  %v1568_v36 = vld [vmem:[#allocation2 + $0x53] sm:$0xff] }
 0x44f   : > { %v2344_v25 = vadd.f32 %v2336_v34, %v2318_v63  ;;  %v2345_v43 = vadd.f32 %v2337_v55, %v2319_v4  ;;  %v1480_v39 = vadd.f32 %v1472_v30, %v1454_v17  ;;  %v1525_v5 = vmul.f32 %v4566_v40, %v1515_v46  ;;  %v4573_v42 = vld [vmem:[%s5003_s4 + $0x10] ss:$0 sm:$0xff] }
 0x450   : > { %v1481_v9 = vadd.f32 %v1473_v27, %v1455_v49  ;;  %v1526_v34 = vmul.f32 %v4566_v40, %v1516_v28  ;;  %v1551_v55 = vmul.f32 %v4573_v42, %v1541_v18  ;;  %v1552_v30 = vmul.f32 %v4573_v42, %v1542_v10  ;;  %v1567_v63 = vld [vmem:[#allocation2 + $0x4b] sm:$0xff] }
 0x451   : > { %v2370_v29 = vadd.f32 %v2362_v58, %v2344_v25  ;;  %v2371_v47 = vadd.f32 %v2363_v37, %v2345_v43  ;;  %v1507_v41 = vadd.f32 %v1499_v3, %v1480_v39  ;;  %v4580_v27 = vld [vmem:[%s5003_s4 + $0x11] ss:$0 sm:$0xff]  ;;  %v4589_v43 = vld [vmem:[%s5003_s4 + $0x12] ss:$0 sm:$0xff]  ;;  %v5097_v39 = vld [vmem:[#allocation30_spill] sm:$0xff] }
 0x452   : > { %v1508_v57 = vadd.f32 %v1500_v54, %v1481_v9  ;;  %v1577_v4 = vmul.f32 %v4580_v27, %v1567_v63  ;;  %v1578_v3 = vmul.f32 %v4580_v27, %v1568_v36  ;;  %v1593_v25 = vld [vmem:[#allocation2 + $0x4c] sm:$0xff]  ;;  %v1594_v54 = vld [vmem:[#allocation2 + $0x54] sm:$0xff] }
 0x453   : > { %v2396_v53 = vadd.f32 %v2388_v52, %v2370_v29  ;;  %v2397_v58 = vadd.f32 %v2389_v19, %v2371_v47  ;;  %v1533_v51 = vadd.f32 %v1525_v5, %v1507_v41  ;;  %v1603_v19 = vmul.f32 %v4589_v43, %v1593_v25  ;;  %v5098_v47 = vld [vmem:[#allocation31_spill] sm:$0xff] }
 0x454   : > { %v1534_v17 = vadd.f32 %v1526_v34, %v1508_v57  ;;  %v1604_v9 = vmul.f32 %v4589_v43, %v1594_v54  ;;  %v1619_v34 = vld [vmem:[#allocation2 + $0x4d] sm:$0xff]  ;;  %v1620_v57 = vld [vmem:[#allocation2 + $0x55] sm:$0xff] }
 0x455   : > { %v2405_v37 = vadd.f32 %v4362_v23, %v2396_v53  ;;  %v2406_v52 = vadd.f32 %v4362_v23, %v2397_v58  ;;  %v1559_v49 = vadd.f32 %v1551_v55, %v1533_v51  ;;  %v4598_v55 = vld [vmem:[%s5003_s4 + $0x13] ss:$0 sm:$0xff] }
 0x456   : > { %v1560_v29 = vadd.f32 %v1552_v30, %v1534_v17  ;;  %v1629_v58 = vmul.f32 %v4598_v55, %v1619_v34  ;;  %v4601_v51 = vld [vmem:[#allocation2 + $0x4e] sm:$0xff] }
 0x457   : > { %v2413_v5 = vmul.f32 %v2405_v37, %v5097_v39  ;;  %v2414_v41 = vmul.f32 %v2406_v52, %v5098_v47  ;;  %v1585_v53 = vadd.f32 %v1577_v4, %v1559_v49  ;;  %v1630_v37 = vmul.f32 %v4598_v55, %v1620_v57  ;;  %v4607_v30 = vld [vmem:[%s5003_s4 + $0x14] ss:$0 sm:$0xff]  ;;  %v1646_v49 = vld [vmem:[#allocation2 + $0x56] sm:$0xff]  ;;  %v4611_v39 = vld [vmem:[#allocation2 + $0x60] sm:$0xff] }
 0x458   : > { %v1586_v23 = vadd.f32 %v1578_v3, %v1560_v29  ;;  %v1655_v4 = vmul.f32 %v4607_v30, %v4601_v51  ;;  %v1145_v47 = vmul.f32 %v4413_v1, %v4550_v35  ;;  %v1146_v3 = vmul.f32 %v4413_v1, %v1490_v0 }
 0x459   : > { %v2419_v17 = vpack.c.bf16 %v2414_v41, %v2413_v5  ;;  %v1611_v52 = vadd.f32 %v1603_v19, %v1585_v53  ;;  %v1656_v22 = vmul.f32 %v4607_v30, %v1646_v49  ;;  %v1681_v5 = vmul.f32 %v4620_v44, %v4611_v39  ;;  %v1672_v53 = vld [vmem:[#allocation2 + $0x68] sm:$0xff] }
 0x45a   : > { %v1612_v29 = vadd.f32 %v1604_v9, %v1586_v23  ;;  %v1163_v19 = vmul.f32 %v4420_v8, %v1515_v46  ;;  %v1164_v1 = vmul.f32 %v4420_v8, %v1516_v28  ;;  %v1189_v23 = vmul.f32 %v4427_v32, %v1541_v18 }
 0x45b   : > { %2488 = vmatmul.bf16.vlgmr.msrb.gmra.mxu3 %v2419_v17  ;;  %v1637_v41 = vadd.f32 %v1629_v58, %v1611_v52  ;;  %v1190_v35 = vmul.f32 %v4427_v32, %v1542_v10  ;;  %v1682_v9 = vmul.f32 %v4620_v44, %v1672_v53  ;;  %v1707_v46 = vmul.f32 %v4634_v2, %v4625_v45  ;;  %v1698_v52 = vld [vmem:[#allocation2 + $0x69] sm:$0xff] }
 0x45c   : > { %v1638_v0 = vadd.f32 %v1630_v37, %v1612_v29  ;;  %v1171_v58 = vadd.f32 %v1163_v19, %v1145_v47  ;;  %v1172_v8 = vadd.f32 %v1164_v1, %v1146_v3  ;;  %v1215_v28 = vmul.f32 %v4436_v50, %v1567_v63  ;;  %v4646_v37 = vld [vmem:[%s5003_s4 + $0x17] ss:$0 sm:$0xff]  ;;  %v1724_v19 = vld [vmem:[#allocation2 + $0x6a] sm:$0xff]  ;;  %v4658_v1 = vld [vmem:[%s5003_s4 + $0x18] ss:$0 sm:$0xff] }
 0x45d   : > { %v1663_v17 = vadd.f32 %v1655_v4, %v1637_v41  ;;  %v1216_v32 = vmul.f32 %v4436_v50, %v1568_v36  ;;  %v1708_v10 = vmul.f32 %v4634_v2, %v1698_v52  ;;  %v1733_v47 = vmul.f32 %v4646_v37, %v4638_v15  ;;  %v4650_v41 = vld [vmem:[#allocation2 + $0x63] sm:$0xff] }
 0x45e   : > { %v1664_v18 = vadd.f32 %v1656_v22, %v1638_v0  ;;  %v1197_v4 = vadd.f32 %v1189_v23, %v1171_v58  ;;  %v1198_v3 = vadd.f32 %v1190_v35, %v1172_v8  ;;  %v1241_v63 = vmul.f32 %v4449_v21, %v1593_v25  ;;  %v1750_v58 = vld [vmem:[#allocation2 + $0x6b] sm:$0xff]  ;;  %v4670_v8 = vld [vmem:[%s5003_s4 + $0x19] ss:$0 sm:$0xff] }
 0x45f   : > { %v1689_v29 = vadd.f32 %v1681_v5, %v1663_v17  ;;  %v1242_v50 = vmul.f32 %v4449_v21, %v1594_v54  ;;  %v1734_v36 = vmul.f32 %v4646_v37, %v1724_v19  ;;  %v1759_v23 = vmul.f32 %v4658_v1, %v4650_v41  ;;  %v4662_v17 = vld [vmem:[#allocation2 + $0x64] sm:$0xff] }
 0x460   : > { %v1690_v22 = vadd.f32 %v1682_v9, %v1664_v18  ;;  %v1223_v5 = vadd.f32 %v1215_v28, %v1197_v4  ;;  %v1224_v35 = vadd.f32 %v1216_v32, %v1198_v3  ;;  %v1267_v25 = vmul.f32 %v4458_v38, %v1619_v34  ;;  %v1776_v4 = vld [vmem:[#allocation2 + $0x6c] sm:$0xff]  ;;  %v4683_v3 = vld [vmem:[%s5003_s4 + $0x1a] ss:$0 sm:$0xff] }
 0x461   : > { %v1715_v0 = vadd.f32 %v1707_v46, %v1689_v29  ;;  %v1268_v21 = vmul.f32 %v4458_v38, %v1620_v57  ;;  %v1760_v9 = vmul.f32 %v4658_v1, %v1750_v58  ;;  %v1785_v28 = vmul.f32 %v4670_v8, %v4662_v17  ;;  %v4674_v29 = vld [vmem:[#allocation2 + $0x65] sm:$0xff] }
 0x462   : > { %v1716_v54 = vadd.f32 %v1708_v10, %v1690_v22  ;;  %v1249_v46 = vadd.f32 %v1241_v63, %v1223_v5  ;;  %v1250_v32 = vadd.f32 %v1242_v50, %v1224_v35  ;;  %v1293_v38 = vmul.f32 %v4474_v24, %v4601_v51  ;;  %v1802_v5 = vld [vmem:[#allocation2 + $0x6d] sm:$0xff]  ;;  %v4696_v35 = vld [vmem:[%s5003_s4 + $0x1b] ss:$0 sm:$0xff] }
 0x463   : > { %v1741_v18 = vadd.f32 %v1733_v47, %v1715_v0  ;;  %v1294_v34 = vmul.f32 %v4474_v24, %v1646_v49  ;;  %v1786_v10 = vmul.f32 %v4670_v8, %v1776_v4  ;;  %v1811_v47 = vmul.f32 %v4683_v3, %v4674_v29  ;;  %v4687_v50 = vld [vmem:[#allocation2 + $0x66] sm:$0xff] }
 0x464   : > { %v1742_v57 = vadd.f32 %v1734_v36, %v1716_v54  ;;  %v1275_v63 = vadd.f32 %v1267_v25, %v1249_v46  ;;  %v1276_v0 = vadd.f32 %v1268_v21, %v1250_v32  ;;  %v1320_v24 = vmul.f32 %v4489_v48, %v4611_v39  ;;  %v1828_v46 = vld [vmem:[#allocation2 + $0x6e] sm:$0xff]  ;;  %v4700_v21 = vld [vmem:[#allocation2 + $0x78] sm:$0xff] }
 0x465   : > { %v1767_v22 = vadd.f32 %v1759_v23, %v1741_v18  ;;  %v1321_v51 = vmul.f32 %v4489_v48, %v1672_v53  ;;  %v1812_v36 = vmul.f32 %v4683_v3, %v1802_v5  ;;  %v1837_v23 = vmul.f32 %v4696_v35, %v4687_v50  ;;  %v4709_v32 = vld [vmem:[%s5003_s4 + $0x1c] ss:$0 sm:$0xff] }
 0x466   : > { %v1768_v49 = vadd.f32 %v1760_v9, %v1742_v57  ;;  %v1301_v25 = vadd.f32 %v1293_v38, %v1275_v63  ;;  %v1302_v18 = vadd.f32 %v1294_v34, %v1276_v0  ;;  %v1346_v48 = vmul.f32 %v4500_v62, %v4625_v45  ;;  %v1855_v63 = vld [vmem:[#allocation2 + $0x80] sm:$0xff]  ;;  %v4722_v0 = vld [vmem:[%s5003_s4 + $0x1d] ss:$0 sm:$0xff] }
 0x467   : > { %v1793_v54 = vadd.f32 %v1785_v28, %v1767_v22  ;;  %v1347_v39 = vmul.f32 %v4500_v62, %v1698_v52  ;;  %v1838_v9 = vmul.f32 %v4696_v35, %v1828_v46  ;;  %v1864_v28 = vmul.f32 %v4709_v32, %v4700_v21  ;;  %v4713_v34 = vld [vmem:[#allocation2 + $0x79] sm:$0xff] }
 0x468   : > { %v1794_v53 = vadd.f32 %v1786_v10, %v1768_v49  ;;  %v1328_v38 = vadd.f32 %v1320_v24, %v1301_v25  ;;  %v1329_v22 = vadd.f32 %v1321_v51, %v1302_v18  ;;  %v1372_v45 = vmul.f32 %v4509_v33, %v4638_v15  ;;  %v1881_v25 = vld [vmem:[#allocation2 + $0x81] sm:$0xff]  ;;  %v4733_v18 = vld [vmem:[%s5003_s4 + $0x1e] ss:$0 sm:$0xff] }
 0x469   : > { %v1819_v57 = vadd.f32 %v1811_v47, %v1793_v54  ;;  %v1373_v62 = vmul.f32 %v4509_v33, %v1724_v19  ;;  %v1865_v10 = vmul.f32 %v4709_v32, %v1855_v63  ;;  %v1890_v47 = vmul.f32 %v4722_v0, %v4713_v34  ;;  %v1906_v51 = vld [vmem:[#allocation2 + $0x7a] sm:$0xff] }
 0x46a   : > { %v1820_v52 = vadd.f32 %v1812_v36, %v1794_v53  ;;  %v1354_v24 = vadd.f32 %v1346_v48, %v1328_v38  ;;  %v1355_v54 = vadd.f32 %v1347_v39, %v1329_v22  ;;  %v1398_v15 = vmul.f32 %v4518_v6, %v4650_v41  ;;  %v1907_v38 = vld [vmem:[#allocation2 + $0x82] sm:$0xff]  ;;  %v4743_v22 = vld [vmem:[%s5003_s4 + $0x1f] ss:$0 sm:$0xff] }
 0x46b   : > { %v1845_v49 = vadd.f32 %v1837_v23, %v1819_v57  ;;  %v1399_v33 = vmul.f32 %v4518_v6, %v1750_v58  ;;  %v1891_v36 = vmul.f32 %v4722_v0, %v1881_v25  ;;  %v1916_v53 = vmul.f32 %v4733_v18, %v1906_v51  ;;  %v1932_v57 = vld [vmem:[#allocation2 + $0x7b] sm:$0xff] }
 0x46c   : > { %v1846_v19 = vadd.f32 %v1838_v9, %v1820_v52  ;;  %v1380_v48 = vadd.f32 %v1372_v45, %v1354_v24  ;;  %v1381_v39 = vadd.f32 %v1373_v62, %v1355_v54  ;;  %v1424_v41 = vmul.f32 %v4527_v16, %v4662_v17  ;;  %v1933_v24 = vld [vmem:[#allocation2 + $0x83] sm:$0xff]  ;;  %v4753_v54 = vld [vmem:[%s5003_s4 + $0x20] ss:$0 sm:$0xff] }
 0x46d   : > { %v1872_v23 = vadd.f32 %v1864_v28, %v1845_v49  ;;  %v1425_v6 = vmul.f32 %v4527_v16, %v1776_v4  ;;  %v1917_v9 = vmul.f32 %v4733_v18, %v1907_v38  ;;  %v1942_v52 = vmul.f32 %v4743_v22, %v1932_v57  ;;  %v1958_v49 = vld [vmem:[#allocation2 + $0x7c] sm:$0xff]  ;;  %5099 = vst [vmem:[#allocation23_spill] sm:$0xff] %v4753_v54 }
 0x46e   : > { %v1873_v58 = vadd.f32 %v1865_v10, %v1846_v19  ;;  %v1406_v45 = vadd.f32 %v1398_v15, %v1380_v48  ;;  %v1407_v62 = vadd.f32 %v1399_v33, %v1381_v39  ;;  %v1450_v17 = vmul.f32 %v4536_v13, %v4674_v29  ;;  %v1959_v48 = vld [vmem:[#allocation2 + $0x84] sm:$0xff]  ;;  %v4763_v39 = vld [vmem:[%s5003_s4 + $0x21] ss:$0 sm:$0xff] }
 0x46f   : > { %v1898_v28 = vadd.f32 %v1890_v47, %v1872_v23  ;;  %v1451_v16 = vmul.f32 %v4536_v13, %v1802_v5  ;;  %v1943_v10 = vmul.f32 %v4743_v22, %v1933_v24  ;;  %v1968_v19 = vmul.f32 %v4753_v54, %v1958_v49  ;;  %v1984_v23 = vld [vmem:[#allocation2 + $0x7d] sm:$0xff]  ;;  %5100 = vst [vmem:[#allocation26_spill] sm:$0xff] %v4763_v39 }
 0x470   : > { %v1899_v4 = vadd.f32 %v1891_v36, %v1873_v58  ;;  %v1432_v15 = vadd.f32 %v1424_v41, %v1406_v45  ;;  %v1433_v33 = vadd.f32 %v1425_v6, %v1407_v62  ;;  %v1476_v29 = vmul.f32 %v4545_v7, %v4687_v50  ;;  %v1985_v45 = vld [vmem:[#allocation2 + $0x85] sm:$0xff]  ;;  %v4773_v62 = vld [vmem:[%s5003_s4 + $0x22] ss:$0 sm:$0xff] }
 0x471   : > { %v1924_v47 = vadd.f32 %v1916_v53, %v1898_v28  ;;  %v1477_v13 = vmul.f32 %v4545_v7, %v1828_v46  ;;  %v1969_v36 = vmul.f32 %v4753_v54, %v1959_v48  ;;  %v1994_v58 = vmul.f32 %v4763_v39, %v1984_v23  ;;  %v2010_v28 = vld [vmem:[#allocation2 + $0x7e] sm:$0xff] }
 0x472   : > { %v1925_v5 = vadd.f32 %v1917_v9, %v1899_v4  ;;  %v1458_v41 = vadd.f32 %v1450_v17, %v1432_v15  ;;  %v1459_v6 = vadd.f32 %v1451_v16, %v1433_v33  ;;  %v1503_v50 = vmul.f32 %v4556_v12, %v4700_v21  ;;  %v2011_v15 = vld [vmem:[#allocation2 + $0x86] sm:$0xff]  ;;  %v2038_v54 = vld [vmem:[#allocation2 + $0x98] sm:$0xff] }
 0x473   : > { %v1950_v53 = vadd.f32 %v1942_v52, %v1924_v47  ;;  %v1504_v7 = vmul.f32 %v4556_v12, %v1855_v63  ;;  %v1995_v9 = vmul.f32 %v4763_v39, %v1985_v45  ;;  %v2020_v4 = vmul.f32 %v4773_v62, %v2010_v28 }
 0x474   : > { %v1951_v46 = vadd.f32 %v1943_v10, %v1925_v5  ;;  %v1484_v17 = vadd.f32 %v1476_v29, %v1458_v41  ;;  %v1485_v47 = vadd.f32 %v1477_v13, %v1459_v6  ;;  %v1529_v16 = vmul.f32 %v4566_v40, %v4713_v34  ;;  %v2037_v10 = vld [vmem:[#allocation2 + $0x90] sm:$0xff]  ;;  %v4793_v6 = vld [vmem:[%s5003_s4 + $0x24] ss:$0 sm:$0xff] }
 0x475   : > { %v1976_v52 = vadd.f32 %v1968_v19, %v1950_v53  ;;  %v1530_v21 = vmul.f32 %v4566_v40, %v1881_v25  ;;  %v2021_v63 = vmul.f32 %v4773_v62, %v2011_v15  ;;  %v1555_v5 = vmul.f32 %v4573_v42, %v1906_v51  ;;  %v4784_v19 = vld [vmem:[%s5003_s4 + $0x23] ss:$0 sm:$0xff] }
 0x476   : > { %v1977_v12 = vadd.f32 %v1969_v36, %v1951_v46  ;;  %v1511_v33 = vadd.f32 %v1503_v50, %v1484_v17  ;;  %v2047_v29 = vmul.f32 %v4784_v19, %v2037_v10  ;;  %v1512_v13 = vadd.f32 %v1504_v7, %v1485_v47  ;;  %v2063_v36 = vld [vmem:[#allocation2 + $0x91] sm:$0xff] }
 0x477   : > { %v2002_v39 = vadd.f32 %v1994_v58, %v1976_v52  ;;  %v1556_v34 = vmul.f32 %v4573_v42, %v1907_v38  ;;  %v2048_v25 = vmul.f32 %v4784_v19, %v2038_v54  ;;  %v1581_v53 = vmul.f32 %v4580_v27, %v1932_v57  ;;  %v2064_v58 = vld [vmem:[#allocation2 + $0x99] sm:$0xff] }
 0x478   : > { %v2003_v40 = vadd.f32 %v1995_v9, %v1977_v12  ;;  %v1537_v41 = vadd.f32 %v1529_v16, %v1511_v33  ;;  %v2073_v50 = vmul.f32 %v4793_v6, %v2063_v36  ;;  %v1538_v46 = vadd.f32 %v1530_v21, %v1512_v13  ;;  %v2089_v9 = vld [vmem:[#allocation2 + $0x92] sm:$0xff] }
 0x479   : > { %v2028_v51 = vadd.f32 %v2020_v4, %v2002_v39  ;;  %v1582_v7 = vmul.f32 %v4580_v27, %v1933_v24  ;;  %v2074_v38 = vmul.f32 %v4793_v6, %v2064_v58  ;;  %v1607_v52 = vmul.f32 %v4589_v43, %v1958_v49  ;;  %v2090_v39 = vld [vmem:[#allocation2 + $0x9a] sm:$0xff]  ;;  %v4802_v4 = vld [vmem:[%s5003_s4 + $0x25] ss:$0 sm:$0xff] }
 0x47a   : > { %v2029_v42 = vadd.f32 %v2021_v63, %v2003_v40  ;;  %v1563_v17 = vadd.f32 %v1555_v5, %v1537_v41  ;;  %v2099_v47 = vmul.f32 %v4802_v4, %v2089_v9  ;;  %v1564_v16 = vadd.f32 %v1556_v34, %v1538_v46  ;;  %v2115_v12 = vld [vmem:[#allocation2 + $0x93] sm:$0xff]  ;;  %v2116_v5 = vld [vmem:[#allocation2 + $0x9b] sm:$0xff] }
 0x47b   : > { %v2055_v57 = vadd.f32 %v2047_v29, %v2028_v51  ;;  %v1608_v21 = vmul.f32 %v4589_v43, %v1959_v48  ;;  %v2100_v24 = vmul.f32 %v4802_v4, %v2090_v39  ;;  %v1633_v33 = vmul.f32 %v4598_v55, %v1984_v23  ;;  %v4811_v29 = vld [vmem:[%s5003_s4 + $0x26] ss:$0 sm:$0xff]  ;;  %v2142_v51 = vld [vmem:[#allocation2 + $0x9c] sm:$0xff] }
 0x47c   : > { %v2056_v27 = vadd.f32 %v2048_v25, %v2029_v42  ;;  %v1589_v63 = vadd.f32 %v1581_v53, %v1563_v17  ;;  %v2125_v13 = vmul.f32 %v4811_v29, %v2115_v12  ;;  %v1590_v40 = vadd.f32 %v1582_v7, %v1564_v16  ;;  %v2141_v25 = vld [vmem:[#allocation2 + $0x94] sm:$0xff] }
 0x47d   : > { %v2081_v49 = vadd.f32 %v2073_v50, %v2055_v57  ;;  %v1634_v34 = vmul.f32 %v4598_v55, %v1985_v45  ;;  %v2126_v48 = vmul.f32 %v4811_v29, %v2116_v5  ;;  %v1659_v53 = vmul.f32 %v4607_v30, %v2010_v28  ;;  %v4820_v50 = vld [vmem:[%s5003_s4 + $0x27] ss:$0 sm:$0xff]  ;;  %v2168_v57 = vld [vmem:[#allocation2 + $0x9d] sm:$0xff] }
 0x47e   : > { %v2082_v43 = vadd.f32 %v2074_v38, %v2056_v27  ;;  %v1615_v41 = vadd.f32 %v1607_v52, %v1589_v63  ;;  %v2151_v46 = vmul.f32 %v4820_v50, %v2141_v25  ;;  %v1616_v42 = vadd.f32 %v1608_v21, %v1590_v40  ;;  %v2167_v38 = vld [vmem:[#allocation2 + $0x95] sm:$0xff] }
 0x47f   : > { %v2107_v23 = vadd.f32 %v2099_v47, %v2081_v49  ;;  %v1660_v7 = vmul.f32 %v4607_v30, %v2011_v15  ;;  %v2152_v45 = vmul.f32 %v4820_v50, %v2142_v51  ;;  %v1685_v52 = vmul.f32 %v4620_v44, %v2037_v10  ;;  %v4829_v47 = vld [vmem:[%s5003_s4 + $0x28] ss:$0 sm:$0xff]  ;;  %v2194_v49 = vld [vmem:[#allocation2 + $0x9e] sm:$0xff] }
 0x480   : > { %v2108_v55 = vadd.f32 %v2100_v24, %v2082_v43  ;;  %v1641_v17 = vadd.f32 %v1633_v33, %v1615_v41  ;;  %v2177_v16 = vmul.f32 %v4829_v47, %v2167_v38  ;;  %v1642_v27 = vadd.f32 %v1634_v34, %v1616_v42  ;;  %v2193_v24 = vld [vmem:[#allocation2 + $0x96] sm:$0xff] }
 0x481   : > { %v2133_v28 = vadd.f32 %v2125_v13, %v2107_v23  ;;  %v1686_v21 = vmul.f32 %v4620_v44, %v2038_v54  ;;  %v2178_v15 = vmul.f32 %v4829_v47, %v2168_v57  ;;  %v1711_v33 = vmul.f32 %v4634_v2, %v2063_v36  ;;  %v4838_v13 = vld [vmem:[%s5003_s4 + $0x29] ss:$0 sm:$0xff]  ;;  %v4847_v36 = vld [vmem:[%s5003_s4 + $0x2a] ss:$0 sm:$0xff] }
 0x482   : > { %v2134_v30 = vadd.f32 %v2126_v48, %v2108_v55  ;;  %v1667_v63 = vadd.f32 %v1659_v53, %v1641_v17  ;;  %v2203_v40 = vmul.f32 %v4838_v13, %v2193_v24  ;;  %v1668_v43 = vadd.f32 %v1660_v7, %v1642_v27 }
 0x483   : > { %v2159_v10 = vadd.f32 %v2151_v46, %v2133_v28  ;;  %v1712_v34 = vmul.f32 %v4634_v2, %v2064_v58  ;;  %v2204_v54 = vmul.f32 %v4838_v13, %v2194_v49  ;;  %v1737_v41 = vmul.f32 %v4646_v37, %v2089_v9 }
 0x484   : > { %v2160_v44 = vadd.f32 %v2152_v45, %v2134_v30  ;;  %v1693_v48 = vadd.f32 %v1685_v52, %v1667_v63  ;;  %v2230_v23 = vmul.f32 %v4847_v36, %v4367_v14  ;;  %v1694_v46 = vadd.f32 %v1686_v21, %v1668_v43  ;;  %v4858_v45 = vld [vmem:[%s5003_s4 + $0x2b] ss:$0 sm:$0xff] }
 0x485   : > { %v2185_v53 = vadd.f32 %v2177_v16, %v2159_v10  ;;  %v1738_v42 = vmul.f32 %v4646_v37, %v2090_v39  ;;  %v2231_v2 = vmul.f32 %v4847_v36, %v4369_v59  ;;  %v1763_v55 = vmul.f32 %v4658_v1, %v2115_v12  ;;  %v4869_v16 = vld [vmem:[%s5003_s4 + $0x2c] ss:$0 sm:$0xff] }
 0x486   : > { %v2186_v7 = vadd.f32 %v2178_v15, %v2160_v44  ;;  %v1719_v58 = vadd.f32 %v1711_v33, %v1693_v48  ;;  %v2256_v17 = vmul.f32 %v4858_v45, %v4374_v11  ;;  %v1720_v14 = vadd.f32 %v1712_v34, %v1694_v46  ;;  %v4880_v15 = vld [vmem:[%s5003_s4 + $0x2d] ss:$0 sm:$0xff]  ;;  %v4891_v34 = vld [vmem:[%s5003_s4 + $0x2e] ss:$0 sm:$0xff]  ;;  %v5101_v48 = vld [vmem:[#allocation21_spill] sm:$0xff] }
 0x487   : > { %v2211_v9 = vadd.f32 %v2203_v40, %v2185_v53  ;;  %v1764_v52 = vmul.f32 %v4658_v1, %v2116_v5  ;;  %v2257_v39 = vmul.f32 %v4858_v45, %v4377_v61  ;;  %v1789_v28 = vmul.f32 %v4670_v8, %v2141_v25  ;;  %v1859_v40 = vld [vmem:[#allocation2 + $0xb0] sm:$0xff]  ;;  %v4902_v46 = vld [vmem:[%s5003_s4 + $0x2f] ss:$0 sm:$0xff] }
 0x488   : > { %v2212_v37 = vadd.f32 %v2204_v54, %v2186_v7  ;;  %v1745_v59 = vadd.f32 %v1737_v41, %v1719_v58  ;;  %v2282_v27 = vmul.f32 %v4869_v16, %v4379_v31  ;;  %v1746_v11 = vadd.f32 %v1738_v42, %v1720_v14  ;;  %v1885_v53 = vld [vmem:[#allocation2 + $0xb1] sm:$0xff]  ;;  %v5103_v58 = vld [vmem:[#allocation24_spill] sm:$0xff] }
 0x489   : > { %v2238_v12 = vadd.f32 %v2230_v23, %v2211_v9  ;;  %v1790_v21 = vmul.f32 %v4670_v8, %v2142_v51  ;;  %v2283_v5 = vmul.f32 %v4869_v16, %v4381_v60  ;;  %v1815_v30 = vmul.f32 %v4683_v3, %v2167_v38  ;;  %v1858_v8 = vld [vmem:[#allocation2 + $0xa8] sm:$0xff]  ;;  %v5102_v42 = vld [vmem:[#allocation17_spill] sm:$0xff] }
 0x48a   : > { %v2239_v1 = vadd.f32 %v2231_v2, %v2212_v37  ;;  %v1771_v61 = vadd.f32 %v1763_v55, %v1745_v59  ;;  %v2308_v63 = vmul.f32 %v4880_v15, %v4388_v20  ;;  %v1772_v31 = vadd.f32 %v1764_v52, %v1746_v11  ;;  %v1911_v14 = vld [vmem:[#allocation2 + $0xb2] sm:$0xff]  ;;  %v4913_v37 = vld [vmem:[%s5003_s4 + $0x30] ss:$0 sm:$0xff] }
 0x48b   : > { %v2264_v25 = vadd.f32 %v2256_v17, %v2238_v12  ;;  %v1816_v33 = vmul.f32 %v4683_v3, %v2168_v57  ;;  %v2309_v60 = vmul.f32 %v4880_v15, %v4392_v56  ;;  %v1841_v38 = vmul.f32 %v4696_v35, %v2193_v24  ;;  %v1884_v57 = vld [vmem:[#allocation2 + $0xa9] sm:$0xff]  ;;  %v5105_v11 = vld [vmem:[#allocation22_spill] sm:$0xff] }
 0x48c   : > { %v2265_v51 = vadd.f32 %v2257_v39, %v2239_v1  ;;  %v1797_v10 = vadd.f32 %v1789_v28, %v1771_v61  ;;  %v2334_v20 = vmul.f32 %v4891_v34, %v4442_v26  ;;  %v1798_v44 = vadd.f32 %v1790_v21, %v1772_v31  ;;  %v5104_v39 = vld [vmem:[#allocation25_spill] sm:$0xff] }
 0x48d   : > { %v2290_v43 = vadd.f32 %v2282_v27, %v2264_v25  ;;  %v1842_v3 = vmul.f32 %v4696_v35, %v2194_v49  ;;  %v2335_v56 = vmul.f32 %v4891_v34, %v5101_v48  ;;  %v1868_v24 = vmul.f32 %v4709_v32, %v1858_v8  ;;  %v1910_v49 = vld [vmem:[#allocation2 + $0xaa] sm:$0xff]  ;;  %v1937_v61 = vld [vmem:[#allocation2 + $0xb3] sm:$0xff] }
 0x48e   : > { %v2291_v54 = vadd.f32 %v2283_v5, %v2265_v51  ;;  %v1823_v41 = vadd.f32 %v1815_v30, %v1797_v10  ;;  %v2360_v26 = vmul.f32 %v4902_v46, %v5102_v42  ;;  %v1824_v7 = vadd.f32 %v1816_v33, %v1798_v44  ;;  %v1936_v12 = vld [vmem:[#allocation2 + $0xab] sm:$0xff]  ;;  %v5106_v44 = vld [vmem:[#allocation23_spill] sm:$0xff] }
 0x48f   : > { %v2316_v23 = vadd.f32 %v2308_v63, %v2290_v43  ;;  %v1869_v35 = vmul.f32 %v4709_v32, %v1859_v40  ;;  %v2361_v55 = vmul.f32 %v4902_v46, %v5103_v58  ;;  %v1894_v17 = vmul.f32 %v4722_v0, %v1884_v57  ;;  %v1962_v31 = vld [vmem:[#allocation2 + $0xac] sm:$0xff]  ;;  %v1989_v57 = vld [vmem:[#allocation2 + $0xb5] sm:$0xff] }
 0x490   : > { %v2317_v2 = vadd.f32 %v2309_v60, %v2291_v54  ;;  %v1849_v9 = vadd.f32 %v1841_v38, %v1823_v41  ;;  %v2386_v59 = vmul.f32 %v4913_v37, %v5104_v39  ;;  %v1850_v28 = vadd.f32 %v1842_v3, %v1824_v7  ;;  %v1963_v60 = vld [vmem:[#allocation2 + $0xb4] sm:$0xff]  ;;  %v5107_v54 = vld [vmem:[#allocation20_spill] sm:$0xff] }
 0x491   : > { %v2342_v52 = vadd.f32 %v2334_v20, %v2316_v23  ;;  %v1895_v32 = vmul.f32 %v4722_v0, %v1885_v53  ;;  %v2387_v21 = vmul.f32 %v4913_v37, %v5105_v11  ;;  %v1920_v5 = vmul.f32 %v4733_v18, %v1910_v49  ;;  %v1988_v40 = vld [vmem:[#allocation2 + $0xad] sm:$0xff]  ;;  %v5108_v23 = vld [vmem:[#allocation26_spill] sm:$0xff] }
 0x492   : > { %v2343_v27 = vadd.f32 %v2335_v56, %v2317_v2  ;;  %v1876_v1 = vadd.f32 %v1868_v24, %v1849_v9  ;;  %v1877_v25 = vadd.f32 %v1869_v35, %v1850_v28  ;;  %v1921_v63 = vmul.f32 %v4733_v18, %v1911_v14  ;;  %v2014_v41 = vld [vmem:[#allocation2 + $0xae] sm:$0xff]  ;;  %v2041_v2 = vld [vmem:[#allocation2 + $0xc0] sm:$0xff] }
 0x493   : > { %v2368_v30 = vadd.f32 %v2360_v26, %v2342_v52  ;;  %v1946_v51 = vmul.f32 %v4743_v22, %v1936_v12  ;;  %v1947_v38 = vmul.f32 %v4743_v22, %v1937_v61  ;;  %v1972_v3 = vmul.f32 %v5106_v44, %v1962_v31  ;;  %v2015_v26 = vld [vmem:[#allocation2 + $0xb6] sm:$0xff]  ;;  %v5109_v7 = vld [vmem:[#allocation28_spill] sm:$0xff] }
 0x494   : > { %v2369_v33 = vadd.f32 %v2361_v55, %v2343_v27  ;;  %v1902_v8 = vadd.f32 %v1894_v17, %v1876_v1  ;;  %v1903_v10 = vadd.f32 %v1895_v32, %v1877_v25  ;;  %v1973_v18 = vmul.f32 %v5106_v44, %v1963_v60  ;;  %v5110_v58 = vld [vmem:[#allocation29_spill] sm:$0xff]  ;;  %v2042_v14 = vld [vmem:[#allocation2 + $0xc8] sm:$0xff] }
 0x495   : > { %v2394_v0 = vadd.f32 %v2386_v59, %v2368_v30  ;;  %v1998_v42 = vmul.f32 %v5108_v23, %v1988_v40  ;;  %v1999_v49 = vmul.f32 %v5108_v23, %v1989_v57  ;;  %v2024_v17 = vmul.f32 %v4773_v62, %v2014_v41  ;;  %v2067_v59 = vld [vmem:[#allocation2 + $0xc1] sm:$0xff]  ;;  %v2068_v27 = vld [vmem:[#allocation2 + $0xc9] sm:$0xff]  ;;  %v2224_v23 = vld [vmem:[#allocation2 + $0xd8] sm:$0xff] }
 0x496   : > { %v2395_v43 = vadd.f32 %v2387_v21, %v2369_v33  ;;  %v1928_v20 = vadd.f32 %v1920_v5, %v1902_v8  ;;  %v1929_v56 = vadd.f32 %v1921_v63, %v1903_v10  ;;  %v2025_v39 = vmul.f32 %v4773_v62, %v2015_v26  ;;  %v2093_v1 = vld [vmem:[#allocation2 + $0xc2] sm:$0xff]  ;;  %v2094_v30 = vld [vmem:[#allocation2 + $0xca] sm:$0xff] }
 0x497   : > { %v2403_v48 = vadd.f32 %v5107_v54, %v2394_v0  ;;  %v2051_v12 = vmul.f32 %v4784_v19, %v2041_v2  ;;  %v2052_v21 = vmul.f32 %v4784_v19, %v2042_v14  ;;  %v2077_v61 = vmul.f32 %v4793_v6, %v2067_v59  ;;  %v2119_v31 = vld [vmem:[#allocation2 + $0xc3] sm:$0xff]  ;;  %v2120_v8 = vld [vmem:[#allocation2 + $0xcb] sm:$0xff]  ;;  %v2302_v59 = vld [vmem:[#allocation2 + $0xdb] sm:$0xff] }
 0x498   : > { %v2404_v24 = vadd.f32 %v5107_v54, %v2395_v43  ;;  %v1954_v53 = vadd.f32 %v1946_v51, %v1928_v20  ;;  %v1955_v35 = vadd.f32 %v1947_v38, %v1929_v56  ;;  %v2078_v63 = vmul.f32 %v4793_v6, %v2068_v27  ;;  %v2145_v0 = vld [vmem:[#allocation2 + $0xc4] sm:$0xff]  ;;  %v2146_v38 = vld [vmem:[#allocation2 + $0xcc] sm:$0xff] }
 0x499   : > { %v2411_v22 = vmul.f32 %v2403_v48, %v5109_v7  ;;  %v2103_v33 = vmul.f32 %v4802_v4, %v2093_v1  ;;  %v2104_v60 = vmul.f32 %v4802_v4, %v2094_v30  ;;  %v2129_v19 = vmul.f32 %v4811_v29, %v2119_v31  ;;  %v2171_v20 = vld [vmem:[#allocation2 + $0xc5] sm:$0xff]  ;;  %v2198_v41 = vld [vmem:[#allocation2 + $0xce] sm:$0xff]  ;;  %v2354_v30 = vld [vmem:[#allocation2 + $0xdd] sm:$0xff] }
 0x49a   : > { %v2412_v55 = vmul.f32 %v2404_v24, %v5110_v58  ;;  %v1980_v9 = vadd.f32 %v1972_v3, %v1954_v53  ;;  %v1981_v52 = vadd.f32 %v1973_v18, %v1955_v35  ;;  %v2130_v43 = vmul.f32 %v4811_v29, %v2120_v8  ;;  %v2172_v3 = vld [vmem:[#allocation2 + $0xcd] sm:$0xff]  ;;  %v2225_v26 = vld [vmem:[#allocation2 + $0xe0] sm:$0xff] }
 0x49b   : > { %v2155_v6 = vmul.f32 %v4820_v50, %v2145_v0  ;;  %v2156_v48 = vmul.f32 %v4820_v50, %v2146_v38  ;;  %v2197_v56 = vld [vmem:[#allocation2 + $0xc6] sm:$0xff]  ;;  %v2181_v4 = vmul.f32 %v4829_v47, %v2171_v20  ;;  %v2182_v53 = vmul.f32 %v4829_v47, %v2172_v3  ;;  %v2250_v35 = vld [vmem:[#allocation2 + $0xd9] sm:$0xff] }
 0x49c   : > { %v2418_v28 = vpack.c.bf16 %v2412_v55, %v2411_v22  ;;  %v2006_v32 = vadd.f32 %v1998_v42, %v1980_v9  ;;  %v2007_v11 = vadd.f32 %v1999_v49, %v1981_v52  ;;  %v2207_v29 = vmul.f32 %v4838_v13, %v2197_v56  ;;  %v2251_v2 = vld [vmem:[#allocation2 + $0xe1] sm:$0xff]  ;;  %v5111_v3 = vld [vmem:[#allocation18_spill] sm:$0xff]  ;;  %v5113_v56 = vld [vmem:[#allocation33_spill] sm:$0xff] }
 0x49d   : > { %v2208_v22 = vmul.f32 %v4838_v13, %v2198_v41  ;;  %v2234_v50 = vmul.f32 %v4847_v36, %v2224_v23  ;;  %v2235_v55 = vmul.f32 %v4847_v36, %v2225_v26  ;;  %v2276_v9 = vld [vmem:[#allocation2 + $0xda] sm:$0xff]  ;;  %v2260_v47 = vmul.f32 %v4858_v45, %v2250_v35  ;;  %v2277_v14 = vld [vmem:[#allocation2 + $0xe2] sm:$0xff] }
 0x49e   : > { %2483 = vmatmul.bf16.gmra.mxu2 %v2418_v28  ;;  %v2032_v5 = vadd.f32 %v2024_v17, %v2006_v32  ;;  %v2033_v25 = vadd.f32 %v2025_v39, %v2007_v11  ;;  %v2261_v39 = vmul.f32 %v4858_v45, %v2251_v2  ;;  %v2286_v13 = vmul.f32 %v4869_v16, %v2276_v9  ;;  %v2303_v32 = vld [vmem:[#allocation2 + $0xe3] sm:$0xff] }
 0x49f   : > { %v2287_v27 = vmul.f32 %v4869_v16, %v2277_v14  ;;  %v2328_v11 = vld [vmem:[#allocation2 + $0xdc] sm:$0xff]  ;;  %v2312_v36 = vmul.f32 %v4880_v15, %v2302_v59  ;;  %v2329_v1 = vld [vmem:[#allocation2 + $0xe4] sm:$0xff]  ;;  %v2364_v16 = vmul.f32 %v4902_v46, %v2354_v30 }
 0x4a0   : > { %v2059_v62 = vadd.f32 %v2051_v12, %v2032_v5  ;;  %v2060_v51 = vadd.f32 %v2052_v21, %v2033_v25  ;;  %v2338_v45 = vmul.f32 %v4891_v34, %v2328_v11  ;;  %v5118_v14 = vld [vmem:[#allocation12_spill] sm:$0xff] }
 0x4a1   : > { %v5121_v30 = vld [vmem:[#allocation16_spill] sm:$0xff] }
 0x4a2   : > { %v2085_v10 = vadd.f32 %v2077_v61, %v2059_v62  ;;  %v2086_v40 = vadd.f32 %v2078_v63, %v2060_v51  ;;  %v2313_v61 = vmul.f32 %v4880_v15, %v2303_v32  ;;  %v2355_v63 = vld [vmem:[#allocation2 + $0xe5] sm:$0xff]  ;;  %v2339_v62 = vmul.f32 %v4891_v34, %v2329_v1 }
 0x4a3   : > { %v2381_v51 = vld [vmem:[#allocation2 + $0xe6] sm:$0xff]  ;;  %v2365_v0 = vmul.f32 %v4902_v46, %v2355_v63 }
 0x4a4   : > { %v2111_v44 = vadd.f32 %v2103_v33, %v2085_v10  ;;  %v2112_v57 = vadd.f32 %v2104_v60, %v2086_v40  ;;  %v2380_v33 = vld [vmem:[#allocation2 + $0xde] sm:$0xff]  ;;  %v2391_v38 = vmul.f32 %v4913_v37, %v2381_v51 }
 0x4a6   : > { %v2137_v18 = vadd.f32 %v2129_v19, %v2111_v44  ;;  %v2138_v24 = vadd.f32 %v2130_v43, %v2112_v57  ;;  %v2390_v19 = vmul.f32 %v4913_v37, %v2380_v33  ;;  %v2421_v57 = vperm.slane %v5111_v3, 0 }
 0x4a8   : > { %v2163_v42 = vadd.f32 %v2155_v6, %v2137_v18  ;;  %v2164_v7 = vadd.f32 %v2156_v48, %v2138_v24  ;;  %v5112_v48 = vld [vmem:[#allocation32_spill] sm:$0xff] }
 0x4aa   : > { %v2189_v49 = vadd.f32 %v2181_v4, %v2163_v42  ;;  %v2190_v58 = vadd.f32 %v2182_v53, %v2164_v7  ;;  %v5114_v4 = vld [vmem:[#allocation19_spill] sm:$0xff] }
 0x4ab   : > { %v2499_v41 = vperm.slane %v5114_v4, 0  ;;  %v5115_v42 = vld [vmem:[#allocation11_spill] sm:$0xff] }
 0x4ac   : > { %v2215_v17 = vadd.f32 %v2207_v29, %v2189_v49  ;;  %v2216_v52 = vadd.f32 %v2208_v22, %v2190_v58  ;;  %v5116_v22 = vld [vmem:[#allocation14_spill] sm:$0xff]  ;;  %v5117_v58 = vld [vmem:[#allocation9_spill] sm:$0xff] }
 0x4ae   : > { %v2242_v28 = vadd.f32 %v2234_v50, %v2215_v17  ;;  %v2243_v12 = vadd.f32 %v2235_v55, %v2216_v52 }
 0x4b0   : > { %v2268_v21 = vadd.f32 %v2260_v47, %v2242_v28  ;;  %v2269_v5 = vadd.f32 %v2261_v39, %v2243_v12 }
 0x4b2   : > { %v2294_v25 = vadd.f32 %v2286_v13, %v2268_v21  ;;  %v2295_v31 = vadd.f32 %v2287_v27, %v2269_v5  ;;  %v5119_v13 = vld [vmem:[#allocation10_spill] sm:$0xff]  ;;  %v5120_v21 = vld [vmem:[#allocation13_spill] sm:$0xff] }
 0x4b4   : > { %v2320_v8 = vadd.f32 %v2312_v36, %v2294_v25  ;;  %v2321_v60 = vadd.f32 %v2313_v61, %v2295_v31 }
 0x4b6   : > { %v2346_v10 = vadd.f32 %v2338_v45, %v2320_v8  ;;  %v2347_v15 = vadd.f32 %v2339_v62, %v2321_v60  ;;  %v5122_v62 = vld [vmem:[#allocation15_spill] sm:$0xff] }
 0x4b8   : > { %v2372_v40 = vadd.f32 %v2364_v16, %v2346_v10  ;;  %v2373_v43 = vadd.f32 %v2365_v0, %v2347_v15 }
 0x4ba   : > { %v2398_v20 = vadd.f32 %v2390_v19, %v2372_v40  ;;  %v2399_v44 = vadd.f32 %v2391_v38, %v2373_v43 }
 0x4bc   : > { %v2407_v34 = vadd.f32 %v5107_v54, %v2398_v20  ;;  %v2408_v6 = vadd.f32 %v5107_v54, %v2399_v44 }
 0x4be   : > { %v2415_v46 = vmul.f32 %v2407_v34, %v5112_v48  ;;  %v2416_v18 = vmul.f32 %v2408_v6, %v5113_v56 }
 0x4c0   : > { %v2420_v37 = vpack.c.bf16 %v2416_v18, %v2415_v46 }
 0x4c1   : > { %v2479_v24 = vpop.f32.mrf.mxu2 }
 0x4c2   : > { %v2480_v53 = vadd.f32 %v2479_v24, %v2421_v57  ;;  %2493 = vmatmul.bf16.gmra.mxu3 %v2420_v37 }
 0x4c4   : > { %v2500_v23 = vmul.f32 %v2499_v41, %v2480_v53 }
 0x4c6   : > { %v2508_v29 = vadd.f32 %v2500_v23, %v5115_v42 }
 0x4c8   : > { %2516 = vst [vmem:[%s3113_s15] sm:$0xff] %v2508_v29 }
 0x4c9   : > { %v2481_v54 = vpop.f32.mrf.mxu2 }
 0x4ca   : > { %v2482_v26 = vadd.f32 %v2481_v54, %v2421_v57 }
 0x4cc   : > { %v2501_v7 = vmul.f32 %v2499_v41, %v2482_v26 }
 0x4ce   : > { %v2509_v35 = vadd.f32 %v2501_v7, %v5116_v22 }
 0x4d0   : > { %2517 = vst [vmem:[%s3113_s15 + $0x8] sm:$0xff] %v2509_v35 }
 0x4de   : > { %v2489_v49 = vpop.f32.mrf.mxu3 }
 0x4df   : > { %v2490_v50 = vadd.f32 %v2489_v49, %v2421_v57 }
 0x4e1   : > { %v2504_v2 = vmul.f32 %v2499_v41, %v2490_v50 }
 0x4e3   : > { %v2512_v55 = vadd.f32 %v2504_v2, %v5117_v58 }
 0x4e5   : > { %2520 = vst [vmem:[%s3113_s15 + $0x20] sm:$0xff] %v2512_v55 }
 0x4e6   : > { %v2491_v9 = vpop.f32.mrf.mxu3 }
 0x4e7   : > { %v2492_v17 = vadd.f32 %v2491_v9, %v2421_v57 }
 0x4e9   : > { %v2505_v47 = vmul.f32 %v2499_v41, %v2492_v17 }
 0x4eb   : > { %v2513_v52 = vadd.f32 %v2505_v47, %v5118_v14 }
 0x4ed   : > { %2521 = vst [vmem:[%s3113_s15 + $0x28] sm:$0xff] %v2513_v52 }
 0x521   : > { %v2484_v39 = vpop.f32.mrf.mxu2 }
 0x522   : > { %v2485_v59 = vadd.f32 %v2484_v39, %v2421_v57 }
 0x524   : > { %v2502_v28 = vmul.f32 %v2499_v41, %v2485_v59 }
 0x526   : > { %v2510_v32 = vadd.f32 %v2502_v28, %v5119_v13 }
 0x528   : > { %2518 = vst [vmem:[%s3113_s15 + $0x10] sm:$0xff] %v2510_v32 }
 0x529   : > { %v2486_v12 = vpop.f32.mrf.mxu2 }
 0x52a   : > { %v2487_v27 = vadd.f32 %v2486_v12, %v2421_v57 }
 0x52c   : > { %v2503_v11 = vmul.f32 %v2499_v41, %v2487_v27 }
 0x52e   : > { %v2511_v36 = vadd.f32 %v2503_v11, %v5120_v21 }
 0x530   : > { %2519 = vst [vmem:[%s3113_s15 + $0x18] sm:$0xff] %v2511_v36 }
 0x545   : > { %v2494_v1 = vpop.f32.mrf.mxu3 }
 0x546   : > { %v2495_v5 = vadd.f32 %v2494_v1, %v2421_v57 }
 0x548   : > { %v2506_v61 = vmul.f32 %v2499_v41, %v2495_v5 }
 0x54a   : > { %v2514_v25 = vadd.f32 %v2506_v61, %v5121_v30 }
 0x54c   : > { %2522 = vst [vmem:[%s3113_s15 + $0x30] sm:$0xff] %v2514_v25 }
 0x54d   : > { %v2496_v45 = vpop.f32.mrf.mxu3 }
 0x54e   : > { %v2497_v63 = vadd.f32 %v2496_v45, %v2421_v57 }
 0x550   : > { %v2507_v31 = vmul.f32 %v2499_v41, %v2497_v63 }
 0x552   : > { %v2515_v33 = vadd.f32 %v2507_v31, %v5122_v62 }
 0x554   : > { %2523 = vst [vmem:[%s3113_s15 + $0x38] sm:$0xff] %v2515_v33 }
 0x555 PF: > { %s15_s22 = sadd.s32 1, %s3032_s22   ;;  %s5123_s18 = smov %s3024_s20 }
 0x556   : > { %p12_p11 = scmp.ge.s32.totalorder %s15_s22, 10   ;;  %s5124_s19 = smov %s3028_s21 }
 0x557   : > { %s5125_s20 = smov %s5128_s23  ;;  %s5126_s21 = smov %s5132_s24 }
 0x558   :  { %14 = sbr.rel (!%p12_p11) target bundleno = 3 (0x3), region = 132 }
 0x55d   :  { %2556 = vsyncmov [#allocation4] }
 0x560   :  { %s2557_s15 = vpop.sfrf %2556 }
 0x561   :  { %p2771_p12 = scmp.ne.s32.totalorder %s2557_s15, 0 }
 0x563   :  { %2561 = shalt.err (%p2771_p12)  }
 0x564   :  { %2563 = vsyncmov [#allocation4 + $0x1] }
 0x567   :  { %s2564_s14 = vpop.sfrf %2563 }
 0x568   :  { %p2772_p13 = scmp.ne.s32.totalorder %s2564_s14, 0 }
 0x56a   :  { %2568 = shalt.err (%p2772_p13)  }

</bundles_post_ra>
